<compile_context>
chip_gen: v7x
topology: tpu7x:2x2x1
jax: 0.10.0
libtpu: 0.0.40
codegen_flags: <defaults>
</compile_context>

<pallas_src>
import math
from functools import partial

import jax
import jax.numpy as jnp
from jax.experimental import pallas as pl
from jax.experimental.pallas import tpu as pltpu

VMEM = pltpu.MemorySpace.VMEM
_BIG = 1e30
_C = 128                                   # feature width (embedding_dim)


def _net_kernel(data_ref, w128_ref, w256_ref, aux_ref, out_ref, *, ks, num_graphs):
    N = data_ref.shape[0]                  # padded node count (multiple of 8)
    C = _C
    B = num_graphs

    # ---- unpack node-data slab (one DMA): [x | adj | same_graph | gm | valid] ----
    x          = data_ref[:, 0:C]                       # [N, C]
    adj        = data_ref[:, C:C + N]                   # [N, N]  adj[dst, src]
    same_graph = data_ref[:, 2 * C:2 * C + N]           # [N, N]  (host precomputed)
    gm         = data_ref[:, 3 * C:3 * C + B]           # [N, B]  one-hot membership
    valid_col  = data_ref[:, 3 * C + B:3 * C + B + 1]   # [N, 1]  non-pad nodes

    # ---- weight slab tail: pool score vectors + lin3 column (one aligned load) ----
    tail = w128_ref[:, 3 * C:3 * C + 4]                 # [128, 4]
    pool_w = (tail[:, 0:1], tail[:, 1:2], tail[:, 2:3])
    lin3_w = tail[:, 3:4]                                # [128, 1] (rows 64.. are 0)

    # ---- static helpers ----
    ri = jax.lax.broadcasted_iota(jnp.int32, (N, N), 0)        # dst index
    ci = jax.lax.broadcasted_iota(jnp.int32, (N, N), 1)        # src index
    eye = (ri == ci).astype(jnp.float32)

    def col_to_row(c):                    # [N,1] -> [1,N] without a transpose op
        return jnp.sum(eye * c, axis=0, keepdims=True)

    valid_row = col_to_row(valid_col)     # computed once; later stages reuse keep_row

    # ---- TopKPooling(ratio=0.8): keep top-k per graph, scale by tanh score ----
    def top_k_pool(x, adj, valid_col, valid_row, w, k):
        inv_norm = jax.lax.rsqrt(jnp.sum(w * w))
        sc = jnp.tanh(jnp.dot(x, w, preferred_element_type=jnp.float32) * inv_norm)  # [N,1]
        sc_row = col_to_row(sc)                                                       # [1,N]
        # node j "beats" node i: strictly larger score, or equal score & smaller index
        beats = ((sc_row > sc) | ((sc_row == sc) & (ci < ri))).astype(jnp.float32)
        rank = jnp.sum(beats * same_graph * valid_row, axis=1, keepdims=True)         # [N,1]
        keep = valid_col * (rank < float(k)).astype(jnp.float32)                      # [N,1]
        keep_row = col_to_row(keep)
        x_new = x * sc * keep                 # keep + scale by score; dropped rows -> 0
        adj_new = adj * keep * keep_row       # drop edges touching removed nodes
        return x_new, adj_new, keep, keep_row

    # ---- cat([global_max_pool, global_mean_pool]) readout ----------------------
    def readout(x, keep_col, k):
        gm_keep = gm * keep_col                         # [N, B]
        inv_k = 1.0 / float(k)
        gmp_rows, gap_rows = [], []
        # B is tiny & static; rows assembled with one concat (no serial acc chain).
        # For large B: mean-pool becomes (gm_keep)^T @ x on the MXU, max-pool B-blocked.
        for b in range(B):
            m = gm_keep[:, b:b + 1]                                              # [N,1]
            gmp_rows.append(jnp.max(x + (m - 1.0) * _BIG, axis=0, keepdims=True))
            gap_rows.append(jnp.sum(x * m, axis=0, keepdims=True) * inv_k)
        return jnp.concatenate([jnp.concatenate(gmp_rows, axis=0),
                                jnp.concatenate(gap_rows, axis=0)], axis=1)       # [B,2C]

    # ---- SAGEConv(aggr='max'): msg=ReLU(lin(x_j)); aggr=max; upd=ReLU(cat@Wu) ----
    def sage(x, adj, keep_col, wl, bl, wu):
        a = jnp.maximum(adj, eye)            # remove_self_loops + add_self_loops
        msg = jnp.maximum(
            jnp.dot(x, wl, preferred_element_type=jnp.float32) + bl, 0.0)         # [N,C] >= 0
        # Per-source-column max-aggregation with a running accumulator: both operands
        # broadcast naturally (lane-splat column x sublane-splat row); only ~3-6 vregs
        # live, no [blk,N,C] intermediates, no XLU relayout / cross-sublane reduce.
        # Exact because msg >= 0 and every destination has a self loop (0s can't win).
        aggr = jnp.zeros((N, C), jnp.float32)
        for j in range(N):                                   # N static & small
            aggr = jnp.maximum(aggr, a[:, j:j + 1] * msg[j:j + 1, :])
        # single K=256 update matmul on cat([aggr, x]) (v6e/v7x MXU); on v5e split
        # into aggr @ wu[:128] + x @ wu[128:] to drop the lane concat.
        cat = jnp.concatenate([aggr, x], axis=1)                                  # [N,2C]
        out = jnp.maximum(jnp.dot(cat, wu, preferred_element_type=jnp.float32), 0.0)
        return out * keep_col                # zero rows of pooled-away / pad nodes

    # ---- forward ----------------------------------------------------------------
    x1, adj1, keep, keep_row = top_k_pool(x, adj, valid_col, valid_row, pool_w[0], ks[0])
    r = readout(x1, keep, ks[0])                                                  # x1

    h = sage(x1, adj1, keep, w128_ref[:, 0:C], aux_ref[0:1, :], w256_ref[:, 0:C])  # relu(conv2)
    x2, adj2, keep, keep_row = top_k_pool(h, adj1, keep, keep_row, pool_w[1], ks[1])
    r = r + readout(x2, keep, ks[1])                                              # + x2

    h = sage(x2, adj2, keep, w128_ref[:, C:2 * C], aux_ref[1:2, :], w256_ref[:, C:2 * C])
    x3, adj3, keep, keep_row = top_k_pool(h, adj2, keep, keep_row, pool_w[2], ks[2])
    r = r + readout(x3, keep, ks[2])                                              # + x3

    # fused MLP head: lin1 -> relu -> lin2 -> relu -> (dropout=id) -> lin3 -> sigmoid
    h = jnp.maximum(jnp.dot(r, w256_ref[:, 2 * C:3 * C],
                            preferred_element_type=jnp.float32) + aux_ref[2:3, :], 0.0)
    h = jnp.maximum(jnp.dot(h, w128_ref[:, 2 * C:3 * C],
                            preferred_element_type=jnp.float32) + aux_ref[3:4, :], 0.0)
    # TODO(synk): F.dropout(p=0.5) implemented in eval mode (identity); training-mode RNG dropout omitted.
    logit = jnp.dot(h, lin3_w, preferred_element_type=jnp.float32) + aux_ref[4:5, 0:1]
    out_ref[...] = pl.reciprocal(1.0 + jnp.exp(-logit), approx=True)   # sigmoid (recip on EUP)


# ---------------------------------------------------------------------------
# Net.forward (single fused pallas_call; embedding gather / adjacency scatter /
# slab packing remain as one-time XLA glue fused under jit before the kernel)
# ---------------------------------------------------------------------------

@partial(jax.jit, static_argnums=(3, 4))
def net_forward(packed, x_idx, edge_index, num_graphs, n_per):
    C = _C
    # x = item_embedding(x).squeeze(1)
    x = jnp.take(packed["emb"], x_idx[:, 0], axis=0)                  # [N, 128]
    n_real = x.shape[0]
    n_pad = ((n_real + 7) // 8) * 8                                    # sublane-align (20 -> 24)
    assert n_pad <= 128, "single-tile kernel packs adjacency into 128 lanes; tile/grid for larger N"
    x = jnp.pad(x, ((0, n_pad - n_real), (0, 0)))

    # dense adjacency adj[dst, src]; pad rows/cols stay 0 (columns padded to 128 lanes)
    adj = jnp.zeros((n_pad, C), jnp.float32).at[edge_index[1], edge_index[0]].set(1.0)
    # one-hot graph membership (pad nodes belong to no graph) + precomputed masks
    gid = jnp.arange(n_pad) // n_per
    gm = (gid[:, None] == jnp.arange(num_graphs)[None, :]).astype(jnp.float32)     # [n_pad, B]
    valid = (jnp.arange(n_pad) < n_real).astype(jnp.float32)                       # [n_pad]
    same_graph = jnp.pad(jnp.dot(gm, gm.T), ((0, 0), (0, C - n_pad)))              # [n_pad, 128]

    # packed node-data slab: [x | adj | same_graph | gm | valid_col]  -> one DMA
    data = jnp.concatenate([x, adj, same_graph, gm, valid[:, None]], axis=1)

    # static per-stage keep counts (TopKPooling ratio = 0.8, equal-size graphs)
    k_keep, n = [], n_per
    for _ in range(3):
        n = min(int(math.ceil(0.8 * n)), n)
        k_keep.append(n)

    out = pl.pallas_call(
        partial(_net_kernel, ks=tuple(k_keep), num_graphs=num_graphs),
        out_shape=jax.ShapeDtypeStruct((num_graphs, 1), jnp.float32),
        in_specs=[pl.BlockSpec(memory_space=VMEM)] * 4,
        out_specs=pl.BlockSpec(memory_space=VMEM),
        compiler_params=pltpu.CompilerParams(vmem_limit_bytes=32 * 1024 * 1024),
        # NOTE(v7x): with a larger real batch, add a leading grid axis over graph
        # chunks with dimension_semantics=("parallel",) to use the second TensorCore
        # and to push the matmul M dimension toward 128-256.
    )(data, packed["w128"], packed["w256"], packed["aux"])
    return out[:, 0]                                                   # .squeeze(1)


# ---------------------------------------------------------------------------
# Parameters (deterministic synthetic init; shapes from Net.__init__) + packing
# ---------------------------------------------------------------------------

def init_params(key):
    kk = jax.random.split(key, 12)

    def nrm(k, shape, scale=0.05):
        return jax.random.normal(k, shape, dtype=jnp.float32) * scale

    def sage_p(k1, k2):
        return {"wl": nrm(k1, (128, 128)),                 # message lin (128 -> 128), transposed
                "bl": jnp.zeros((1, 128), jnp.float32),
                "wu": nrm(k2, (256, 128))}                 # update lin on cat([aggr, x]), no bias

    return {
        "emb": nrm(kk[0], (1433, 128), 0.1),               # item_embedding
        "conv2": sage_p(kk[1], kk[2]),
        "conv3": sage_p(kk[3], kk[4]),
        "pool1_w": nrm(kk[5], (128, 1), 0.1),
        "pool2_w": nrm(kk[6], (128, 1), 0.1),
        "pool3_w": nrm(kk[7], (128, 1), 0.1),
        "lin1_w": nrm(kk[8], (256, 128)), "lin1_b": jnp.zeros((1, 128), jnp.float32),
        "lin2_w": nrm(kk[9], (128, 64)),  "lin2_b": jnp.zeros((1, 64), jnp.float32),
        "lin3_w": nrm(kk[10], (64, 1)),   "lin3_b": jnp.zeros((1, 1), jnp.float32),
    }
    # NOTE: conv1, bn1, bn2 exist in Net.__init__ but are never used in forward(); omitted on purpose.


def pack_weights(p):
    """Pack the 15 small weight/bias tensors into 3 VMEM slabs (one-time, host side)."""
    C = _C
    lin2_w = jnp.pad(p["lin2_w"], ((0, 0), (0, C - 64)))         # [128,128], cols 64.. zero
    lin3_w = jnp.pad(p["lin3_w"], ((0, C - 64), (0, 0)))         # [128,1],  rows 64.. zero
    # [128, 388]: conv2_wl | conv3_wl | lin2_w | pool1_w pool2_w pool3_w lin3_w
    w128 = jnp.concatenate([p["conv2"]["wl"], p["conv3"]["wl"], lin2_w,
                            p["pool1_w"], p["pool2_w"], p["pool3_w"], lin3_w], axis=1)
    # [256, 384]: conv2_wu | conv3_wu | lin1_w
    w256 = jnp.concatenate([p["conv2"]["wu"], p["conv3"]["wu"], p["lin1_w"]], axis=1)
    # [8, 128] bias slab: conv2_bl, conv3_bl, lin1_b, lin2_b(pad), lin3_b@[4,0]
    aux = jnp.zeros((8, C), jnp.float32)
    aux = aux.at[0, :].set(p["conv2"]["bl"][0])
    aux = aux.at[1, :].set(p["conv3"]["bl"][0])
    aux = aux.at[2, :].set(p["lin1_b"][0])
    aux = aux.at[3, :64].set(p["lin2_b"][0])
    aux = aux.at[4, 0].set(p["lin3_b"][0, 0])
    return {"emb": p["emb"], "w128": w128, "w256": w256, "aux": aux}


if __name__ == "__main__":
    key = jax.random.PRNGKey(0)
    k_params, k_idx, k_src, k_dst = jax.random.split(key, 4)

    num_graphs, n_per = 2, 10                              # batch = [0]*10 + [1]*10
    N, E_per = num_graphs * n_per, 15

    x_idx = jax.random.randint(k_idx, (N, 1), 0, 1433, dtype=jnp.int32)   # item ids (like data.x)
    src = jax.random.randint(k_src, (num_graphs, E_per), 0, n_per)
    dst = jax.random.randint(k_dst, (num_graphs, E_per), 0, n_per)
    offs = (jnp.arange(num_graphs) * n_per)[:, None]
    edge_index = jnp.stack([(src + offs).reshape(-1),
                            (dst + offs).reshape(-1)], axis=0).astype(jnp.int32)      # [2, 30]

    packed = pack_weights(init_params(k_params))
    out = net_forward(packed, x_idx, edge_index, num_graphs, n_per)
    out = jax.block_until_ready(out)
    assert out.shape == (num_graphs,) and out.dtype == jnp.float32
    assert bool(jnp.all(jnp.isfinite(out)))
    print("KERNEL_OK")
</pallas_src>

<mosaic_0001>
module attributes {stable_mosaic.version = 11 : i64} {
  func.func @_net_kernel(%arg0: memref<24x387xf32, #tpu.memory_space<vmem>>, %arg1: memref<128x388xf32, #tpu.memory_space<vmem>>, %arg2: memref<256x384xf32, #tpu.memory_space<vmem>>, %arg3: memref<8x128xf32, #tpu.memory_space<vmem>>, %arg4: memref<2x1xf32, #tpu.memory_space<vmem>>) attributes {dimension_semantics = [], scalar_prefetch = 0 : i64, scratch_operands = 0 : i64, tpu.core_type = #tpu.core_type<tc>} {
    %c0 = arith.constant 0 : index
    %c0_0 = arith.constant 0 : index
    %0 = vector.load %arg0[%c0, %c0_0] : memref<24x387xf32, #tpu.memory_space<vmem>>, vector<24x128xf32>
    %c0_1 = arith.constant 0 : index
    %c128 = arith.constant 128 : index
    %1 = vector.load %arg0[%c0_1, %c128] : memref<24x387xf32, #tpu.memory_space<vmem>>, vector<24x24xf32>
    %c0_2 = arith.constant 0 : index
    %c256 = arith.constant 256 : index
    %2 = vector.load %arg0[%c0_2, %c256] : memref<24x387xf32, #tpu.memory_space<vmem>>, vector<24x24xf32>
    %c0_3 = arith.constant 0 : index
    %c384 = arith.constant 384 : index
    %3 = vector.load %arg0[%c0_3, %c384] : memref<24x387xf32, #tpu.memory_space<vmem>>, vector<24x2xf32>
    %c0_4 = arith.constant 0 : index
    %c386 = arith.constant 386 : index
    %4 = vector.load %arg0[%c0_4, %c386] : memref<24x387xf32, #tpu.memory_space<vmem>>, vector<24x1xf32>
    %c0_5 = arith.constant 0 : index
    %c384_6 = arith.constant 384 : index
    %5 = vector.load %arg1[%c0_5, %c384_6] : memref<128x388xf32, #tpu.memory_space<vmem>>, vector<128x4xf32>
    %6 = vector.extract_strided_slice %5 {offsets = [0, 0], sizes = [128, 1], strides = [1, 1]} : vector<128x4xf32> to vector<128x1xf32>
    %7 = vector.extract_strided_slice %5 {offsets = [0, 1], sizes = [128, 1], strides = [1, 1]} : vector<128x4xf32> to vector<128x1xf32>
    %8 = vector.extract_strided_slice %5 {offsets = [0, 2], sizes = [128, 1], strides = [1, 1]} : vector<128x4xf32> to vector<128x1xf32>
    %9 = vector.extract_strided_slice %5 {offsets = [0, 3], sizes = [128, 1], strides = [1, 1]} : vector<128x4xf32> to vector<128x1xf32>
    %10 = tpu.iota {dimensions = array<i32: 0>} : vector<24x24xi32>
    %11 = tpu.iota {dimensions = array<i32: 1>} : vector<24x24xi32>
    %12 = arith.cmpi eq, %10, %11 : vector<24x24xi32>
    %13 = arith.extui %12 : vector<24x24xi1> to vector<24x24xi32>
    %14 = arith.sitofp %13 : vector<24x24xi32> to vector<24x24xf32>
    %15 = vector.broadcast %4 : vector<24x1xf32> to vector<24x24xf32>
    %16 = arith.mulf %14, %15 : vector<24x24xf32>
    %cst = arith.constant dense<0.000000e+00> : vector<24xf32>
    %17 = vector.multi_reduction <add>, %16, %cst [0] : vector<24x24xf32> to vector<24xf32>
    %18 = vector.shape_cast %17 : vector<24xf32> to vector<1x24xf32>
    %19 = arith.mulf %6, %6 : vector<128x1xf32>
    %20 = vector.shape_cast %19 : vector<128x1xf32> to vector<1x128x1xf32>
    %cst_7 = arith.constant dense<0.000000e+00> : vector<1xf32>
    %21 = vector.multi_reduction <add>, %20, %cst_7 [1, 2] : vector<1x128x1xf32> to vector<1xf32>
    %22 = vector.shape_cast %21 : vector<1xf32> to vector<1x1x1xf32>
    %23 = vector.extract %22[0, 0, 0] : f32 from vector<1x1x1xf32>
    %24 = math.rsqrt %23 : f32
    %cst_8 = arith.constant dense<0.000000e+00> : vector<24x1xf32>
    %25 = tpu.matmul %0, %6, %cst_8 {dimension_numbers = #tpu.dot_dimension_numbers<[1], [0], [0], [1], [0, 0, 1, 1], [], []>} : vector<24x128xf32>, vector<128x1xf32>, vector<24x1xf32> -> vector<24x1xf32>
    %26 = vector.broadcast %24 : f32 to vector<24x1xf32>
    %27 = arith.mulf %25, %26 : vector<24x1xf32>
    %28 = math.tanh %27 : vector<24x1xf32>
    %29 = vector.broadcast %28 : vector<24x1xf32> to vector<24x24xf32>
    %30 = arith.mulf %14, %29 : vector<24x24xf32>
    %cst_9 = arith.constant dense<0.000000e+00> : vector<24xf32>
    %31 = vector.multi_reduction <add>, %30, %cst_9 [0] : vector<24x24xf32> to vector<24xf32>
    %32 = vector.shape_cast %31 : vector<24xf32> to vector<1x24xf32>
    %33 = vector.broadcast %32 : vector<1x24xf32> to vector<24x24xf32>
    %34 = vector.broadcast %28 : vector<24x1xf32> to vector<24x24xf32>
    %35 = arith.cmpf ogt, %33, %34 : vector<24x24xf32>
    %36 = vector.broadcast %32 : vector<1x24xf32> to vector<24x24xf32>
    %37 = vector.broadcast %28 : vector<24x1xf32> to vector<24x24xf32>
    %38 = arith.cmpf oeq, %36, %37 : vector<24x24xf32>
    %39 = arith.cmpi slt, %11, %10 : vector<24x24xi32>
    %40 = arith.andi %38, %39 : vector<24x24xi1>
    %41 = arith.ori %35, %40 : vector<24x24xi1>
    %42 = arith.extui %41 : vector<24x24xi1> to vector<24x24xi32>
    %43 = arith.sitofp %42 : vector<24x24xi32> to vector<24x24xf32>
    %44 = arith.mulf %43, %2 : vector<24x24xf32>
    %45 = vector.broadcast %18 : vector<1x24xf32> to vector<24x24xf32>
    %46 = arith.mulf %44, %45 : vector<24x24xf32>
    %cst_10 = arith.constant dense<0.000000e+00> : vector<24xf32>
    %47 = vector.multi_reduction <add>, %46, %cst_10 [1] : vector<24x24xf32> to vector<24xf32>
    %48 = vector.shape_cast %47 : vector<24xf32> to vector<24x1xf32>
    %cst_11 = arith.constant 8.000000e+00 : f32
    %49 = vector.broadcast %cst_11 : f32 to vector<24x1xf32>
    %50 = arith.cmpf olt, %48, %49 : vector<24x1xf32>
    %51 = arith.extui %50 : vector<24x1xi1> to vector<24x1xi32>
    %52 = arith.sitofp %51 : vector<24x1xi32> to vector<24x1xf32>
    %53 = arith.mulf %4, %52 : vector<24x1xf32>
    %54 = vector.broadcast %53 : vector<24x1xf32> to vector<24x24xf32>
    %55 = arith.mulf %14, %54 : vector<24x24xf32>
    %cst_12 = arith.constant dense<0.000000e+00> : vector<24xf32>
    %56 = vector.multi_reduction <add>, %55, %cst_12 [0] : vector<24x24xf32> to vector<24xf32>
    %57 = vector.shape_cast %56 : vector<24xf32> to vector<1x24xf32>
    %58 = vector.broadcast %28 : vector<24x1xf32> to vector<24x128xf32>
    %59 = arith.mulf %0, %58 : vector<24x128xf32>
    %60 = vector.broadcast %53 : vector<24x1xf32> to vector<24x128xf32>
    %61 = arith.mulf %59, %60 : vector<24x128xf32>
    %62 = vector.broadcast %53 : vector<24x1xf32> to vector<24x24xf32>
    %63 = arith.mulf %1, %62 : vector<24x24xf32>
    %64 = vector.broadcast %57 : vector<1x24xf32> to vector<24x24xf32>
    %65 = arith.mulf %63, %64 : vector<24x24xf32>
    %66 = vector.broadcast %53 : vector<24x1xf32> to vector<24x2xf32>
    %67 = arith.mulf %3, %66 : vector<24x2xf32>
    %68 = vector.extract_strided_slice %67 {offsets = [0, 0], sizes = [24, 1], strides = [1, 1]} : vector<24x2xf32> to vector<24x1xf32>
    %cst_13 = arith.constant 1.000000e+00 : f32
    %69 = vector.broadcast %cst_13 : f32 to vector<24x1xf32>
    %70 = arith.subf %68, %69 : vector<24x1xf32>
    %cst_14 = arith.constant 1.000000e+30 : f32
    %71 = vector.broadcast %cst_14 : f32 to vector<24x1xf32>
    %72 = arith.mulf %70, %71 : vector<24x1xf32>
    %73 = vector.broadcast %72 : vector<24x1xf32> to vector<24x128xf32>
    %74 = arith.addf %61, %73 : vector<24x128xf32>
    %cst_15 = arith.constant dense<0xFF800000> : vector<128xf32>
    %75 = vector.multi_reduction <maximumf>, %74, %cst_15 [0] : vector<24x128xf32> to vector<128xf32>
    %76 = vector.shape_cast %75 : vector<128xf32> to vector<1x128xf32>
    %77 = vector.broadcast %68 : vector<24x1xf32> to vector<24x128xf32>
    %78 = arith.mulf %61, %77 : vector<24x128xf32>
    %cst_16 = arith.constant dense<0.000000e+00> : vector<128xf32>
    %79 = vector.multi_reduction <add>, %78, %cst_16 [0] : vector<24x128xf32> to vector<128xf32>
    %80 = vector.shape_cast %79 : vector<128xf32> to vector<1x128xf32>
    %cst_17 = arith.constant 1.250000e-01 : f32
    %81 = vector.broadcast %cst_17 : f32 to vector<1x128xf32>
    %82 = arith.mulf %80, %81 : vector<1x128xf32>
    %83 = vector.extract_strided_slice %67 {offsets = [0, 1], sizes = [24, 1], strides = [1, 1]} : vector<24x2xf32> to vector<24x1xf32>
    %cst_18 = arith.constant 1.000000e+00 : f32
    %84 = vector.broadcast %cst_18 : f32 to vector<24x1xf32>
    %85 = arith.subf %83, %84 : vector<24x1xf32>
    %cst_19 = arith.constant 1.000000e+30 : f32
    %86 = vector.broadcast %cst_19 : f32 to vector<24x1xf32>
    %87 = arith.mulf %85, %86 : vector<24x1xf32>
    %88 = vector.broadcast %87 : vector<24x1xf32> to vector<24x128xf32>
    %89 = arith.addf %61, %88 : vector<24x128xf32>
    %cst_20 = arith.constant dense<0xFF800000> : vector<128xf32>
    %90 = vector.multi_reduction <maximumf>, %89, %cst_20 [0] : vector<24x128xf32> to vector<128xf32>
    %91 = vector.shape_cast %90 : vector<128xf32> to vector<1x128xf32>
    %92 = vector.broadcast %83 : vector<24x1xf32> to vector<24x128xf32>
    %93 = arith.mulf %61, %92 : vector<24x128xf32>
    %cst_21 = arith.constant dense<0.000000e+00> : vector<128xf32>
    %94 = vector.multi_reduction <add>, %93, %cst_21 [0] : vector<24x128xf32> to vector<128xf32>
    %95 = vector.shape_cast %94 : vector<128xf32> to vector<1x128xf32>
    %cst_22 = arith.constant 1.250000e-01 : f32
    %96 = vector.broadcast %cst_22 : f32 to vector<1x128xf32>
    %97 = arith.mulf %95, %96 : vector<1x128xf32>
    %98 = tpu.concatenate %76, %91 in 0 : vector<1x128xf32>, vector<1x128xf32> -> vector<2x128xf32>
    %99 = tpu.concatenate %82, %97 in 0 : vector<1x128xf32>, vector<1x128xf32> -> vector<2x128xf32>
    %100 = tpu.concatenate %98, %99 in 1 : vector<2x128xf32>, vector<2x128xf32> -> vector<2x256xf32>
    %c0_23 = arith.constant 0 : index
    %c0_24 = arith.constant 0 : index
    %101 = vector.load %arg1[%c0_23, %c0_24] : memref<128x388xf32, #tpu.memory_space<vmem>>, vector<128x128xf32>
    %c0_25 = arith.constant 0 : index
    %c0_26 = arith.constant 0 : index
    %102 = vector.load %arg3[%c0_25, %c0_26] : memref<8x128xf32, #tpu.memory_space<vmem>>, vector<1x128xf32>
    %c0_27 = arith.constant 0 : index
    %c0_28 = arith.constant 0 : index
    %103 = vector.load %arg2[%c0_27, %c0_28] : memref<256x384xf32, #tpu.memory_space<vmem>>, vector<256x128xf32>
    %104 = arith.maximumf %65, %14 : vector<24x24xf32>
    %cst_29 = arith.constant dense<0.000000e+00> : vector<24x128xf32>
    %105 = tpu.matmul %61, %101, %cst_29 {dimension_numbers = #tpu.dot_dimension_numbers<[1], [0], [0], [1], [0, 0, 1, 1], [], []>} : vector<24x128xf32>, vector<128x128xf32>, vector<24x128xf32> -> vector<24x128xf32>
    %106 = vector.broadcast %102 : vector<1x128xf32> to vector<24x128xf32>
    %107 = arith.addf %105, %106 : vector<24x128xf32>
    %cst_30 = arith.constant 0.000000e+00 : f32
    %108 = vector.broadcast %cst_30 : f32 to vector<24x128xf32>
    %109 = arith.maximumf %107, %108 : vector<24x128xf32>
    %cst_31 = arith.constant 0.000000e+00 : f32
    %110 = vector.broadcast %cst_31 : f32 to vector<24x128xf32>
    %111 = vector.extract_strided_slice %104 {offsets = [0, 0], sizes = [24, 1], strides = [1, 1]} : vector<24x24xf32> to vector<24x1xf32>
    %112 = vector.extract_strided_slice %109 {offsets = [0, 0], sizes = [1, 128], strides = [1, 1]} : vector<24x128xf32> to vector<1x128xf32>
    %113 = vector.broadcast %111 : vector<24x1xf32> to vector<24x128xf32>
    %114 = vector.broadcast %112 : vector<1x128xf32> to vector<24x128xf32>
    %115 = arith.mulf %113, %114 : vector<24x128xf32>
    %116 = arith.maximumf %110, %115 : vector<24x128xf32>
    %117 = vector.extract_strided_slice %104 {offsets = [0, 1], sizes = [24, 1], strides = [1, 1]} : vector<24x24xf32> to vector<24x1xf32>
    %118 = vector.extract_strided_slice %109 {offsets = [1, 0], sizes = [1, 128], strides = [1, 1]} : vector<24x128xf32> to vector<1x128xf32>
    %119 = vector.broadcast %117 : vector<24x1xf32> to vector<24x128xf32>
    %120 = vector.broadcast %118 : vector<1x128xf32> to vector<24x128xf32>
    %121 = arith.mulf %119, %120 : vector<24x128xf32>
    %122 = arith.maximumf %116, %121 : vector<24x128xf32>
    %123 = vector.extract_strided_slice %104 {offsets = [0, 2], sizes = [24, 1], strides = [1, 1]} : vector<24x24xf32> to vector<24x1xf32>
    %124 = vector.extract_strided_slice %109 {offsets = [2, 0], sizes = [1, 128], strides = [1, 1]} : vector<24x128xf32> to vector<1x128xf32>
    %125 = vector.broadcast %123 : vector<24x1xf32> to vector<24x128xf32>
    %126 = vector.broadcast %124 : vector<1x128xf32> to vector<24x128xf32>
    %127 = arith.mulf %125, %126 : vector<24x128xf32>
    %128 = arith.maximumf %122, %127 : vector<24x128xf32>
    %129 = vector.extract_strided_slice %104 {offsets = [0, 3], sizes = [24, 1], strides = [1, 1]} : vector<24x24xf32> to vector<24x1xf32>
    %130 = vector.extract_strided_slice %109 {offsets = [3, 0], sizes = [1, 128], strides = [1, 1]} : vector<24x128xf32> to vector<1x128xf32>
    %131 = vector.broadcast %129 : vector<24x1xf32> to vector<24x128xf32>
    %132 = vector.broadcast %130 : vector<1x128xf32> to vector<24x128xf32>
    %133 = arith.mulf %131, %132 : vector<24x128xf32>
    %134 = arith.maximumf %128, %133 : vector<24x128xf32>
    %135 = vector.extract_strided_slice %104 {offsets = [0, 4], sizes = [24, 1], strides = [1, 1]} : vector<24x24xf32> to vector<24x1xf32>
    %136 = vector.extract_strided_slice %109 {offsets = [4, 0], sizes = [1, 128], strides = [1, 1]} : vector<24x128xf32> to vector<1x128xf32>
    %137 = vector.broadcast %135 : vector<24x1xf32> to vector<24x128xf32>
    %138 = vector.broadcast %136 : vector<1x128xf32> to vector<24x128xf32>
    %139 = arith.mulf %137, %138 : vector<24x128xf32>
    %140 = arith.maximumf %134, %139 : vector<24x128xf32>
    %141 = vector.extract_strided_slice %104 {offsets = [0, 5], sizes = [24, 1], strides = [1, 1]} : vector<24x24xf32> to vector<24x1xf32>
    %142 = vector.extract_strided_slice %109 {offsets = [5, 0], sizes = [1, 128], strides = [1, 1]} : vector<24x128xf32> to vector<1x128xf32>
    %143 = vector.broadcast %141 : vector<24x1xf32> to vector<24x128xf32>
    %144 = vector.broadcast %142 : vector<1x128xf32> to vector<24x128xf32>
    %145 = arith.mulf %143, %144 : vector<24x128xf32>
    %146 = arith.maximumf %140, %145 : vector<24x128xf32>
    %147 = vector.extract_strided_slice %104 {offsets = [0, 6], sizes = [24, 1], strides = [1, 1]} : vector<24x24xf32> to vector<24x1xf32>
    %148 = vector.extract_strided_slice %109 {offsets = [6, 0], sizes = [1, 128], strides = [1, 1]} : vector<24x128xf32> to vector<1x128xf32>
    %149 = vector.broadcast %147 : vector<24x1xf32> to vector<24x128xf32>
    %150 = vector.broadcast %148 : vector<1x128xf32> to vector<24x128xf32>
    %151 = arith.mulf %149, %150 : vector<24x128xf32>
    %152 = arith.maximumf %146, %151 : vector<24x128xf32>
    %153 = vector.extract_strided_slice %104 {offsets = [0, 7], sizes = [24, 1], strides = [1, 1]} : vector<24x24xf32> to vector<24x1xf32>
    %154 = vector.extract_strided_slice %109 {offsets = [7, 0], sizes = [1, 128], strides = [1, 1]} : vector<24x128xf32> to vector<1x128xf32>
    %155 = vector.broadcast %153 : vector<24x1xf32> to vector<24x128xf32>
    %156 = vector.broadcast %154 : vector<1x128xf32> to vector<24x128xf32>
    %157 = arith.mulf %155, %156 : vector<24x128xf32>
    %158 = arith.maximumf %152, %157 : vector<24x128xf32>
    %159 = vector.extract_strided_slice %104 {offsets = [0, 8], sizes = [24, 1], strides = [1, 1]} : vector<24x24xf32> to vector<24x1xf32>
    %160 = vector.extract_strided_slice %109 {offsets = [8, 0], sizes = [1, 128], strides = [1, 1]} : vector<24x128xf32> to vector<1x128xf32>
    %161 = vector.broadcast %159 : vector<24x1xf32> to vector<24x128xf32>
    %162 = vector.broadcast %160 : vector<1x128xf32> to vector<24x128xf32>
    %163 = arith.mulf %161, %162 : vector<24x128xf32>
    %164 = arith.maximumf %158, %163 : vector<24x128xf32>
    %165 = vector.extract_strided_slice %104 {offsets = [0, 9], sizes = [24, 1], strides = [1, 1]} : vector<24x24xf32> to vector<24x1xf32>
    %166 = vector.extract_strided_slice %109 {offsets = [9, 0], sizes = [1, 128], strides = [1, 1]} : vector<24x128xf32> to vector<1x128xf32>
    %167 = vector.broadcast %165 : vector<24x1xf32> to vector<24x128xf32>
    %168 = vector.broadcast %166 : vector<1x128xf32> to vector<24x128xf32>
    %169 = arith.mulf %167, %168 : vector<24x128xf32>
    %170 = arith.maximumf %164, %169 : vector<24x128xf32>
    %171 = vector.extract_strided_slice %104 {offsets = [0, 10], sizes = [24, 1], strides = [1, 1]} : vector<24x24xf32> to vector<24x1xf32>
    %172 = vector.extract_strided_slice %109 {offsets = [10, 0], sizes = [1, 128], strides = [1, 1]} : vector<24x128xf32> to vector<1x128xf32>
    %173 = vector.broadcast %171 : vector<24x1xf32> to vector<24x128xf32>
    %174 = vector.broadcast %172 : vector<1x128xf32> to vector<24x128xf32>
    %175 = arith.mulf %173, %174 : vector<24x128xf32>
    %176 = arith.maximumf %170, %175 : vector<24x128xf32>
    %177 = vector.extract_strided_slice %104 {offsets = [0, 11], sizes = [24, 1], strides = [1, 1]} : vector<24x24xf32> to vector<24x1xf32>
    %178 = vector.extract_strided_slice %109 {offsets = [11, 0], sizes = [1, 128], strides = [1, 1]} : vector<24x128xf32> to vector<1x128xf32>
    %179 = vector.broadcast %177 : vector<24x1xf32> to vector<24x128xf32>
    %180 = vector.broadcast %178 : vector<1x128xf32> to vector<24x128xf32>
    %181 = arith.mulf %179, %180 : vector<24x128xf32>
    %182 = arith.maximumf %176, %181 : vector<24x128xf32>
    %183 = vector.extract_strided_slice %104 {offsets = [0, 12], sizes = [24, 1], strides = [1, 1]} : vector<24x24xf32> to vector<24x1xf32>
    %184 = vector.extract_strided_slice %109 {offsets = [12, 0], sizes = [1, 128], strides = [1, 1]} : vector<24x128xf32> to vector<1x128xf32>
    %185 = vector.broadcast %183 : vector<24x1xf32> to vector<24x128xf32>
    %186 = vector.broadcast %184 : vector<1x128xf32> to vector<24x128xf32>
    %187 = arith.mulf %185, %186 : vector<24x128xf32>
    %188 = arith.maximumf %182, %187 : vector<24x128xf32>
    %189 = vector.extract_strided_slice %104 {offsets = [0, 13], sizes = [24, 1], strides = [1, 1]} : vector<24x24xf32> to vector<24x1xf32>
    %190 = vector.extract_strided_slice %109 {offsets = [13, 0], sizes = [1, 128], strides = [1, 1]} : vector<24x128xf32> to vector<1x128xf32>
    %191 = vector.broadcast %189 : vector<24x1xf32> to vector<24x128xf32>
    %192 = vector.broadcast %190 : vector<1x128xf32> to vector<24x128xf32>
    %193 = arith.mulf %191, %192 : vector<24x128xf32>
    %194 = arith.maximumf %188, %193 : vector<24x128xf32>
    %195 = vector.extract_strided_slice %104 {offsets = [0, 14], sizes = [24, 1], strides = [1, 1]} : vector<24x24xf32> to vector<24x1xf32>
    %196 = vector.extract_strided_slice %109 {offsets = [14, 0], sizes = [1, 128], strides = [1, 1]} : vector<24x128xf32> to vector<1x128xf32>
    %197 = vector.broadcast %195 : vector<24x1xf32> to vector<24x128xf32>
    %198 = vector.broadcast %196 : vector<1x128xf32> to vector<24x128xf32>
    %199 = arith.mulf %197, %198 : vector<24x128xf32>
    %200 = arith.maximumf %194, %199 : vector<24x128xf32>
    %201 = vector.extract_strided_slice %104 {offsets = [0, 15], sizes = [24, 1], strides = [1, 1]} : vector<24x24xf32> to vector<24x1xf32>
    %202 = vector.extract_strided_slice %109 {offsets = [15, 0], sizes = [1, 128], strides = [1, 1]} : vector<24x128xf32> to vector<1x128xf32>
    %203 = vector.broadcast %201 : vector<24x1xf32> to vector<24x128xf32>
    %204 = vector.broadcast %202 : vector<1x128xf32> to vector<24x128xf32>
    %205 = arith.mulf %203, %204 : vector<24x128xf32>
    %206 = arith.maximumf %200, %205 : vector<24x128xf32>
    %207 = vector.extract_strided_slice %104 {offsets = [0, 16], sizes = [24, 1], strides = [1, 1]} : vector<24x24xf32> to vector<24x1xf32>
    %208 = vector.extract_strided_slice %109 {offsets = [16, 0], sizes = [1, 128], strides = [1, 1]} : vector<24x128xf32> to vector<1x128xf32>
    %209 = vector.broadcast %207 : vector<24x1xf32> to vector<24x128xf32>
    %210 = vector.broadcast %208 : vector<1x128xf32> to vector<24x128xf32>
    %211 = arith.mulf %209, %210 : vector<24x128xf32>
    %212 = arith.maximumf %206, %211 : vector<24x128xf32>
    %213 = vector.extract_strided_slice %104 {offsets = [0, 17], sizes = [24, 1], strides = [1, 1]} : vector<24x24xf32> to vector<24x1xf32>
    %214 = vector.extract_strided_slice %109 {offsets = [17, 0], sizes = [1, 128], strides = [1, 1]} : vector<24x128xf32> to vector<1x128xf32>
    %215 = vector.broadcast %213 : vector<24x1xf32> to vector<24x128xf32>
    %216 = vector.broadcast %214 : vector<1x128xf32> to vector<24x128xf32>
    %217 = arith.mulf %215, %216 : vector<24x128xf32>
    %218 = arith.maximumf %212, %217 : vector<24x128xf32>
    %219 = vector.extract_strided_slice %104 {offsets = [0, 18], sizes = [24, 1], strides = [1, 1]} : vector<24x24xf32> to vector<24x1xf32>
    %220 = vector.extract_strided_slice %109 {offsets = [18, 0], sizes = [1, 128], strides = [1, 1]} : vector<24x128xf32> to vector<1x128xf32>
    %221 = vector.broadcast %219 : vector<24x1xf32> to vector<24x128xf32>
    %222 = vector.broadcast %220 : vector<1x128xf32> to vector<24x128xf32>
    %223 = arith.mulf %221, %222 : vector<24x128xf32>
    %224 = arith.maximumf %218, %223 : vector<24x128xf32>
    %225 = vector.extract_strided_slice %104 {offsets = [0, 19], sizes = [24, 1], strides = [1, 1]} : vector<24x24xf32> to vector<24x1xf32>
    %226 = vector.extract_strided_slice %109 {offsets = [19, 0], sizes = [1, 128], strides = [1, 1]} : vector<24x128xf32> to vector<1x128xf32>
    %227 = vector.broadcast %225 : vector<24x1xf32> to vector<24x128xf32>
    %228 = vector.broadcast %226 : vector<1x128xf32> to vector<24x128xf32>
    %229 = arith.mulf %227, %228 : vector<24x128xf32>
    %230 = arith.maximumf %224, %229 : vector<24x128xf32>
    %231 = vector.extract_strided_slice %104 {offsets = [0, 20], sizes = [24, 1], strides = [1, 1]} : vector<24x24xf32> to vector<24x1xf32>
    %232 = vector.extract_strided_slice %109 {offsets = [20, 0], sizes = [1, 128], strides = [1, 1]} : vector<24x128xf32> to vector<1x128xf32>
    %233 = vector.broadcast %231 : vector<24x1xf32> to vector<24x128xf32>
    %234 = vector.broadcast %232 : vector<1x128xf32> to vector<24x128xf32>
    %235 = arith.mulf %233, %234 : vector<24x128xf32>
    %236 = arith.maximumf %230, %235 : vector<24x128xf32>
    %237 = vector.extract_strided_slice %104 {offsets = [0, 21], sizes = [24, 1], strides = [1, 1]} : vector<24x24xf32> to vector<24x1xf32>
    %238 = vector.extract_strided_slice %109 {offsets = [21, 0], sizes = [1, 128], strides = [1, 1]} : vector<24x128xf32> to vector<1x128xf32>
    %239 = vector.broadcast %237 : vector<24x1xf32> to vector<24x128xf32>
    %240 = vector.broadcast %238 : vector<1x128xf32> to vector<24x128xf32>
    %241 = arith.mulf %239, %240 : vector<24x128xf32>
    %242 = arith.maximumf %236, %241 : vector<24x128xf32>
    %243 = vector.extract_strided_slice %104 {offsets = [0, 22], sizes = [24, 1], strides = [1, 1]} : vector<24x24xf32> to vector<24x1xf32>
    %244 = vector.extract_strided_slice %109 {offsets = [22, 0], sizes = [1, 128], strides = [1, 1]} : vector<24x128xf32> to vector<1x128xf32>
    %245 = vector.broadcast %243 : vector<24x1xf32> to vector<24x128xf32>
    %246 = vector.broadcast %244 : vector<1x128xf32> to vector<24x128xf32>
    %247 = arith.mulf %245, %246 : vector<24x128xf32>
    %248 = arith.maximumf %242, %247 : vector<24x128xf32>
    %249 = vector.extract_strided_slice %104 {offsets = [0, 23], sizes = [24, 1], strides = [1, 1]} : vector<24x24xf32> to vector<24x1xf32>
    %250 = vector.extract_strided_slice %109 {offsets = [23, 0], sizes = [1, 128], strides = [1, 1]} : vector<24x128xf32> to vector<1x128xf32>
    %251 = vector.broadcast %249 : vector<24x1xf32> to vector<24x128xf32>
    %252 = vector.broadcast %250 : vector<1x128xf32> to vector<24x128xf32>
    %253 = arith.mulf %251, %252 : vector<24x128xf32>
    %254 = arith.maximumf %248, %253 : vector<24x128xf32>
    %255 = tpu.concatenate %254, %61 in 1 : vector<24x128xf32>, vector<24x128xf32> -> vector<24x256xf32>
    %cst_32 = arith.constant dense<0.000000e+00> : vector<24x128xf32>
    %256 = tpu.matmul %255, %103, %cst_32 {dimension_numbers = #tpu.dot_dimension_numbers<[1], [0], [0], [1], [0, 0, 1, 1], [], []>} : vector<24x256xf32>, vector<256x128xf32>, vector<24x128xf32> -> vector<24x128xf32>
    %cst_33 = arith.constant 0.000000e+00 : f32
    %257 = vector.broadcast %cst_33 : f32 to vector<24x128xf32>
    %258 = arith.maximumf %256, %257 : vector<24x128xf32>
    %259 = vector.broadcast %53 : vector<24x1xf32> to vector<24x128xf32>
    %260 = arith.mulf %258, %259 : vector<24x128xf32>
    %261 = arith.mulf %7, %7 : vector<128x1xf32>
    %262 = vector.shape_cast %261 : vector<128x1xf32> to vector<1x128x1xf32>
    %cst_34 = arith.constant dense<0.000000e+00> : vector<1xf32>
    %263 = vector.multi_reduction <add>, %262, %cst_34 [1, 2] : vector<1x128x1xf32> to vector<1xf32>
    %264 = vector.shape_cast %263 : vector<1xf32> to vector<1x1x1xf32>
    %265 = vector.extract %264[0, 0, 0] : f32 from vector<1x1x1xf32>
    %266 = math.rsqrt %265 : f32
    %cst_35 = arith.constant dense<0.000000e+00> : vector<24x1xf32>
    %267 = tpu.matmul %260, %7, %cst_35 {dimension_numbers = #tpu.dot_dimension_numbers<[1], [0], [0], [1], [0, 0, 1, 1], [], []>} : vector<24x128xf32>, vector<128x1xf32>, vector<24x1xf32> -> vector<24x1xf32>
    %268 = vector.broadcast %266 : f32 to vector<24x1xf32>
    %269 = arith.mulf %267, %268 : vector<24x1xf32>
    %270 = math.tanh %269 : vector<24x1xf32>
    %271 = vector.broadcast %270 : vector<24x1xf32> to vector<24x24xf32>
    %272 = arith.mulf %14, %271 : vector<24x24xf32>
    %cst_36 = arith.constant dense<0.000000e+00> : vector<24xf32>
    %273 = vector.multi_reduction <add>, %272, %cst_36 [0] : vector<24x24xf32> to vector<24xf32>
    %274 = vector.shape_cast %273 : vector<24xf32> to vector<1x24xf32>
    %275 = vector.broadcast %274 : vector<1x24xf32> to vector<24x24xf32>
    %276 = vector.broadcast %270 : vector<24x1xf32> to vector<24x24xf32>
    %277 = arith.cmpf ogt, %275, %276 : vector<24x24xf32>
    %278 = vector.broadcast %274 : vector<1x24xf32> to vector<24x24xf32>
    %279 = vector.broadcast %270 : vector<24x1xf32> to vector<24x24xf32>
    %280 = arith.cmpf oeq, %278, %279 : vector<24x24xf32>
    %281 = arith.cmpi slt, %11, %10 : vector<24x24xi32>
    %282 = arith.andi %280, %281 : vector<24x24xi1>
    %283 = arith.ori %277, %282 : vector<24x24xi1>
    %284 = arith.extui %283 : vector<24x24xi1> to vector<24x24xi32>
    %285 = arith.sitofp %284 : vector<24x24xi32> to vector<24x24xf32>
    %286 = arith.mulf %285, %2 : vector<24x24xf32>
    %287 = vector.broadcast %57 : vector<1x24xf32> to vector<24x24xf32>
    %288 = arith.mulf %286, %287 : vector<24x24xf32>
    %cst_37 = arith.constant dense<0.000000e+00> : vector<24xf32>
    %289 = vector.multi_reduction <add>, %288, %cst_37 [1] : vector<24x24xf32> to vector<24xf32>
    %290 = vector.shape_cast %289 : vector<24xf32> to vector<24x1xf32>
    %cst_38 = arith.constant 7.000000e+00 : f32
    %291 = vector.broadcast %cst_38 : f32 to vector<24x1xf32>
    %292 = arith.cmpf olt, %290, %291 : vector<24x1xf32>
    %293 = arith.extui %292 : vector<24x1xi1> to vector<24x1xi32>
    %294 = arith.sitofp %293 : vector<24x1xi32> to vector<24x1xf32>
    %295 = arith.mulf %53, %294 : vector<24x1xf32>
    %296 = vector.broadcast %295 : vector<24x1xf32> to vector<24x24xf32>
    %297 = arith.mulf %14, %296 : vector<24x24xf32>
    %cst_39 = arith.constant dense<0.000000e+00> : vector<24xf32>
    %298 = vector.multi_reduction <add>, %297, %cst_39 [0] : vector<24x24xf32> to vector<24xf32>
    %299 = vector.shape_cast %298 : vector<24xf32> to vector<1x24xf32>
    %300 = vector.broadcast %270 : vector<24x1xf32> to vector<24x128xf32>
    %301 = arith.mulf %260, %300 : vector<24x128xf32>
    %302 = vector.broadcast %295 : vector<24x1xf32> to vector<24x128xf32>
    %303 = arith.mulf %301, %302 : vector<24x128xf32>
    %304 = vector.broadcast %295 : vector<24x1xf32> to vector<24x24xf32>
    %305 = arith.mulf %65, %304 : vector<24x24xf32>
    %306 = vector.broadcast %299 : vector<1x24xf32> to vector<24x24xf32>
    %307 = arith.mulf %305, %306 : vector<24x24xf32>
    %308 = vector.broadcast %295 : vector<24x1xf32> to vector<24x2xf32>
    %309 = arith.mulf %3, %308 : vector<24x2xf32>
    %310 = vector.extract_strided_slice %309 {offsets = [0, 0], sizes = [24, 1], strides = [1, 1]} : vector<24x2xf32> to vector<24x1xf32>
    %cst_40 = arith.constant 1.000000e+00 : f32
    %311 = vector.broadcast %cst_40 : f32 to vector<24x1xf32>
    %312 = arith.subf %310, %311 : vector<24x1xf32>
    %cst_41 = arith.constant 1.000000e+30 : f32
    %313 = vector.broadcast %cst_41 : f32 to vector<24x1xf32>
    %314 = arith.mulf %312, %313 : vector<24x1xf32>
    %315 = vector.broadcast %314 : vector<24x1xf32> to vector<24x128xf32>
    %316 = arith.addf %303, %315 : vector<24x128xf32>
    %cst_42 = arith.constant dense<0xFF800000> : vector<128xf32>
    %317 = vector.multi_reduction <maximumf>, %316, %cst_42 [0] : vector<24x128xf32> to vector<128xf32>
    %318 = vector.shape_cast %317 : vector<128xf32> to vector<1x128xf32>
    %319 = vector.broadcast %310 : vector<24x1xf32> to vector<24x128xf32>
    %320 = arith.mulf %303, %319 : vector<24x128xf32>
    %cst_43 = arith.constant dense<0.000000e+00> : vector<128xf32>
    %321 = vector.multi_reduction <add>, %320, %cst_43 [0] : vector<24x128xf32> to vector<128xf32>
    %322 = vector.shape_cast %321 : vector<128xf32> to vector<1x128xf32>
    %cst_44 = arith.constant 0.142857149 : f32
    %323 = vector.broadcast %cst_44 : f32 to vector<1x128xf32>
    %324 = arith.mulf %322, %323 : vector<1x128xf32>
    %325 = vector.extract_strided_slice %309 {offsets = [0, 1], sizes = [24, 1], strides = [1, 1]} : vector<24x2xf32> to vector<24x1xf32>
    %cst_45 = arith.constant 1.000000e+00 : f32
    %326 = vector.broadcast %cst_45 : f32 to vector<24x1xf32>
    %327 = arith.subf %325, %326 : vector<24x1xf32>
    %cst_46 = arith.constant 1.000000e+30 : f32
    %328 = vector.broadcast %cst_46 : f32 to vector<24x1xf32>
    %329 = arith.mulf %327, %328 : vector<24x1xf32>
    %330 = vector.broadcast %329 : vector<24x1xf32> to vector<24x128xf32>
    %331 = arith.addf %303, %330 : vector<24x128xf32>
    %cst_47 = arith.constant dense<0xFF800000> : vector<128xf32>
    %332 = vector.multi_reduction <maximumf>, %331, %cst_47 [0] : vector<24x128xf32> to vector<128xf32>
    %333 = vector.shape_cast %332 : vector<128xf32> to vector<1x128xf32>
    %334 = vector.broadcast %325 : vector<24x1xf32> to vector<24x128xf32>
    %335 = arith.mulf %303, %334 : vector<24x128xf32>
    %cst_48 = arith.constant dense<0.000000e+00> : vector<128xf32>
    %336 = vector.multi_reduction <add>, %335, %cst_48 [0] : vector<24x128xf32> to vector<128xf32>
    %337 = vector.shape_cast %336 : vector<128xf32> to vector<1x128xf32>
    %cst_49 = arith.constant 0.142857149 : f32
    %338 = vector.broadcast %cst_49 : f32 to vector<1x128xf32>
    %339 = arith.mulf %337, %338 : vector<1x128xf32>
    %340 = tpu.concatenate %318, %333 in 0 : vector<1x128xf32>, vector<1x128xf32> -> vector<2x128xf32>
    %341 = tpu.concatenate %324, %339 in 0 : vector<1x128xf32>, vector<1x128xf32> -> vector<2x128xf32>
    %342 = tpu.concatenate %340, %341 in 1 : vector<2x128xf32>, vector<2x128xf32> -> vector<2x256xf32>
    %343 = arith.addf %100, %342 : vector<2x256xf32>
    %c0_50 = arith.constant 0 : index
    %c128_51 = arith.constant 128 : index
    %344 = vector.load %arg1[%c0_50, %c128_51] : memref<128x388xf32, #tpu.memory_space<vmem>>, vector<128x128xf32>
    %c1 = arith.constant 1 : index
    %c0_52 = arith.constant 0 : index
    %345 = vector.load %arg3[%c1, %c0_52] : memref<8x128xf32, #tpu.memory_space<vmem>>, vector<1x128xf32>
    %c0_53 = arith.constant 0 : index
    %c128_54 = arith.constant 128 : index
    %346 = vector.load %arg2[%c0_53, %c128_54] : memref<256x384xf32, #tpu.memory_space<vmem>>, vector<256x128xf32>
    %347 = arith.maximumf %307, %14 : vector<24x24xf32>
    %cst_55 = arith.constant dense<0.000000e+00> : vector<24x128xf32>
    %348 = tpu.matmul %303, %344, %cst_55 {dimension_numbers = #tpu.dot_dimension_numbers<[1], [0], [0], [1], [0, 0, 1, 1], [], []>} : vector<24x128xf32>, vector<128x128xf32>, vector<24x128xf32> -> vector<24x128xf32>
    %349 = vector.broadcast %345 : vector<1x128xf32> to vector<24x128xf32>
    %350 = arith.addf %348, %349 : vector<24x128xf32>
    %cst_56 = arith.constant 0.000000e+00 : f32
    %351 = vector.broadcast %cst_56 : f32 to vector<24x128xf32>
    %352 = arith.maximumf %350, %351 : vector<24x128xf32>
    %cst_57 = arith.constant 0.000000e+00 : f32
    %353 = vector.broadcast %cst_57 : f32 to vector<24x128xf32>
    %354 = vector.extract_strided_slice %347 {offsets = [0, 0], sizes = [24, 1], strides = [1, 1]} : vector<24x24xf32> to vector<24x1xf32>
    %355 = vector.extract_strided_slice %352 {offsets = [0, 0], sizes = [1, 128], strides = [1, 1]} : vector<24x128xf32> to vector<1x128xf32>
    %356 = vector.broadcast %354 : vector<24x1xf32> to vector<24x128xf32>
    %357 = vector.broadcast %355 : vector<1x128xf32> to vector<24x128xf32>
    %358 = arith.mulf %356, %357 : vector<24x128xf32>
    %359 = arith.maximumf %353, %358 : vector<24x128xf32>
    %360 = vector.extract_strided_slice %347 {offsets = [0, 1], sizes = [24, 1], strides = [1, 1]} : vector<24x24xf32> to vector<24x1xf32>
    %361 = vector.extract_strided_slice %352 {offsets = [1, 0], sizes = [1, 128], strides = [1, 1]} : vector<24x128xf32> to vector<1x128xf32>
    %362 = vector.broadcast %360 : vector<24x1xf32> to vector<24x128xf32>
    %363 = vector.broadcast %361 : vector<1x128xf32> to vector<24x128xf32>
    %364 = arith.mulf %362, %363 : vector<24x128xf32>
    %365 = arith.maximumf %359, %364 : vector<24x128xf32>
    %366 = vector.extract_strided_slice %347 {offsets = [0, 2], sizes = [24, 1], strides = [1, 1]} : vector<24x24xf32> to vector<24x1xf32>
    %367 = vector.extract_strided_slice %352 {offsets = [2, 0], sizes = [1, 128], strides = [1, 1]} : vector<24x128xf32> to vector<1x128xf32>
    %368 = vector.broadcast %366 : vector<24x1xf32> to vector<24x128xf32>
    %369 = vector.broadcast %367 : vector<1x128xf32> to vector<24x128xf32>
    %370 = arith.mulf %368, %369 : vector<24x128xf32>
    %371 = arith.maximumf %365, %370 : vector<24x128xf32>
    %372 = vector.extract_strided_slice %347 {offsets = [0, 3], sizes = [24, 1], strides = [1, 1]} : vector<24x24xf32> to vector<24x1xf32>
    %373 = vector.extract_strided_slice %352 {offsets = [3, 0], sizes = [1, 128], strides = [1, 1]} : vector<24x128xf32> to vector<1x128xf32>
    %374 = vector.broadcast %372 : vector<24x1xf32> to vector<24x128xf32>
    %375 = vector.broadcast %373 : vector<1x128xf32> to vector<24x128xf32>
    %376 = arith.mulf %374, %375 : vector<24x128xf32>
    %377 = arith.maximumf %371, %376 : vector<24x128xf32>
    %378 = vector.extract_strided_slice %347 {offsets = [0, 4], sizes = [24, 1], strides = [1, 1]} : vector<24x24xf32> to vector<24x1xf32>
    %379 = vector.extract_strided_slice %352 {offsets = [4, 0], sizes = [1, 128], strides = [1, 1]} : vector<24x128xf32> to vector<1x128xf32>
    %380 = vector.broadcast %378 : vector<24x1xf32> to vector<24x128xf32>
    %381 = vector.broadcast %379 : vector<1x128xf32> to vector<24x128xf32>
    %382 = arith.mulf %380, %381 : vector<24x128xf32>
    %383 = arith.maximumf %377, %382 : vector<24x128xf32>
    %384 = vector.extract_strided_slice %347 {offsets = [0, 5], sizes = [24, 1], strides = [1, 1]} : vector<24x24xf32> to vector<24x1xf32>
    %385 = vector.extract_strided_slice %352 {offsets = [5, 0], sizes = [1, 128], strides = [1, 1]} : vector<24x128xf32> to vector<1x128xf32>
    %386 = vector.broadcast %384 : vector<24x1xf32> to vector<24x128xf32>
    %387 = vector.broadcast %385 : vector<1x128xf32> to vector<24x128xf32>
    %388 = arith.mulf %386, %387 : vector<24x128xf32>
    %389 = arith.maximumf %383, %388 : vector<24x128xf32>
    %390 = vector.extract_strided_slice %347 {offsets = [0, 6], sizes = [24, 1], strides = [1, 1]} : vector<24x24xf32> to vector<24x1xf32>
    %391 = vector.extract_strided_slice %352 {offsets = [6, 0], sizes = [1, 128], strides = [1, 1]} : vector<24x128xf32> to vector<1x128xf32>
    %392 = vector.broadcast %390 : vector<24x1xf32> to vector<24x128xf32>
    %393 = vector.broadcast %391 : vector<1x128xf32> to vector<24x128xf32>
    %394 = arith.mulf %392, %393 : vector<24x128xf32>
    %395 = arith.maximumf %389, %394 : vector<24x128xf32>
    %396 = vector.extract_strided_slice %347 {offsets = [0, 7], sizes = [24, 1], strides = [1, 1]} : vector<24x24xf32> to vector<24x1xf32>
    %397 = vector.extract_strided_slice %352 {offsets = [7, 0], sizes = [1, 128], strides = [1, 1]} : vector<24x128xf32> to vector<1x128xf32>
    %398 = vector.broadcast %396 : vector<24x1xf32> to vector<24x128xf32>
    %399 = vector.broadcast %397 : vector<1x128xf32> to vector<24x128xf32>
    %400 = arith.mulf %398, %399 : vector<24x128xf32>
    %401 = arith.maximumf %395, %400 : vector<24x128xf32>
    %402 = vector.extract_strided_slice %347 {offsets = [0, 8], sizes = [24, 1], strides = [1, 1]} : vector<24x24xf32> to vector<24x1xf32>
    %403 = vector.extract_strided_slice %352 {offsets = [8, 0], sizes = [1, 128], strides = [1, 1]} : vector<24x128xf32> to vector<1x128xf32>
    %404 = vector.broadcast %402 : vector<24x1xf32> to vector<24x128xf32>
    %405 = vector.broadcast %403 : vector<1x128xf32> to vector<24x128xf32>
    %406 = arith.mulf %404, %405 : vector<24x128xf32>
    %407 = arith.maximumf %401, %406 : vector<24x128xf32>
    %408 = vector.extract_strided_slice %347 {offsets = [0, 9], sizes = [24, 1], strides = [1, 1]} : vector<24x24xf32> to vector<24x1xf32>
    %409 = vector.extract_strided_slice %352 {offsets = [9, 0], sizes = [1, 128], strides = [1, 1]} : vector<24x128xf32> to vector<1x128xf32>
    %410 = vector.broadcast %408 : vector<24x1xf32> to vector<24x128xf32>
    %411 = vector.broadcast %409 : vector<1x128xf32> to vector<24x128xf32>
    %412 = arith.mulf %410, %411 : vector<24x128xf32>
    %413 = arith.maximumf %407, %412 : vector<24x128xf32>
    %414 = vector.extract_strided_slice %347 {offsets = [0, 10], sizes = [24, 1], strides = [1, 1]} : vector<24x24xf32> to vector<24x1xf32>
    %415 = vector.extract_strided_slice %352 {offsets = [10, 0], sizes = [1, 128], strides = [1, 1]} : vector<24x128xf32> to vector<1x128xf32>
    %416 = vector.broadcast %414 : vector<24x1xf32> to vector<24x128xf32>
    %417 = vector.broadcast %415 : vector<1x128xf32> to vector<24x128xf32>
    %418 = arith.mulf %416, %417 : vector<24x128xf32>
    %419 = arith.maximumf %413, %418 : vector<24x128xf32>
    %420 = vector.extract_strided_slice %347 {offsets = [0, 11], sizes = [24, 1], strides = [1, 1]} : vector<24x24xf32> to vector<24x1xf32>
    %421 = vector.extract_strided_slice %352 {offsets = [11, 0], sizes = [1, 128], strides = [1, 1]} : vector<24x128xf32> to vector<1x128xf32>
    %422 = vector.broadcast %420 : vector<24x1xf32> to vector<24x128xf32>
    %423 = vector.broadcast %421 : vector<1x128xf32> to vector<24x128xf32>
    %424 = arith.mulf %422, %423 : vector<24x128xf32>
    %425 = arith.maximumf %419, %424 : vector<24x128xf32>
    %426 = vector.extract_strided_slice %347 {offsets = [0, 12], sizes = [24, 1], strides = [1, 1]} : vector<24x24xf32> to vector<24x1xf32>
    %427 = vector.extract_strided_slice %352 {offsets = [12, 0], sizes = [1, 128], strides = [1, 1]} : vector<24x128xf32> to vector<1x128xf32>
    %428 = vector.broadcast %426 : vector<24x1xf32> to vector<24x128xf32>
    %429 = vector.broadcast %427 : vector<1x128xf32> to vector<24x128xf32>
    %430 = arith.mulf %428, %429 : vector<24x128xf32>
    %431 = arith.maximumf %425, %430 : vector<24x128xf32>
    %432 = vector.extract_strided_slice %347 {offsets = [0, 13], sizes = [24, 1], strides = [1, 1]} : vector<24x24xf32> to vector<24x1xf32>
    %433 = vector.extract_strided_slice %352 {offsets = [13, 0], sizes = [1, 128], strides = [1, 1]} : vector<24x128xf32> to vector<1x128xf32>
    %434 = vector.broadcast %432 : vector<24x1xf32> to vector<24x128xf32>
    %435 = vector.broadcast %433 : vector<1x128xf32> to vector<24x128xf32>
    %436 = arith.mulf %434, %435 : vector<24x128xf32>
    %437 = arith.maximumf %431, %436 : vector<24x128xf32>
    %438 = vector.extract_strided_slice %347 {offsets = [0, 14], sizes = [24, 1], strides = [1, 1]} : vector<24x24xf32> to vector<24x1xf32>
    %439 = vector.extract_strided_slice %352 {offsets = [14, 0], sizes = [1, 128], strides = [1, 1]} : vector<24x128xf32> to vector<1x128xf32>
    %440 = vector.broadcast %438 : vector<24x1xf32> to vector<24x128xf32>
    %441 = vector.broadcast %439 : vector<1x128xf32> to vector<24x128xf32>
    %442 = arith.mulf %440, %441 : vector<24x128xf32>
    %443 = arith.maximumf %437, %442 : vector<24x128xf32>
    %444 = vector.extract_strided_slice %347 {offsets = [0, 15], sizes = [24, 1], strides = [1, 1]} : vector<24x24xf32> to vector<24x1xf32>
    %445 = vector.extract_strided_slice %352 {offsets = [15, 0], sizes = [1, 128], strides = [1, 1]} : vector<24x128xf32> to vector<1x128xf32>
    %446 = vector.broadcast %444 : vector<24x1xf32> to vector<24x128xf32>
    %447 = vector.broadcast %445 : vector<1x128xf32> to vector<24x128xf32>
    %448 = arith.mulf %446, %447 : vector<24x128xf32>
    %449 = arith.maximumf %443, %448 : vector<24x128xf32>
    %450 = vector.extract_strided_slice %347 {offsets = [0, 16], sizes = [24, 1], strides = [1, 1]} : vector<24x24xf32> to vector<24x1xf32>
    %451 = vector.extract_strided_slice %352 {offsets = [16, 0], sizes = [1, 128], strides = [1, 1]} : vector<24x128xf32> to vector<1x128xf32>
    %452 = vector.broadcast %450 : vector<24x1xf32> to vector<24x128xf32>
    %453 = vector.broadcast %451 : vector<1x128xf32> to vector<24x128xf32>
    %454 = arith.mulf %452, %453 : vector<24x128xf32>
    %455 = arith.maximumf %449, %454 : vector<24x128xf32>
    %456 = vector.extract_strided_slice %347 {offsets = [0, 17], sizes = [24, 1], strides = [1, 1]} : vector<24x24xf32> to vector<24x1xf32>
    %457 = vector.extract_strided_slice %352 {offsets = [17, 0], sizes = [1, 128], strides = [1, 1]} : vector<24x128xf32> to vector<1x128xf32>
    %458 = vector.broadcast %456 : vector<24x1xf32> to vector<24x128xf32>
    %459 = vector.broadcast %457 : vector<1x128xf32> to vector<24x128xf32>
    %460 = arith.mulf %458, %459 : vector<24x128xf32>
    %461 = arith.maximumf %455, %460 : vector<24x128xf32>
    %462 = vector.extract_strided_slice %347 {offsets = [0, 18], sizes = [24, 1], strides = [1, 1]} : vector<24x24xf32> to vector<24x1xf32>
    %463 = vector.extract_strided_slice %352 {offsets = [18, 0], sizes = [1, 128], strides = [1, 1]} : vector<24x128xf32> to vector<1x128xf32>
    %464 = vector.broadcast %462 : vector<24x1xf32> to vector<24x128xf32>
    %465 = vector.broadcast %463 : vector<1x128xf32> to vector<24x128xf32>
    %466 = arith.mulf %464, %465 : vector<24x128xf32>
    %467 = arith.maximumf %461, %466 : vector<24x128xf32>
    %468 = vector.extract_strided_slice %347 {offsets = [0, 19], sizes = [24, 1], strides = [1, 1]} : vector<24x24xf32> to vector<24x1xf32>
    %469 = vector.extract_strided_slice %352 {offsets = [19, 0], sizes = [1, 128], strides = [1, 1]} : vector<24x128xf32> to vector<1x128xf32>
    %470 = vector.broadcast %468 : vector<24x1xf32> to vector<24x128xf32>
    %471 = vector.broadcast %469 : vector<1x128xf32> to vector<24x128xf32>
    %472 = arith.mulf %470, %471 : vector<24x128xf32>
    %473 = arith.maximumf %467, %472 : vector<24x128xf32>
    %474 = vector.extract_strided_slice %347 {offsets = [0, 20], sizes = [24, 1], strides = [1, 1]} : vector<24x24xf32> to vector<24x1xf32>
    %475 = vector.extract_strided_slice %352 {offsets = [20, 0], sizes = [1, 128], strides = [1, 1]} : vector<24x128xf32> to vector<1x128xf32>
    %476 = vector.broadcast %474 : vector<24x1xf32> to vector<24x128xf32>
    %477 = vector.broadcast %475 : vector<1x128xf32> to vector<24x128xf32>
    %478 = arith.mulf %476, %477 : vector<24x128xf32>
    %479 = arith.maximumf %473, %478 : vector<24x128xf32>
    %480 = vector.extract_strided_slice %347 {offsets = [0, 21], sizes = [24, 1], strides = [1, 1]} : vector<24x24xf32> to vector<24x1xf32>
    %481 = vector.extract_strided_slice %352 {offsets = [21, 0], sizes = [1, 128], strides = [1, 1]} : vector<24x128xf32> to vector<1x128xf32>
    %482 = vector.broadcast %480 : vector<24x1xf32> to vector<24x128xf32>
    %483 = vector.broadcast %481 : vector<1x128xf32> to vector<24x128xf32>
    %484 = arith.mulf %482, %483 : vector<24x128xf32>
    %485 = arith.maximumf %479, %484 : vector<24x128xf32>
    %486 = vector.extract_strided_slice %347 {offsets = [0, 22], sizes = [24, 1], strides = [1, 1]} : vector<24x24xf32> to vector<24x1xf32>
    %487 = vector.extract_strided_slice %352 {offsets = [22, 0], sizes = [1, 128], strides = [1, 1]} : vector<24x128xf32> to vector<1x128xf32>
    %488 = vector.broadcast %486 : vector<24x1xf32> to vector<24x128xf32>
    %489 = vector.broadcast %487 : vector<1x128xf32> to vector<24x128xf32>
    %490 = arith.mulf %488, %489 : vector<24x128xf32>
    %491 = arith.maximumf %485, %490 : vector<24x128xf32>
    %492 = vector.extract_strided_slice %347 {offsets = [0, 23], sizes = [24, 1], strides = [1, 1]} : vector<24x24xf32> to vector<24x1xf32>
    %493 = vector.extract_strided_slice %352 {offsets = [23, 0], sizes = [1, 128], strides = [1, 1]} : vector<24x128xf32> to vector<1x128xf32>
    %494 = vector.broadcast %492 : vector<24x1xf32> to vector<24x128xf32>
    %495 = vector.broadcast %493 : vector<1x128xf32> to vector<24x128xf32>
    %496 = arith.mulf %494, %495 : vector<24x128xf32>
    %497 = arith.maximumf %491, %496 : vector<24x128xf32>
    %498 = tpu.concatenate %497, %303 in 1 : vector<24x128xf32>, vector<24x128xf32> -> vector<24x256xf32>
    %cst_58 = arith.constant dense<0.000000e+00> : vector<24x128xf32>
    %499 = tpu.matmul %498, %346, %cst_58 {dimension_numbers = #tpu.dot_dimension_numbers<[1], [0], [0], [1], [0, 0, 1, 1], [], []>} : vector<24x256xf32>, vector<256x128xf32>, vector<24x128xf32> -> vector<24x128xf32>
    %cst_59 = arith.constant 0.000000e+00 : f32
    %500 = vector.broadcast %cst_59 : f32 to vector<24x128xf32>
    %501 = arith.maximumf %499, %500 : vector<24x128xf32>
    %502 = vector.broadcast %295 : vector<24x1xf32> to vector<24x128xf32>
    %503 = arith.mulf %501, %502 : vector<24x128xf32>
    %504 = arith.mulf %8, %8 : vector<128x1xf32>
    %505 = vector.shape_cast %504 : vector<128x1xf32> to vector<1x128x1xf32>
    %cst_60 = arith.constant dense<0.000000e+00> : vector<1xf32>
    %506 = vector.multi_reduction <add>, %505, %cst_60 [1, 2] : vector<1x128x1xf32> to vector<1xf32>
    %507 = vector.shape_cast %506 : vector<1xf32> to vector<1x1x1xf32>
    %508 = vector.extract %507[0, 0, 0] : f32 from vector<1x1x1xf32>
    %509 = math.rsqrt %508 : f32
    %cst_61 = arith.constant dense<0.000000e+00> : vector<24x1xf32>
    %510 = tpu.matmul %503, %8, %cst_61 {dimension_numbers = #tpu.dot_dimension_numbers<[1], [0], [0], [1], [0, 0, 1, 1], [], []>} : vector<24x128xf32>, vector<128x1xf32>, vector<24x1xf32> -> vector<24x1xf32>
    %511 = vector.broadcast %509 : f32 to vector<24x1xf32>
    %512 = arith.mulf %510, %511 : vector<24x1xf32>
    %513 = math.tanh %512 : vector<24x1xf32>
    %514 = vector.broadcast %513 : vector<24x1xf32> to vector<24x24xf32>
    %515 = arith.mulf %14, %514 : vector<24x24xf32>
    %cst_62 = arith.constant dense<0.000000e+00> : vector<24xf32>
    %516 = vector.multi_reduction <add>, %515, %cst_62 [0] : vector<24x24xf32> to vector<24xf32>
    %517 = vector.shape_cast %516 : vector<24xf32> to vector<1x24xf32>
    %518 = vector.broadcast %517 : vector<1x24xf32> to vector<24x24xf32>
    %519 = vector.broadcast %513 : vector<24x1xf32> to vector<24x24xf32>
    %520 = arith.cmpf ogt, %518, %519 : vector<24x24xf32>
    %521 = vector.broadcast %517 : vector<1x24xf32> to vector<24x24xf32>
    %522 = vector.broadcast %513 : vector<24x1xf32> to vector<24x24xf32>
    %523 = arith.cmpf oeq, %521, %522 : vector<24x24xf32>
    %524 = arith.cmpi slt, %11, %10 : vector<24x24xi32>
    %525 = arith.andi %523, %524 : vector<24x24xi1>
    %526 = arith.ori %520, %525 : vector<24x24xi1>
    %527 = arith.extui %526 : vector<24x24xi1> to vector<24x24xi32>
    %528 = arith.sitofp %527 : vector<24x24xi32> to vector<24x24xf32>
    %529 = arith.mulf %528, %2 : vector<24x24xf32>
    %530 = vector.broadcast %299 : vector<1x24xf32> to vector<24x24xf32>
    %531 = arith.mulf %529, %530 : vector<24x24xf32>
    %cst_63 = arith.constant dense<0.000000e+00> : vector<24xf32>
    %532 = vector.multi_reduction <add>, %531, %cst_63 [1] : vector<24x24xf32> to vector<24xf32>
    %533 = vector.shape_cast %532 : vector<24xf32> to vector<24x1xf32>
    %cst_64 = arith.constant 6.000000e+00 : f32
    %534 = vector.broadcast %cst_64 : f32 to vector<24x1xf32>
    %535 = arith.cmpf olt, %533, %534 : vector<24x1xf32>
    %536 = arith.extui %535 : vector<24x1xi1> to vector<24x1xi32>
    %537 = arith.sitofp %536 : vector<24x1xi32> to vector<24x1xf32>
    %538 = arith.mulf %295, %537 : vector<24x1xf32>
    %539 = vector.broadcast %513 : vector<24x1xf32> to vector<24x128xf32>
    %540 = arith.mulf %503, %539 : vector<24x128xf32>
    %541 = vector.broadcast %538 : vector<24x1xf32> to vector<24x128xf32>
    %542 = arith.mulf %540, %541 : vector<24x128xf32>
    %543 = vector.broadcast %538 : vector<24x1xf32> to vector<24x2xf32>
    %544 = arith.mulf %3, %543 : vector<24x2xf32>
    %545 = vector.extract_strided_slice %544 {offsets = [0, 0], sizes = [24, 1], strides = [1, 1]} : vector<24x2xf32> to vector<24x1xf32>
    %cst_65 = arith.constant 1.000000e+00 : f32
    %546 = vector.broadcast %cst_65 : f32 to vector<24x1xf32>
    %547 = arith.subf %545, %546 : vector<24x1xf32>
    %cst_66 = arith.constant 1.000000e+30 : f32
    %548 = vector.broadcast %cst_66 : f32 to vector<24x1xf32>
    %549 = arith.mulf %547, %548 : vector<24x1xf32>
    %550 = vector.broadcast %549 : vector<24x1xf32> to vector<24x128xf32>
    %551 = arith.addf %542, %550 : vector<24x128xf32>
    %cst_67 = arith.constant dense<0xFF800000> : vector<128xf32>
    %552 = vector.multi_reduction <maximumf>, %551, %cst_67 [0] : vector<24x128xf32> to vector<128xf32>
    %553 = vector.shape_cast %552 : vector<128xf32> to vector<1x128xf32>
    %554 = vector.broadcast %545 : vector<24x1xf32> to vector<24x128xf32>
    %555 = arith.mulf %542, %554 : vector<24x128xf32>
    %cst_68 = arith.constant dense<0.000000e+00> : vector<128xf32>
    %556 = vector.multi_reduction <add>, %555, %cst_68 [0] : vector<24x128xf32> to vector<128xf32>
    %557 = vector.shape_cast %556 : vector<128xf32> to vector<1x128xf32>
    %cst_69 = arith.constant 0.166666672 : f32
    %558 = vector.broadcast %cst_69 : f32 to vector<1x128xf32>
    %559 = arith.mulf %557, %558 : vector<1x128xf32>
    %560 = vector.extract_strided_slice %544 {offsets = [0, 1], sizes = [24, 1], strides = [1, 1]} : vector<24x2xf32> to vector<24x1xf32>
    %cst_70 = arith.constant 1.000000e+00 : f32
    %561 = vector.broadcast %cst_70 : f32 to vector<24x1xf32>
    %562 = arith.subf %560, %561 : vector<24x1xf32>
    %cst_71 = arith.constant 1.000000e+30 : f32
    %563 = vector.broadcast %cst_71 : f32 to vector<24x1xf32>
    %564 = arith.mulf %562, %563 : vector<24x1xf32>
    %565 = vector.broadcast %564 : vector<24x1xf32> to vector<24x128xf32>
    %566 = arith.addf %542, %565 : vector<24x128xf32>
    %cst_72 = arith.constant dense<0xFF800000> : vector<128xf32>
    %567 = vector.multi_reduction <maximumf>, %566, %cst_72 [0] : vector<24x128xf32> to vector<128xf32>
    %568 = vector.shape_cast %567 : vector<128xf32> to vector<1x128xf32>
    %569 = vector.broadcast %560 : vector<24x1xf32> to vector<24x128xf32>
    %570 = arith.mulf %542, %569 : vector<24x128xf32>
    %cst_73 = arith.constant dense<0.000000e+00> : vector<128xf32>
    %571 = vector.multi_reduction <add>, %570, %cst_73 [0] : vector<24x128xf32> to vector<128xf32>
    %572 = vector.shape_cast %571 : vector<128xf32> to vector<1x128xf32>
    %cst_74 = arith.constant 0.166666672 : f32
    %573 = vector.broadcast %cst_74 : f32 to vector<1x128xf32>
    %574 = arith.mulf %572, %573 : vector<1x128xf32>
    %575 = tpu.concatenate %553, %568 in 0 : vector<1x128xf32>, vector<1x128xf32> -> vector<2x128xf32>
    %576 = tpu.concatenate %559, %574 in 0 : vector<1x128xf32>, vector<1x128xf32> -> vector<2x128xf32>
    %577 = tpu.concatenate %575, %576 in 1 : vector<2x128xf32>, vector<2x128xf32> -> vector<2x256xf32>
    %578 = arith.addf %343, %577 : vector<2x256xf32>
    %c0_75 = arith.constant 0 : index
    %c256_76 = arith.constant 256 : index
    %579 = vector.load %arg2[%c0_75, %c256_76] : memref<256x384xf32, #tpu.memory_space<vmem>>, vector<256x128xf32>
    %cst_77 = arith.constant dense<0.000000e+00> : vector<2x128xf32>
    %580 = tpu.matmul %578, %579, %cst_77 {dimension_numbers = #tpu.dot_dimension_numbers<[1], [0], [0], [1], [0, 0, 1, 1], [], []>} : vector<2x256xf32>, vector<256x128xf32>, vector<2x128xf32> -> vector<2x128xf32>
    %c2 = arith.constant 2 : index
    %c0_78 = arith.constant 0 : index
    %581 = vector.load %arg3[%c2, %c0_78] : memref<8x128xf32, #tpu.memory_space<vmem>>, vector<1x128xf32>
    %582 = vector.broadcast %581 : vector<1x128xf32> to vector<2x128xf32>
    %583 = arith.addf %580, %582 : vector<2x128xf32>
    %cst_79 = arith.constant 0.000000e+00 : f32
    %584 = vector.broadcast %cst_79 : f32 to vector<2x128xf32>
    %585 = arith.maximumf %583, %584 : vector<2x128xf32>
    %c0_80 = arith.constant 0 : index
    %c256_81 = arith.constant 256 : index
    %586 = vector.load %arg1[%c0_80, %c256_81] : memref<128x388xf32, #tpu.memory_space<vmem>>, vector<128x128xf32>
    %cst_82 = arith.constant dense<0.000000e+00> : vector<2x128xf32>
    %587 = tpu.matmul %585, %586, %cst_82 {dimension_numbers = #tpu.dot_dimension_numbers<[1], [0], [0], [1], [0, 0, 1, 1], [], []>} : vector<2x128xf32>, vector<128x128xf32>, vector<2x128xf32> -> vector<2x128xf32>
    %c3 = arith.constant 3 : index
    %c0_83 = arith.constant 0 : index
    %588 = vector.load %arg3[%c3, %c0_83] : memref<8x128xf32, #tpu.memory_space<vmem>>, vector<1x128xf32>
    %589 = vector.broadcast %588 : vector<1x128xf32> to vector<2x128xf32>
    %590 = arith.addf %587, %589 : vector<2x128xf32>
    %cst_84 = arith.constant 0.000000e+00 : f32
    %591 = vector.broadcast %cst_84 : f32 to vector<2x128xf32>
    %592 = arith.maximumf %590, %591 : vector<2x128xf32>
    %cst_85 = arith.constant dense<0.000000e+00> : vector<2x1xf32>
    %593 = tpu.matmul %592, %9, %cst_85 {dimension_numbers = #tpu.dot_dimension_numbers<[1], [0], [0], [1], [0, 0, 1, 1], [], []>} : vector<2x128xf32>, vector<128x1xf32>, vector<2x1xf32> -> vector<2x1xf32>
    %c4 = arith.constant 4 : index
    %c0_86 = arith.constant 0 : index
    %594 = vector.load %arg3[%c4, %c0_86] : memref<8x128xf32, #tpu.memory_space<vmem>>, vector<1x1xf32>
    %595 = vector.broadcast %594 : vector<1x1xf32> to vector<2x1xf32>
    %596 = arith.addf %593, %595 : vector<2x1xf32>
    %cst_87 = arith.constant 0.000000e+00 : f32
    %597 = vector.broadcast %cst_87 : f32 to vector<2x1xf32>
    %598 = arith.subf %597, %596 : vector<2x1xf32>
    %599 = math.exp %598 : vector<2x1xf32>
    %cst_88 = arith.constant 1.000000e+00 : f32
    %600 = vector.broadcast %cst_88 : f32 to vector<2x1xf32>
    %601 = arith.addf %600, %599 : vector<2x1xf32>
    %602 = tpu.reciprocal %601 {approx = true} : vector<2x1xf32> -> vector<2x1xf32>
    %c0_89 = arith.constant 0 : index
    %c0_90 = arith.constant 0 : index
    %603 = vector.load %arg4[%c0_89, %c0_90] : memref<2x1xf32, #tpu.memory_space<vmem>>, vector<2x1xf32>
    tpu.vector_store %arg4[%c0_89, %c0_90], %602 {strides = array<i32>} : memref<2x1xf32, #tpu.memory_space<vmem>>, vector<2x1xf32>,
    return
  }
}

</mosaic_0001>

<bundles_post_ra>
// kernel: net_forward.1
= control target key start
LH: loop header
LB: loop body
LE: loop exit
PB: predicated region body
PF: predicated region fallthrough
CT: control target
= control target key end

     0   :  { %vm106_vm0 = vcmask 7168   ;;  %v6767_v3 = vmov 0.0|0.0   ;;  %vm4470_vm1 = vmmov 0   ;;  %v6725_v4 = vmov 0.0   ;;  %s4496_s15 = smov 127   ;;  %s4497_s16 = smov 126   ;;  %s6718_s1 = inlined_call_operand.vmem [shape: f32[128,388], index: 1, kind: input, shape index: {}]   ;;  %s6719_s0 = inlined_call_operand.vmem [shape: f32[24,387], index: 0, kind: input, shape index: {}]   ;;  %s6720_s2 = inlined_call_operand.vmem [shape: f32[256,384], index: 2, kind: input, shape index: {}]   ;;  %s6721_s3 = inlined_call_operand.vmem [shape: f32[8,128], index: 3, kind: input, shape index: {}]   ;;  %s6722_s4 = inlined_call_operand.vmem [shape: f32[2,1], index: 4, kind: output, shape index: {}]  }
   0x1   :  { %v29_v0 = vld [vmem:[%s6718_s1 + $0x18] sm:$0xff]  ;;  %3789 = vmatprep.subr.bf16.mxu0 %v6767_v3  ;;  %3546 = vmatprep.mubr.msk.f32.mxu0 %vm4470_vm1, %v6725_v4  ;;  %vm78_vm5 = vcmask 195584  }
   0x2   :  { %v30_v1 = vld [vmem:[%s6718_s1 + $0x38] sm:$0xff]  ;;  %v4542_v7 = vmul.f32 %v29_v0, %v29_v0  ;;  %3813 = vmatprep.subr.bf16.mxu1 %v6767_v3  ;;  %3587 = vmatprep.mubr.msk.f32.mxu1 %vm4470_vm1, %v6725_v4 }
   0x3   :  { %v31_v2 = vld [vmem:[%s6718_s1 + $0x58] sm:$0xff]  ;;  %v4544_v8 = vmul.f32 %v30_v1, %v30_v1  ;;  %v3790_v9 = vpack.c.bf16 %v30_v1, %v29_v0 }
   0x4   :  { %v32_v5 = vld [vmem:[%s6718_s1 + $0x78] sm:$0xff]  ;;  %6857 = vst [vmem:[#allocation2_spill] sm:$0xff] %v4542_v7  ;;  %v4547_v10 = vmul.f32 %v31_v2, %v31_v2  ;;  %v107_v13 = vsel %vm106_vm0, %v4542_v7, 0.0 }
   0x5   :  { %v33_v6 = vld [vmem:[%s6718_s1 + $0x98] sm:$0xff]  ;;  %6858 = vst [vmem:[#allocation3_spill] sm:$0xff] %v4544_v8  ;;  %v4549_v11 = vmul.f32 %v32_v5, %v32_v5  ;;  %3791 = vmatpush3.bf16.msra.mxu0 %v3790_v9  ;;  %v3793_v14 = vpack.c.bf16 %v32_v5, %v31_v2  ;;  %v108_v16 = vsel %vm106_vm0, %v4544_v8, 0.0 }
   0x6   :  { %6859 = vst [vmem:[#allocation4_spill] sm:$0xff] %v4547_v10  ;;  %v4556_v12 = vld [vmem:[%s6718_s1 + $0xb8] sm:$0xff]  ;;  %v4560_v15 = vmul.f32 %v33_v6, %v33_v6  ;;  %3792 = vmatprep.subr.bf16.mxu0 %v6767_v3  ;;  %v109_v18 = vadd.f32 %v108_v16, %v107_v13  ;;  %v110_v20 = vsel %vm106_vm0, %v4547_v10, 0.0  ;;  %v4677_v16 = vld [vmem:[%s6719_s0] sm:$0xff] }
   0x7   :  { %6860 = vst [vmem:[#allocation5_spill] sm:$0xff] %v4549_v11  ;;  %v35_v17 = vld [vmem:[%s6718_s1 + $0xd8] sm:$0xff]  ;;  %v4570_v19 = vmul.f32 %v4556_v12, %v4556_v12  ;;  %v112_v21 = vsel %vm106_vm0, %v4549_v11, 0.0  ;;  %v3796_v30 = vpack.c.bf16 %v4556_v12, %v33_v6 }
   0x8   :  { %6861 = vst [vmem:[#allocation6_spill] sm:$0xff] %v4560_v15  ;;  %v36_v22 = vld [vmem:[%s6718_s1 + $0xf8] sm:$0xff]  ;;  %v111_v23 = vadd.f32 %v110_v20, %v109_v18  ;;  %v4579_v24 = vmul.f32 %v35_v17, %v35_v17  ;;  %v114_v25 = vsel %vm106_vm0, %v4560_v15, 0.0  ;;  %v4685_v18 = vld [vmem:[%s6719_s0 + $0x20] sm:$0xff] }
   0x9   :  { %6862 = vst [vmem:[#allocation7_spill] sm:$0xff] %v4570_v19  ;;  %3794 = vmatpush3.bf16.msra.mxu0 %v3793_v14  ;;  %v4587_v26 = vld [vmem:[%s6718_s1 + $0x118] sm:$0xff]  ;;  %v4589_v28 = vmul.f32 %v36_v22, %v36_v22  ;;  %v116_v29 = vsel %vm106_vm0, %v4570_v19, 0.0  ;;  %v3799_v35 = vpack.c.bf16 %v36_v22, %v35_v17  ;;  %v4693_v20 = vld [vmem:[%s6719_s0 + $0x40] sm:$0xff] }
   0xa   :  { %6863 = vst [vmem:[#allocation8_spill] sm:$0xff] %v4579_v24  ;;  %3795 = vmatprep.subr.bf16.mxu0 %v6767_v3  ;;  %v113_v27 = vadd.f32 %v112_v21, %v111_v23  ;;  %v4597_v31 = vld [vmem:[%s6718_s1 + $0x138] sm:$0xff]  ;;  %v4601_v33 = vmul.f32 %v4587_v26, %v4587_v26  ;;  %v118_v34 = vsel %vm106_vm0, %v4579_v24, 0.0 }
   0xb   :  { %6864 = vst [vmem:[#allocation9_spill] sm:$0xff] %v4589_v28  ;;  %v39_v36 = vld [vmem:[%s6718_s1 + $0x158] sm:$0xff]  ;;  %v4611_v38 = vmul.f32 %v4597_v31, %v4597_v31  ;;  %v120_v39 = vsel %vm106_vm0, %v4589_v28, 0.0  ;;  %v3802_v44 = vpack.c.bf16 %v4597_v31, %v4587_v26 }
   0xc   :  { %v115_v32 = vadd.f32 %v114_v25, %v113_v27  ;;  %6865 = vst [vmem:[#allocation10_spill] sm:$0xff] %v4601_v33  ;;  %v40_v40 = vld [vmem:[%s6718_s1 + $0x178] sm:$0xff]  ;;  %v4618_v42 = vmul.f32 %v39_v36, %v39_v36  ;;  %v122_v43 = vsel %vm106_vm0, %v4601_v33, 0.0  ;;  %v6765_v27 = vmov 2  }
   0xd   :  { %3797 = vmatpush3.bf16.msra.mxu0 %v3796_v30  ;;  %6866 = vst [vmem:[#allocation11_spill] sm:$0xff] %v4611_v38  ;;  %v4627_v45 = vld [vmem:[%s6718_s1 + $0x198] sm:$0xff]  ;;  %v4630_v47 = vmul.f32 %v40_v40, %v40_v40  ;;  %v124_v48 = vsel %vm106_vm0, %v4611_v38, 0.0  ;;  %v3805_v53 = vpack.c.bf16 %v40_v40, %v39_v36  ;;  %4096 = vset.pattern.permute.xlu1 %v6765_v27 }
   0xe   :  { %v117_v37 = vadd.f32 %v116_v29, %v115_v32  ;;  %3798 = vmatprep.subr.bf16.mxu0 %v6767_v3  ;;  %6867 = vst [vmem:[#allocation12_spill] sm:$0xff] %v4618_v42  ;;  %v4637_v49 = vld [vmem:[%s6718_s1 + $0x1b8] sm:$0xff]  ;;  %v4641_v51 = vmul.f32 %v4627_v45, %v4627_v45  ;;  %v126_v52 = vsel %vm106_vm0, %v4618_v42, 0.0  ;;  %v6727_v29 = vmov 0  }
   0xf   :  { %6868 = vst [vmem:[#allocation13_spill] sm:$0xff] %v4630_v47  ;;  %v43_v54 = vld [vmem:[%s6718_s1 + $0x1d8] sm:$0xff]  ;;  %v4651_v56 = vmul.f32 %v4637_v49, %v4637_v49  ;;  %v128_v57 = vsel %vm106_vm0, %v4630_v47, 0.0  ;;  %v3808_v62 = vpack.c.bf16 %v4637_v49, %v4627_v45  ;;  %4095 = vset.pattern.permute.xlu0 %v6727_v29 }
  0x10   :  { %v119_v41 = vadd.f32 %v118_v34, %v117_v37  ;;  %6869 = vst [vmem:[#allocation14_spill] sm:$0xff] %v4641_v51  ;;  %v44_v58 = vld [vmem:[%s6718_s1 + $0x1f8] sm:$0xff]  ;;  %v4658_v60 = vmul.f32 %v43_v54, %v43_v54  ;;  %v130_v61 = vsel %vm106_vm0, %v4641_v51, 0.0 }
  0x11   :  { %3800 = vmatpush3.bf16.msra.mxu0 %v3799_v35  ;;  %6870 = vst [vmem:[#allocation15_spill] sm:$0xff] %v4651_v56  ;;  %v4665_v0 = vmul.f32 %v44_v58, %v44_v58  ;;  %v132_v1 = vsel %vm106_vm0, %v4651_v56, 0.0  ;;  %v3811_v6 = vpack.c.bf16 %v44_v58, %v43_v54  ;;  %v4699_v23 = vld [vmem:[%s6719_s0 + $0x18] sm:$0xff] }
  0x12   :  { %v121_v46 = vadd.f32 %v120_v39, %v119_v41  ;;  %3801 = vmatprep.subr.bf16.mxu0 %v6767_v3  ;;  %6871 = vst [vmem:[#allocation16_spill] sm:$0xff] %v4658_v60  ;;  %v134_v5 = vsel %vm106_vm0, %v4658_v60, 0.0  ;;  %62 = vperm.xlu1 %4096, %v4699_v23   ;;  %v4709_v58 = vld [vmem:[%s6719_s0 + $0x38] sm:$0xff] }
  0x13   :  { %6872 = vst [vmem:[#allocation17_spill] sm:$0xff] %v4665_v0  ;;  %v136_v13 = vsel %vm106_vm0, %v4665_v0, 0.0 }
  0x14   :  { %v123_v50 = vadd.f32 %v122_v43, %v121_v46 }
  0x15   :  { %3803 = vmatpush3.bf16.msra.mxu0 %v3802_v44 }
  0x16   :  { %v125_v55 = vadd.f32 %v124_v48, %v123_v50  ;;  %3804 = vmatprep.subr.bf16.mxu0 %v6767_v3  ;;  %4097 = vset.pattern.permute.xlu1 %v6727_v29 }
  0x18   :  { %v127_v59 = vadd.f32 %v126_v52, %v125_v55 }
  0x19   :  { %3806 = vmatpush3.bf16.msra.mxu0 %v3805_v53 }
  0x1a   :  { %v129_v63 = vadd.f32 %v128_v57, %v127_v59  ;;  %3807 = vmatprep.subr.bf16.mxu0 %v6767_v3  ;;  %v4716_v59 = vld [vmem:[%s6719_s0 + $0x58] sm:$0xff] }
  0x1c   :  { %v131_v2 = vadd.f32 %v130_v61, %v129_v63  ;;  %v45_v61 = vlaneseq }
  0x1d   :  { %3809 = vmatpush3.bf16.msra.mxu0 %v3808_v62 }
  0x1e   :  { %v133_v9 = vadd.f32 %v132_v1, %v131_v2  ;;  %3810 = vmatprep.subr.bf16.mxu0 %v6767_v3  ;;  %v4719_v62 = vshrl.u32 %v45_v61, 7  ;;  %v4724_v1 = vand.u32 127, %v45_v61 }
  0x20   :  { %v135_v14 = vadd.f32 %v134_v5, %v133_v9  ;;  %6873 = vst [vmem:[#allocation18_spill] sm:$0xff] %v4719_v62  ;;  %v4722_v63 = vadd.s32 8, %v4719_v62  ;;  %6875 = vst [vmem:[#allocation20_spill] sm:$0xff] %v4724_v1  ;;  %v4729_v5 = vadd.s32 16, %v4719_v62  ;;  %vm51_vm3 = vcmp.eq.s32.totalorder %v4719_v62, %v4724_v1 }
  0x21   :  { %3812 = vmatpush3.bf16.msra.mxu0 %v3811_v6  ;;  %v4737_v9 = vsel %vm51_vm3, 1.0, %v6725_v4  ;;  %vm272_vm10 = vcmp.lt.s32.totalorder %v4724_v1, %v4719_v62  ;;  %v5284_v0 = vsub.s32 7, %v4719_v62 }
  0x22   :  { %v137_v17 = vadd.f32 %v136_v13, %v135_v14  ;;  %6874 = vst [vmem:[#allocation19_spill] sm:$0xff] %v4722_v63  ;;  %vm52_vm2 = vcmp.eq.s32.totalorder %v4722_v63, %v4724_v1  ;;  %6876 = vst [vmem:[#allocation21_spill] sm:$0xff] %v4729_v5  ;;  %vm53_vm4 = vcmp.eq.s32.totalorder %v4729_v5, %v4724_v1 }
  0x23   :  { %v4734_v6 = vsel %vm52_vm2, 1.0, %v6725_v4  ;;  %6878 = vst [vmem:[#allocation23_spill] sm:$0xff] %v4737_v9  ;;  %vm273_vm6 = vcmp.lt.s32.totalorder %v4724_v1, %v4722_v63  ;;  %vm274_vm15 = vcmp.lt.s32.totalorder %v4724_v1, %v4729_v5  ;;  %v5265_v5 = vsub.s32 5, %v4719_v62 }
  0x24   :  { %138 = vadd.xlane.f32.xlu0 %v137_v17  ;;  %3547 = vmatmul.mubr.f32.vlgmr.msra.gmra.mrb[0].mxu0 %v4677_v16  ;;  %6877 = vst [vmem:[#allocation22_spill] sm:$0xff] %v4734_v6 }
  0x25   :  { %3549 = vmatprep.mubr.msk.f32.mxu0 %vm4470_vm1, %v6725_v4 }
  0x28   :  { %3550 = vmatmul.mubr.f32.gmra.mrb[2].mxu0 %v4685_v18 }
  0x29   :  { %3552 = vmatprep.mubr.msk.f32.mxu0 %vm4470_vm1, %v6725_v4 }
  0x2c   :  { %3553 = vmatmul.mubr.f32.gmra.mrb[4].mxu0 %v4693_v20 }
  0x91   :  { %v63_v2 = vpop.permute.xlu1 %62 }
  0xb1   :  { %v139_v21 = vpop.xlane.xlu0 %138 }
  0xb2   :  { %v140_v22 = vrot.slane %v139_v21, 4 }
  0xb4   :  { %v141_v25 = vadd.f32 %v140_v22, %v139_v21  ;;  %v4750_v22 = vsel %vm53_vm4, 1.0, %v6725_v4 }
  0xb5   :  { %6879 = vst [vmem:[#allocation24_spill] sm:$0xff] %v4750_v22 }
  0xb6   :  { %v142_v30 = vrot.slane %v141_v25, 2 }
  0xb8   :  { %v143_v32 = vadd.f32 %v142_v30, %v141_v25 }
  0xba   :  { %v144_v34 = vrot.slane %v143_v32, 1 }
  0xbc   :  { %v145_v35 = vadd.f32 %v144_v34, %v143_v32 }
  0xbe   :  { %4053 = vpush %v145_v35 }
  0xef   :  { %s4054_s29 = spop %4053 }
  0xf0   :  { %v147_v36 = vstv %s4054_s29  ;;  %s4498_s29 = smov 125  }
  0xf1   :  { %4389 = vrsqrt.f32 %v147_v36 }
  0xf7   :  { %v216_v37 = vpop.f32.mrb[0].mxu0 }
  0xf8   :  { %v3548_v39 = vpop.f32.mrb[1].mxu0 }
  0xfb   :  { %v4390_v40 = vpop.eup %4389  ;;  %v221_v41 = vpop.f32.mrb[2].mxu0 }
  0xfc   :  { %4055 = vpush %v4390_v40  ;;  %v3551_v43 = vpop.f32.mrb[3].mxu0  ;;  %v75_v40 = vmul.f32 %v4737_v9, %v63_v2 }
  0xff   :  { %v226_v44 = vpop.f32.mrb[4].mxu0 }
 0x100   :  { %v3554_v46 = vpop.f32.mrb[5].mxu0 }
 0x12d   :  { %s4056_s30 = spop %4055 }
 0x12e   :  { %v230_v48 = vstv %s4056_s30 }
 0x12f   :  { %v231_v50 = vmul.f32 %v230_v48, %v216_v37  ;;  %v232_v52 = vmul.f32 %v230_v48, %v221_v41  ;;  %v233_v53 = vmul.f32 %v230_v48, %v226_v44 }
 0x131   :  { %4391 = vtanh.f32 %v231_v50  ;;  %v79_v50 = vsel %vm78_vm5, %v75_v40, 0.0 }
 0x132   :  { %4393 = vtanh.f32 %v232_v52 }
 0x133   :  { %4395 = vtanh.f32 %v233_v53 }
 0x13b   :  { %v4392_v54 = vpop.eup %4391 }
 0x13c   :  { %v4394_v55 = vpop.eup %4393  ;;  %239 = vperm.xlu0 %4095, %v4392_v54  }
 0x13d   :  { %244 = vperm.xlu1 %4097, %v4394_v55   ;;  %v4396_v57 = vpop.eup %4395 }
 0x140   :  { %4099 = vset.pattern.permute.xlu0 %v6765_v27 }
 0x141   :  { %249 = vperm.xlu1 %4097, %v4396_v57  }
 0x145   :  { %4098 = vset.pattern.permute.xlu1 %v6765_v27 }
 0x146   :  { %67 = vperm.xlu1 %4098, %v4709_v58  }
 0x14a   :  { %72 = vperm.xlu1 %4098, %v4716_v59  }
 0x1bb   :  { %v4739_v13 = vpop.permute.xlu0 %239 }
 0x1bc   :  { %v252_v14 = vmul.f32 %v4737_v9, %v4739_v13  ;;  %v4745_v17 = vpop.permute.xlu1 %244 }
 0x1bd   :  { %v253_v21 = vmul.f32 %v4734_v6, %v4745_v17 }
 0x1be   :  { %v255_v25 = vsel %vm78_vm5, %v252_v14, 0.0 }
 0x1bf   :  { %v256_v30 = vsel %vm78_vm5, %v253_v21, 0.0 }
 0x1c0   :  { %v4754_v32 = vpop.permute.xlu1 %249  ;;  %v257_v35 = vadd.f32 %v256_v30, %v255_v25 }
 0x1c1   :  { %v254_v34 = vmul.f32 %v4750_v22, %v4754_v32 }
 0x1c3   :  { %v258_v36 = vsel %vm78_vm5, %v254_v34, 0.0 }
 0x1c4   :  { %v259_v37 = vadd.f32 %v258_v36, %v257_v35  ;;  %v24_v35 = vld [vmem:[%s6719_s0 + $0x30] sm:$0xff] }
 0x1c5   :  { %v68_v39 = vpop.permute.xlu1 %67 }
 0x1c6   :  { %v260_v41 = vrot.slane %v259_v37, 4  ;;  %v76_v43 = vmul.f32 %v4734_v6, %v68_v39 }
 0x1c8   :  { %v261_v44 = vadd.f32 %v260_v41, %v259_v37  ;;  %v80_v46 = vsel %vm78_vm5, %v76_v43, 0.0  ;;  %v23_v37 = vld [vmem:[%s6719_s0 + $0x10] sm:$0xff] }
 0x1c9   :  { %v73_v48 = vpop.permute.xlu1 %72  ;;  %v81_v54 = vadd.f32 %v80_v46, %v79_v50  ;;  %v25_v41 = vld [vmem:[%s6719_s0 + $0x50] sm:$0xff] }
 0x1ca   :  { %v262_v52 = vrot.slane %v261_v44, 2  ;;  %v77_v53 = vmul.f32 %v4750_v22, %v73_v48 }
 0x1cc   :  { %v263_v55 = vadd.f32 %v262_v52, %v261_v44  ;;  %v82_v57 = vsel %vm78_vm5, %v77_v53, 0.0 }
 0x1cd   :  { %v83_v61 = vadd.f32 %v82_v57, %v81_v54 }
 0x1ce   :  { %v264_v14 = vrot.slane %v263_v55, 1 }
 0x1cf   :  { %v84_v21 = vrot.slane %v83_v61, 4 }
 0x1d0   :  { %v265_v2 = vadd.f32 %v264_v14, %v263_v55  ;;  %v467_v14 = vld [vmem:[%s6718_s1] sm:$0xff] }
 0x1d1   :  { %v85_v25 = vadd.f32 %v84_v21, %v83_v61  ;;  %v468_v21 = vld [vmem:[%s6718_s1 + $0x20] sm:$0xff] }
 0x1d2   :  { %vm267_vm7 = vcmp.gt.f32.partialorder %v265_v2, %v4745_v17  ;;  %vm270_vm8 = vcmp.eq.f32.partialorder %v265_v2, %v4745_v17  ;;  %vm269_vm9 = vcmp.eq.f32.partialorder %v265_v2, %v4739_v13  ;;  %vm266_vm12 = vcmp.gt.f32.partialorder %v265_v2, %v4739_v13 }
 0x1d3   :  { %v86_v30 = vrot.slane %v85_v25, 2  ;;  %vm276_vm11 = vmand %vm270_vm8, %vm273_vm6  ;;  %vm271_vm14 = vcmp.eq.f32.partialorder %v265_v2, %v4754_v32  ;;  %vm268_vm3 = vcmp.gt.f32.partialorder %v265_v2, %v4754_v32  ;;  %v469_v2 = vld [vmem:[%s6718_s1 + $0x40] sm:$0xff] }
 0x1d4   :  { %vm279_vm13 = vmor %vm267_vm7, %vm276_vm11 }
 0x1d5   :  { %v87_v34 = vadd.f32 %v86_v30, %v85_v25  ;;  %vm275_vm2 = vmand %vm269_vm9, %vm272_vm10  ;;  %v3237_v36 = vsel %vm279_vm13, 1.0, %v6725_v4  ;;  %v3814_v25 = vpack.c.bf16 %v468_v21, %v467_v14  ;;  %v470_v30 = vld [vmem:[%s6718_s1 + $0x60] sm:$0xff] }
 0x1d6   :  { %vm278_vm4 = vmor %vm266_vm12, %vm275_vm2  ;;  %v288_v44 = vmul.f32 %v3237_v36, %v24_v35  ;;  %v471_v35 = vld [vmem:[%s6718_s1 + $0x80] sm:$0xff] }
 0x1d7   :  { %v88_v39 = vrot.slane %v87_v34, 1  ;;  %v3236_v40 = vsel %vm278_vm4, 1.0, %v6725_v4  ;;  %vm277_vm7 = vmand %vm271_vm14, %vm274_vm15  ;;  %3815 = vmatpush3.bf16.msra.mxu1 %v3814_v25  ;;  %v472_v36 = vld [vmem:[%s6718_s1 + $0xa0] sm:$0xff] }
 0x1d8   :  { %vm280_vm8 = vmor %vm268_vm3, %vm277_vm7  ;;  %v287_v46 = vmul.f32 %v3236_v40, %v23_v37  ;;  %3816 = vmatprep.subr.bf16.mxu1 %v6767_v3  ;;  %v3820_v37 = vpack.c.bf16 %v472_v36, %v471_v35  ;;  %v474_v40 = vld [vmem:[%s6718_s1 + $0xe0] sm:$0xff] }
 0x1d9   :  { %v89_v43 = vadd.f32 %v88_v39, %v87_v34  ;;  %v3238_v48 = vsel %vm280_vm8, 1.0, %v6725_v4  ;;  %v3817_v34 = vpack.c.bf16 %v470_v30, %v469_v2  ;;  %v473_v39 = vld [vmem:[%s6718_s1 + $0xc0] sm:$0xff] }
 0x1da   :  { %v289_v53 = vmul.f32 %v3238_v48, %v25_v41  ;;  %v3823_v41 = vpack.c.bf16 %v474_v40, %v473_v39  ;;  %v477_v48 = vld [vmem:[%s6718_s1 + $0x140] sm:$0xff]  ;;  %v343_v40 = vmul.f32 %v4739_v13, %v4677_v16 }
 0x1db   :  { %v291_v50 = vmul.f32 %v288_v44, %v89_v43  ;;  %v290_v52 = vmul.f32 %v287_v46, %v89_v43  ;;  %3818 = vmatpush3.bf16.msra.mxu1 %v3817_v34  ;;  %v476_v44 = vld [vmem:[%s6718_s1 + $0x120] sm:$0xff] }
 0x1dc   :  { %v292_v57 = vmul.f32 %v289_v53, %v89_v43  ;;  %3819 = vmatprep.subr.bf16.mxu1 %v6767_v3  ;;  %v475_v43 = vld [vmem:[%s6718_s1 + $0x100] sm:$0xff] }
 0x1dd   :  { %v296_v54 = vsel %vm78_vm5, %v291_v50, 0.0  ;;  %v293_v55 = vsel %vm78_vm5, %v290_v52, 0.0  ;;  %v3826_v46 = vpack.c.bf16 %v476_v44, %v475_v43  ;;  %v478_v50 = vld [vmem:[%s6718_s1 + $0x160] sm:$0xff]  ;;  %v344_v43 = vmul.f32 %v4745_v17, %v4685_v18 }
 0x1de   :  { %297 = vadd.xlane.f32.xlu0 %v296_v54  ;;  %294 = vadd.xlane.f32.xlu1 %v293_v55  ;;  %v299_v61 = vsel %vm78_vm5, %v292_v57, 0.0  ;;  %v3829_v52 = vpack.c.bf16 %v478_v50, %v477_v48  ;;  %v479_v53 = vld [vmem:[%s6718_s1 + $0x180] sm:$0xff]  ;;  %v345_v17 = vmul.f32 %v4754_v32, %v4693_v20 }
 0x1df   :  { %3821 = vmatpush3.bf16.msra.mxu1 %v3820_v37  ;;  %v480_v54 = vld [vmem:[%s6718_s1 + $0x1a0] sm:$0xff] }
 0x1e0   :  { %3822 = vmatprep.subr.bf16.mxu1 %v6767_v3  ;;  %v3832_v55 = vpack.c.bf16 %v480_v54, %v479_v53  ;;  %v481_v57 = vld [vmem:[%s6718_s1 + $0x1c0] sm:$0xff] }
 0x1e2   :  { %300 = vadd.xlane.f32.xlu1 %v299_v61  ;;  %v482_v61 = vld [vmem:[%s6718_s1 + $0x1e0] sm:$0xff] }
 0x1e3   :  { %3824 = vmatpush3.bf16.msra.mxu1 %v3823_v41  ;;  %v3835_v14 = vpack.c.bf16 %v482_v61, %v481_v57 }
 0x1e4   :  { %3825 = vmatprep.subr.bf16.mxu1 %v6767_v3 }
 0x1e7   :  { %3827 = vmatpush3.bf16.msra.mxu1 %v3826_v46 }
 0x1e8   :  { %3828 = vmatprep.subr.bf16.mxu1 %v6767_v3 }
 0x1eb   :  { %3830 = vmatpush3.bf16.msra.mxu1 %v3829_v52 }
 0x1ec   :  { %3831 = vmatprep.subr.bf16.mxu1 %v6767_v3 }
 0x1ef   :  { %3833 = vmatpush3.bf16.msra.mxu1 %v3832_v55 }
 0x1f0   :  { %3834 = vmatprep.subr.bf16.mxu1 %v6767_v3 }
 0x1f3   :  { %3836 = vmatpush3.bf16.msra.mxu1 %v3835_v14  ;;  %v20_v14 = vld [vmem:[%s6719_s0 + $0x8] sm:$0xff] }
 0x1f4   :  { %3869 = vmatprep.subr.bf16.mxu1 %v6767_v3 }
 0x26b   :  { %v298_v21 = vpop.xlane.xlu0 %297  ;;  %v295_v2 = vpop.xlane.xlu1 %294 }
 0x26c   :  { %vm303_vm9 = vcmp.lt.f32.partialorder %v298_v21, 8.0  ;;  %vm302_vm11 = vcmp.lt.f32.partialorder %v295_v2, 8.0 }
 0x26d   :  { %v3239_v25 = vsel %vm302_vm11, 1.0, %v6725_v4  ;;  %v3240_v34 = vsel %vm303_vm9, 1.0, %v6725_v4 }
 0x26e   :  { %v4859_v30 = vmul.f32 %v3239_v25, %v4699_v23  ;;  %v4865_v37 = vmul.f32 %v3240_v34, %v4709_v58  ;;  %v6737_v23 = vmov 5  }
 0x26f   :  { %v301_v35 = vpop.xlane.xlu1 %300 }
 0x270   :  { %6880 = vst [vmem:[#allocation25_spill] sm:$0xff] %v4859_v30  ;;  %vm304_vm12 = vcmp.lt.f32.partialorder %v301_v35, 8.0  ;;  %316 = vperm.xlu1 %4098, %v4859_v30   ;;  %6881 = vst [vmem:[#allocation26_spill] sm:$0xff] %v4865_v37 }
 0x271   :  { %v3241_v36 = vsel %vm304_vm12, 1.0, %v6725_v4 }
 0x272   :  { %v4868_v39 = vmul.f32 %v3241_v36, %v4716_v59  ;;  %v21_v36 = vld [vmem:[%s6719_s0 + $0x28] sm:$0xff] }
 0x274   :  { %6882 = vst [vmem:[#allocation27_spill] sm:$0xff] %v4868_v39  ;;  %321 = vperm.xlu1 %4098, %v4865_v37   ;;  %326 = vperm.xlu0 %4099, %v4868_v39   ;;  %v5258_v39 = vsub.s32 4, %v4719_v62 }
 0x278   :  { %4100 = vset.pattern.permute.xlu1 %v6727_v29  ;;  %4111 = vset.pattern.permute.xlu0 %v6737_v23 }
 0x2ef   :  { %v4876_v41 = vpop.permute.xlu1 %316 }
 0x2f0   :  { %6883 = vst [vmem:[#allocation28_spill] sm:$0xff] %v4876_v41  ;;  %v4879_v58 = vmul.f32 %v343_v40, %v4876_v41  ;;  %v329_v59 = vmul.f32 %v4737_v9, %v4876_v41  ;;  %v349_v2 = vmul.f32 %v4876_v41, %v20_v14  ;;  %v6763_v14 = vmov 12  }
 0x2f2   :  { %6884 = vst [vmem:[#allocation29_spill] sm:$0xff] %v4879_v58  ;;  %3588 = vmatmul.mubr.f32.vlgmr.msra.gmra.mrb[0].mxu1 %v4879_v58  ;;  %1201 = vmatprep.mubr.f32.mxu0 %v4879_v58  ;;  %v332_v50 = vsel %vm78_vm5, %v329_v59, 0.0 }
 0x2f3   :  { %v4887_v44 = vpop.permute.xlu0 %326  ;;  %v4889_v46 = vpop.permute.xlu1 %321  ;;  %3590 = vmatprep.mubr.msk.f32.mxu1 %vm4470_vm1, %v6725_v4 }
 0x2f4   :  { %6885 = vst [vmem:[#allocation30_spill] sm:$0xff] %v4887_v44  ;;  %6886 = vst [vmem:[#allocation31_spill] sm:$0xff] %v4889_v46  ;;  %v331_v16 = vmul.f32 %v4750_v22, %v4887_v44  ;;  %v330_v13 = vmul.f32 %v4734_v6, %v4889_v46  ;;  %v4898_v48 = vmul.f32 %v344_v43, %v4889_v46  ;;  %v6747_v43 = vmov 6  }
 0x2f5   :  { %v4909_v54 = vmul.f32 %v345_v17, %v4887_v44  ;;  %v350_v40 = vmul.f32 %v4889_v46, %v21_v36  ;;  %v22_v17 = vld [vmem:[%s6719_s0 + $0x48] sm:$0xff]  ;;  %v6769_v36 = vmov 14  }
 0x2f6   :  { %6887 = vst [vmem:[#allocation32_spill] sm:$0xff] %v4898_v48  ;;  %v333_v18 = vsel %vm78_vm5, %v330_v13, 0.0  ;;  %3591 = vmatmul.mubr.f32.gmra.mrb[2].mxu1 %v4898_v48  ;;  %v335_v53 = vsel %vm78_vm5, %v331_v16, 0.0  ;;  %v6723_v16 = vmov 1  }
 0x2f7   :  { %v334_v52 = vadd.f32 %v333_v18, %v332_v50  ;;  %3593 = vmatprep.mubr.msk.f32.mxu1 %vm4470_vm1, %v6725_v4  ;;  %6888 = vst [vmem:[#allocation33_spill] sm:$0xff] %v4909_v54  ;;  %v6751_v50 = vmov 7   ;;  %v6753_v18 = vmov 8  }
 0x2f9   :  { %v336_v55 = vadd.f32 %v335_v53, %v334_v52  ;;  %v6759_v52 = vmov 9   ;;  %v351_v53 = vmul.f32 %v4887_v44, %v22_v17  ;;  %v6745_v17 = vmov 16  }
 0x2fa   :  { %3594 = vmatmul.mubr.f32.gmra.mrb[4].mxu1 %v4909_v54 }
 0x2fb   :  { %v337_v57 = vrot.slane %v336_v55, 4  ;;  %3628 = vmatprep.mubr.msk.f32.mxu1 %vm4470_vm1, %v6725_v4  ;;  %v6731_v4 = vmov 19  }
 0x2fd   :  { %v338_v61 = vadd.f32 %v337_v57, %v336_v55  ;;  %v6757_v57 = vmov 10  }
 0x2ff   :  { %v339_v20 = vrot.slane %v338_v61, 2 }
 0x301   :  { %v340_v32 = vadd.f32 %v339_v20, %v338_v61  ;;  %v6729_v61 = vmov 3  }
 0x303   :  { %v341_v21 = vrot.slane %v340_v32, 1 }
 0x305   :  { %v4918_v25 = vadd.f32 %v341_v21, %v340_v32  ;;  %v6755_v32 = vmov 11   ;;  %v6761_v21 = vmov 13  }
 0x307   :  { %6889 = vst [vmem:[#allocation34_spill] sm:$0xff] %v4918_v25  ;;  %v4921_v34 = vmul.f32 %v349_v2, %v4918_v25  ;;  %v4934_v59 = vmul.f32 %v350_v40, %v4918_v25  ;;  %v4961_v55 = vmul.f32 %v351_v53, %v4918_v25  ;;  %v6733_v2 = vmov 4  }
 0x308   :  { %v6778_v40 = vmov 15   ;;  %v6743_v53 = vmov 17  }
 0x309   :  { %6890 = vst [vmem:[#allocation35_spill] sm:$0xff] %v4921_v34  ;;  %v4925_v35 = vmax.f32 %v4921_v34, %v4737_v9  ;;  %6891 = vst [vmem:[#allocation36_spill] sm:$0xff] %v4934_v59  ;;  %v4942_v13 = vmax.f32 %v4934_v59, %v4734_v6  ;;  %v4969_v20 = vmax.f32 %v4961_v55, %v4750_v22 }
 0x30a   :  { %6892 = vst [vmem:[#allocation37_spill] sm:$0xff] %v4961_v55  ;;  %v6894_v55 = vmov 17  }
 0x30b   :  { %720 = vperm.xlu0 %4111, %v4925_v35   ;;  %608 = vperm.xlu1 %4100, %v4925_v35  }
 0x30f   :  { %4114 = vset.pattern.permute.xlu0 %v6747_v43  ;;  %4101 = vset.pattern.permute.xlu1 %v6723_v16 }
 0x310   :  { %742 = vperm.xlu0 %4114, %v4925_v35   ;;  %632 = vperm.xlu1 %4101, %v4925_v35  }
 0x314   :  { %4117 = vset.pattern.permute.xlu0 %v6751_v50  ;;  %4102 = vset.pattern.permute.xlu1 %v6727_v29 }
 0x315   :  { %764 = vperm.xlu0 %4117, %v4925_v35   ;;  %613 = vperm.xlu1 %4102, %v4942_v13  }
 0x319   :  { %4120 = vset.pattern.permute.xlu0 %v6753_v18  ;;  %4103 = vset.pattern.permute.xlu1 %v6765_v27 }
 0x31a   :  { %786 = vperm.xlu0 %4120, %v4925_v35   ;;  %654 = vperm.xlu1 %4103, %v4925_v35  }
 0x31e   :  { %4123 = vset.pattern.permute.xlu0 %v6759_v52  ;;  %4104 = vset.pattern.permute.xlu1 %v6723_v16 }
 0x31f   :  { %808 = vperm.xlu0 %4123, %v4925_v35   ;;  %636 = vperm.xlu1 %4104, %v4942_v13  }
 0x323   :  { %4126 = vset.pattern.permute.xlu0 %v6757_v57  ;;  %4105 = vset.pattern.permute.xlu1 %v6729_v61 }
 0x324   :  { %830 = vperm.xlu0 %4126, %v4925_v35   ;;  %676 = vperm.xlu1 %4105, %v4925_v35  }
 0x328   :  { %4129 = vset.pattern.permute.xlu0 %v6755_v32  ;;  %4106 = vset.pattern.permute.xlu1 %v6727_v29  ;;  %v6735_v29 = vmov 20  }
 0x329   :  { %852 = vperm.xlu0 %4129, %v4925_v35   ;;  %618 = vperm.xlu1 %4106, %v4969_v20  }
 0x32d   :  { %4132 = vset.pattern.permute.xlu0 %v6763_v14  ;;  %4107 = vset.pattern.permute.xlu1 %v6765_v27 }
 0x32e   :  { %874 = vperm.xlu0 %4132, %v4925_v35   ;;  %658 = vperm.xlu1 %4107, %v4942_v13  }
 0x332   :  { %4135 = vset.pattern.permute.xlu0 %v6761_v21  ;;  %4108 = vset.pattern.permute.xlu1 %v6733_v2 }
 0x333   :  { %896 = vperm.xlu0 %4135, %v4925_v35   ;;  %698 = vperm.xlu1 %4108, %v4925_v35  }
 0x337   :  { %4138 = vset.pattern.permute.xlu0 %v6769_v36  ;;  %4109 = vset.pattern.permute.xlu1 %v6723_v16  ;;  %v6741_v16 = vmov 18  }
 0x338   :  { %918 = vperm.xlu0 %4138, %v4925_v35   ;;  %640 = vperm.xlu1 %4109, %v4969_v20  }
 0x33c   :  { %4141 = vset.pattern.permute.xlu0 %v6778_v40  ;;  %4110 = vset.pattern.permute.xlu1 %v6729_v61 }
 0x33d   :  { %940 = vperm.xlu0 %4141, %v4925_v35   ;;  %680 = vperm.xlu1 %4110, %v4942_v13  }
 0x341   :  { %4144 = vset.pattern.permute.xlu0 %v6745_v17  ;;  %4112 = vset.pattern.permute.xlu1 %v6765_v27 }
 0x342   :  { %962 = vperm.xlu0 %4144, %v4925_v35   ;;  %662 = vperm.xlu1 %4112, %v4969_v20  }
 0x346   :  { %4147 = vset.pattern.permute.xlu0 %v6743_v53  ;;  %4113 = vset.pattern.permute.xlu1 %v6733_v2  ;;  %v485_v53 = vld [vmem:[%s6720_s2 + $0x18] sm:$0xff] }
 0x347   :  { %984 = vperm.xlu0 %4147, %v4925_v35   ;;  %702 = vperm.xlu1 %4113, %v4942_v13  }
 0x34b   :  { %4150 = vset.pattern.permute.xlu0 %v6741_v16  ;;  %4115 = vset.pattern.permute.xlu1 %v6729_v61  ;;  %v6771_v61 = vmov 21   ;;  %v484_v16 = vld [vmem:[%s6720_s2] sm:$0xff] }
 0x34c   :  { %1006 = vperm.xlu0 %4150, %v4925_v35   ;;  %684 = vperm.xlu1 %4115, %v4969_v20  }
 0x350   :  { %4153 = vset.pattern.permute.xlu0 %v6731_v4  ;;  %4116 = vset.pattern.permute.xlu1 %v6737_v23  ;;  %v6739_v4 = vmov 22  }
 0x351   :  { %1028 = vperm.xlu0 %4153, %v4925_v35   ;;  %724 = vperm.xlu1 %4116, %v4942_v13  }
 0x355   :  { %4156 = vset.pattern.permute.xlu0 %v6735_v29  ;;  %4118 = vset.pattern.permute.xlu1 %v6733_v2  ;;  %v6749_v2 = vmov 23   ;;  %v500_v29 = vld [vmem:[%s6720_s2 + $0x180] sm:$0xff] }
 0x356   :  { %1050 = vperm.xlu0 %4156, %v4925_v35   ;;  %706 = vperm.xlu1 %4118, %v4969_v20  }
 0x35a   :  { %4159 = vset.pattern.permute.xlu0 %v6771_v61  ;;  %4119 = vset.pattern.permute.xlu1 %v6747_v43 }
 0x35b   :  { %1072 = vperm.xlu0 %4159, %v4925_v35   ;;  %746 = vperm.xlu1 %4119, %v4942_v13  }
 0x35f   :  { %4162 = vset.pattern.permute.xlu0 %v6739_v4  ;;  %4121 = vset.pattern.permute.xlu1 %v6737_v23  ;;  %v501_v23 = vld [vmem:[%s6720_s2 + $0x198] sm:$0xff] }
 0x360   :  { %1094 = vperm.xlu0 %4162, %v4925_v35   ;;  %728 = vperm.xlu1 %4121, %v4969_v20   ;;  %v3837_v4 = vpack.c.bf16 %v501_v23, %v500_v29  ;;  %v502_v29 = vld [vmem:[%s6720_s2 + $0x1b0] sm:$0xff]  ;;  %v503_v23 = vld [vmem:[%s6720_s2 + $0x1c8] sm:$0xff] }
 0x361   :  { %v3841_v17 = vpack.c.bf16 %v503_v23, %v502_v29  ;;  %v489_v23 = vld [vmem:[%s6720_s2 + $0x78] sm:$0xff] }
 0x362   :  { %3838 = vmatprep.subr.bf16.mxu0 %v3837_v4  ;;  %v486_v4 = vld [vmem:[%s6720_s2 + $0x30] sm:$0xff] }
 0x364   :  { %4165 = vset.pattern.permute.xlu0 %v6749_v2  ;;  %4122 = vset.pattern.permute.xlu1 %v6751_v50 }
 0x365   :  { %1116 = vperm.xlu0 %4165, %v4925_v35   ;;  %768 = vperm.xlu1 %4122, %v4942_v13   ;;  %v3839_v35 = vpack.c.bf16 %v485_v53, %v484_v16  ;;  %v487_v16 = vld [vmem:[%s6720_s2 + $0x48] sm:$0xff] }
 0x366   :  { %v3843_v53 = vpack.c.bf16 %v487_v16, %v486_v4  ;;  %v506_v16 = vld [vmem:[%s6720_s2 + $0x210] sm:$0xff] }
 0x367   :  { %3840 = vmatpush3.bf16.msra.mxu0 %v3839_v35  ;;  %v505_v35 = vld [vmem:[%s6720_s2 + $0x1f8] sm:$0xff] }
 0x368   :  { %3842 = vmatprep.subr.bf16.mxu0 %v3841_v17  ;;  %v488_v17 = vld [vmem:[%s6720_s2 + $0x60] sm:$0xff] }
 0x369   :  { %4168 = vset.pattern.permute.xlu0 %v6771_v61  ;;  %4124 = vset.pattern.permute.xlu1 %v6747_v43  ;;  %v504_v43 = vld [vmem:[%s6720_s2 + $0x1e0] sm:$0xff]  ;;  %v3847_v4 = vpack.c.bf16 %v489_v23, %v488_v17 }
 0x36a   :  { %1080 = vperm.xlu0 %4168, %v4969_v20   ;;  %750 = vperm.xlu1 %4124, %v4969_v20   ;;  %v3845_v29 = vpack.c.bf16 %v505_v35, %v504_v43  ;;  %v490_v35 = vld [vmem:[%s6720_s2 + $0x90] sm:$0xff]  ;;  %v508_v17 = vld [vmem:[%s6720_s2 + $0x240] sm:$0xff] }
 0x36b   :  { %3844 = vmatpush3.bf16.msra.mxu0 %v3843_v53  ;;  %v491_v53 = vld [vmem:[%s6720_s2 + $0xa8] sm:$0xff] }
 0x36c   :  { %3846 = vmatprep.subr.bf16.mxu0 %v3845_v29  ;;  %v3851_v29 = vpack.c.bf16 %v491_v53, %v490_v35  ;;  %v511_v35 = vld [vmem:[%s6720_s2 + $0x288] sm:$0xff] }
 0x36e   :  { %4171 = vset.pattern.permute.xlu0 %v6749_v2  ;;  %4125 = vset.pattern.permute.xlu1 %v6753_v18  ;;  %v507_v2 = vld [vmem:[%s6720_s2 + $0x228] sm:$0xff] }
 0x36f   :  { %1124 = vperm.xlu0 %4171, %v4969_v20   ;;  %790 = vperm.xlu1 %4125, %v4942_v13   ;;  %v3849_v43 = vpack.c.bf16 %v507_v2, %v506_v16  ;;  %v509_v2 = vld [vmem:[%s6720_s2 + $0x258] sm:$0xff]  ;;  %v492_v16 = vld [vmem:[%s6720_s2 + $0xc0] sm:$0xff] }
 0x370   :  { %3848 = vmatpush3.bf16.msra.mxu0 %v3847_v4  ;;  %v3853_v23 = vpack.c.bf16 %v509_v2, %v508_v17  ;;  %v494_v17 = vld [vmem:[%s6720_s2 + $0xf0] sm:$0xff]  ;;  %v512_v2 = vld [vmem:[%s6720_s2 + $0x2a0] sm:$0xff] }
 0x371   :  { %3850 = vmatprep.subr.bf16.mxu0 %v3849_v43  ;;  %v510_v43 = vld [vmem:[%s6720_s2 + $0x270] sm:$0xff] }
 0x372   :  { %v3857_v53 = vpack.c.bf16 %v511_v35, %v510_v43  ;;  %v496_v43 = vld [vmem:[%s6720_s2 + $0x120] sm:$0xff]  ;;  %v514_v35 = vld [vmem:[%s6720_s2 + $0x2d0] sm:$0xff] }
 0x373   :  { %4127 = vset.pattern.permute.xlu1 %v6751_v50  ;;  %4213 = vset.pattern.permute.xlu0 %v6765_v27  ;;  %v493_v50 = vld [vmem:[%s6720_s2 + $0xd8] sm:$0xff] }
 0x374   :  { %772 = vperm.xlu1 %4127, %v4969_v20   ;;  %3852 = vmatpush3.bf16.msra.mxu0 %v3851_v29  ;;  %v3855_v4 = vpack.c.bf16 %v493_v50, %v492_v16  ;;  %v495_v50 = vld [vmem:[%s6720_s2 + $0x108] sm:$0xff] }
 0x375   :  { %3854 = vmatprep.subr.bf16.mxu0 %v3853_v23  ;;  %v3859_v29 = vpack.c.bf16 %v495_v50, %v494_v17  ;;  %v513_v23 = vld [vmem:[%s6720_s2 + $0x2b8] sm:$0xff]  ;;  %v515_v17 = vld [vmem:[%s6720_s2 + $0x2e8] sm:$0xff] }
 0x376   :  { %v3861_v16 = vpack.c.bf16 %v513_v23, %v512_v2  ;;  %v3865_v50 = vpack.c.bf16 %v515_v17, %v514_v35  ;;  %v498_v2 = vld [vmem:[%s6720_s2 + $0x150] sm:$0xff]  ;;  %v499_v23 = vld [vmem:[%s6720_s2 + $0x168] sm:$0xff] }
 0x378   :  { %4128 = vset.pattern.permute.xlu1 %v6759_v52  ;;  %3856 = vmatpush3.bf16.msra.mxu0 %v3855_v4  ;;  %v497_v4 = vld [vmem:[%s6720_s2 + $0x138] sm:$0xff] }
 0x379   :  { %812 = vperm.xlu1 %4128, %v4942_v13   ;;  %3858 = vmatprep.subr.bf16.mxu0 %v3857_v53  ;;  %v3863_v53 = vpack.c.bf16 %v497_v4, %v496_v43 }
 0x37c   :  { %3860 = vmatpush3.bf16.msra.mxu0 %v3859_v29 }
 0x37d   :  { %4130 = vset.pattern.permute.xlu1 %v6753_v18  ;;  %3862 = vmatprep.subr.bf16.mxu0 %v3861_v16  ;;  %v3867_v18 = vpack.c.bf16 %v499_v23, %v498_v2  ;;  %v4417_v2 = vld [vmem:[%s6718_s1 + $0x98] sm:$0xff] }
 0x37e   :  { %794 = vperm.xlu1 %4130, %v4969_v20   ;;  %v4182_v23 = vpack.i.bf16 %v4556_v12, %v4417_v2 }
 0x380   :  { %3864 = vmatpush3.bf16.msra.mxu0 %v3863_v53  ;;  %4183 = vrot.lane.b32.xlu0 %v4182_v23, %s4496_s15 }
 0x381   :  { %3866 = vmatprep.subr.bf16.mxu0 %v3865_v50 }
 0x382   :  { %4131 = vset.pattern.permute.xlu1 %v6757_v57 }
 0x383   :  { %834 = vperm.xlu1 %4131, %v4942_v13  }
 0x384   :  { %3868 = vmatpush3.bf16.msra.mxu0 %v3867_v18 }
 0x385   :  { %3893 = vmatprep.subr.bf16.mxu0 %v6767_v3 }
 0x387   :  { %4133 = vset.pattern.permute.xlu1 %v6759_v52 }
 0x388   :  { %816 = vperm.xlu1 %4133, %v4969_v20  }
 0x38a   :  { %v5139_v29 = vpop.permute.xlu1 %608  ;;  %v5141_v16 = vpop.permute.xlu0 %720 }
 0x38c   :  { %4134 = vset.pattern.permute.xlu1 %v6755_v32 }
 0x38d   :  { %856 = vperm.xlu1 %4134, %v4942_v13  }
 0x38f   :  { %v5145_v43 = vpop.permute.xlu1 %632  ;;  %v5147_v4 = vpop.permute.xlu0 %742 }
 0x391   :  { %4136 = vset.pattern.permute.xlu1 %v6757_v57 }
 0x392   :  { %838 = vperm.xlu1 %4136, %v4969_v20  }
 0x394   :  { %v5151_v35 = vpop.permute.xlu1 %613  ;;  %v5154_v18 = vpop.permute.xlu0 %764 }
 0x396   :  { %4137 = vset.pattern.permute.xlu1 %v6763_v14 }
 0x397   :  { %878 = vperm.xlu1 %4137, %v4942_v13  }
 0x399   :  { %v5157_v17 = vpop.permute.xlu1 %654  ;;  %v5161_v53 = vpop.permute.xlu0 %786 }
 0x39b   :  { %4139 = vset.pattern.permute.xlu1 %v6755_v32  ;;  %v4192_v32 = vpack.i.bf16 %v4597_v31, %v4587_v26  ;;  %v4202_v26 = vpack.i.bf16 %v4637_v49, %v4627_v45 }
 0x39c   :  { %860 = vperm.xlu1 %4139, %v4969_v20  }
 0x39d   :  { %4193 = vrot.lane.b32.xlu0 %v4192_v32, %s4496_s15 }
 0x39e   :  { %v5163_v50 = vpop.permute.xlu1 %636  ;;  %v5174_v57 = vpop.permute.xlu0 %808 }
 0x3a0   :  { %4140 = vset.pattern.permute.xlu1 %v6761_v21 }
 0x3a1   :  { %900 = vperm.xlu1 %4140, %v4942_v13   ;;  %1239 = vrot.lane.b32.xlu0 %v4542_v7, %s4496_s15 }
 0x3a3   :  { %v5176_v52 = vpop.permute.xlu1 %676  ;;  %v5187_v31 = vpop.permute.xlu0 %830 }
 0x3a5   :  { %4142 = vset.pattern.permute.xlu1 %v6763_v14  ;;  %4203 = vrot.lane.b32.xlu0 %v4202_v26, %s4496_s15  ;;  %v6893_v14 = vmov 16  }
 0x3a6   :  { %882 = vperm.xlu1 %4142, %v4969_v20  }
 0x3a8   :  { %v5181_v12 = vpop.permute.xlu1 %618  ;;  %v5194_v2 = vpop.permute.xlu0 %852 }
 0x3a9   :  { %1245 = vrot.lane.b32.xlu0 %v4549_v11, %s4496_s15 }
 0x3aa   :  { %4143 = vset.pattern.permute.xlu1 %v6769_v36 }
 0x3ab   :  { %922 = vperm.xlu1 %4143, %v4942_v13  }
 0x3ad   :  { %v5192_v32 = vpop.permute.xlu1 %658  ;;  %1247 = vrot.lane.b32.xlu0 %v4560_v15, %s4496_s15  ;;  %v5205_v49 = vpop.permute.xlu0 %874  ;;  %v5245_v15 = vsub.s32 2, %v4719_v62 }
 0x3af   :  { %4145 = vset.pattern.permute.xlu1 %v6761_v21 }
 0x3b0   :  { %904 = vperm.xlu1 %4145, %v4969_v20  }
 0x3b1   :  { %1251 = vrot.lane.b32.xlu0 %v4579_v24, %s4496_s15 }
 0x3b2   :  { %v5200_v45 = vpop.permute.xlu1 %698  ;;  %v5214_v26 = vpop.permute.xlu0 %896 }
 0x3b4   :  { %4146 = vset.pattern.permute.xlu1 %v6778_v40 }
 0x3b5   :  { %944 = vperm.xlu1 %4146, %v4942_v13   ;;  %1255 = vrot.lane.b32.xlu0 %v4601_v33, %s4496_s15  ;;  %v5237_v33 = vsub.s32 0, %v4719_v62 }
 0x3b7   :  { %v5208_v23 = vpop.permute.xlu1 %640  ;;  %v5222_v27 = vpop.permute.xlu0 %918 }
 0x3b9   :  { %4148 = vset.pattern.permute.xlu1 %v6769_v36  ;;  %1259 = vrot.lane.b32.xlu0 %v4618_v42, %s4496_s15  ;;  %v5230_v36 = vld [vmem:[%s6721_s3] ss:$0 sm:$0xff] }
 0x3ba   :  { %926 = vperm.xlu1 %4148, %v4969_v20  }
 0x3bc   :  { %v681_v21 = vpop.permute.xlu1 %680  ;;  %v5239_v24 = vpop.permute.xlu0 %940 }
 0x3bd   :  { %1263 = vrot.lane.b32.xlu0 %v4641_v51, %s4496_s15 }
 0x3be   :  { %4149 = vset.pattern.permute.xlu1 %v6893_v14 }
 0x3bf   :  { %966 = vperm.xlu1 %4149, %v4942_v13  }
 0x3c1   :  { %v5224_v3 = vpop.permute.xlu1 %662  ;;  %1267 = vrot.lane.b32.xlu0 %v4658_v60, %s4496_s15  ;;  %v5262_v25 = vpop.permute.xlu0 %962 }
 0x3c3   :  { %4151 = vset.pattern.permute.xlu1 %v6778_v40  ;;  %v5242_v40 = vsub.s32 1, %v4719_v62 }
 0x3c4   :  { %948 = vperm.xlu1 %4151, %v4969_v20  }
 0x3c5   :  { %v589_v61 = vpop.f32.mrb[0].mxu1 }
 0x3c6   :  { %v590_v58 = vadd.f32 %v5230_v36, %v589_v61  ;;  %v3589_v42 = vpop.f32.mrb[1].mxu1  ;;  %v703_v11 = vpop.permute.xlu1 %702 }
 0x3c7   :  { %v5251_v42 = vsub.s32 3, %v4719_v62 }
 0x3c8   :  { %v603_v7 = vmax.f32 %v590_v58, 0.0  ;;  %4152 = vset.pattern.permute.xlu1 %v6894_v55 }
 0x3c9   :  { %988 = vperm.xlu1 %4152, %v4942_v13   ;;  %v594_v51 = vpop.f32.mrb[2].mxu1 }
 0x3ca   :  { %v624_v61 = vrot.slane %v603_v7, %v5237_v33  ;;  %v646_v59 = vrot.slane %v603_v7, %v5242_v40  ;;  %v668_v34 = vrot.slane %v603_v7, %v5245_v15  ;;  %v3592_v58 = vpop.f32.mrb[3].mxu1  ;;  %v690_v63 = vrot.slane %v603_v7, %v5251_v42 }
 0x3cb   :  { %v685_v37 = vpop.permute.xlu1 %684  ;;  %v712_v44 = vrot.slane %v603_v7, %v5258_v39  ;;  %v595_v46 = vadd.f32 %v5230_v36, %v594_v51  ;;  %v734_v54 = vrot.slane %v603_v7, %v5265_v5 }
 0x3cc   :  { %v625_v30 = vmul.f32 %v624_v61, %v5139_v29  ;;  %v626_v60 = vmul.f32 %v624_v61, %v5151_v35  ;;  %v647_v9 = vmul.f32 %v646_v59, %v5145_v43  ;;  %v648_v58 = vmul.f32 %v646_v59, %v5163_v50 }
 0x3cd   :  { %4154 = vset.pattern.permute.xlu1 %v6893_v14  ;;  %v5271_v6 = vpop.f32.mrb[4].mxu1  ;;  %v5275_v29 = vsub.s32 6, %v4719_v62  ;;  %v669_v35 = vmul.f32 %v668_v34, %v5157_v17  ;;  %v670_v43 = vmul.f32 %v668_v34, %v5192_v32  ;;  %v627_v50 = vmul.f32 %v624_v61, %v5181_v12 }
 0x3ce   :  { %v628_v1 = vmax.f32 %v625_v30, 0.0  ;;  %v629_v22 = vmax.f32 %v626_v60, 0.0  ;;  %970 = vperm.xlu1 %4154, %v4969_v20   ;;  %v3595_v14 = vpop.f32.mrb[5].mxu1  ;;  %v691_v56 = vmul.f32 %v690_v63, %v5176_v52  ;;  %v692_v17 = vmul.f32 %v690_v63, %v681_v21 }
 0x3cf   :  { %v630_v28 = vmax.f32 %v627_v50, 0.0  ;;  %v649_v51 = vmul.f32 %v646_v59, %v5208_v23  ;;  %v713_v14 = vmul.f32 %v712_v44, %v5200_v45  ;;  %v714_v12 = vmul.f32 %v712_v44, %v703_v11 }
 0x3d0   :  { %v650_v30 = vmax.f32 %v628_v1, %v647_v9  ;;  %v651_v60 = vmax.f32 %v629_v22, %v648_v58  ;;  %v725_v41 = vpop.permute.xlu1 %724  ;;  %v6895_v1 = vmov 18   ;;  %v5290_v9 = vrot.slane %v603_v7, %v5275_v29  ;;  %v5292_v22 = vpop.permute.xlu0 %984 }
 0x3d1   :  { %v604_v32 = vmax.f32 %v595_v46, 0.0  ;;  %v652_v61 = vmax.f32 %v630_v28, %v649_v51  ;;  %v671_v58 = vmul.f32 %v668_v34, %v5224_v3  ;;  %v5298_v59 = vrot.slane %v603_v7, %v5284_v0 }
 0x3d2   :  { %v672_v47 = vmax.f32 %v650_v30, %v669_v35  ;;  %v673_v38 = vmax.f32 %v651_v60, %v670_v43  ;;  %4155 = vset.pattern.permute.xlu1 %v6895_v1  ;;  %v735_v23 = vmul.f32 %v734_v54, %v5141_v16  ;;  %v693_v50 = vmul.f32 %v690_v63, %v685_v37 }
 0x3d3   :  { %1010 = vperm.xlu1 %4155, %v4942_v13   ;;  %v674_v43 = vmax.f32 %v652_v61, %v671_v58  ;;  %v5305_v28 = vrot.slane %v604_v32, %v5237_v33  ;;  %v736_v7 = vmul.f32 %v734_v54, %v725_v41  ;;  %v779_v46 = vmul.f32 %v5298_v59, %v5154_v18 }
 0x3d4   :  { %v694_v52 = vmax.f32 %v672_v47, %v691_v56  ;;  %v695_v21 = vmax.f32 %v673_v38, %v692_v17  ;;  %v757_v47 = vmul.f32 %v5290_v9, %v5147_v4  ;;  %v5308_v3 = vpop.permute.xlu0 %1006  ;;  %v5313_v63 = vrot.slane %v604_v32, %v5242_v40 }
 0x3d5   :  { %v707_v35 = vpop.permute.xlu1 %706  ;;  %v696_v38 = vmax.f32 %v674_v43, %v693_v50  ;;  %v801_v45 = vmul.f32 %v5305_v28, %v5161_v53  ;;  %v5318_v17 = vrot.slane %v604_v32, %v5245_v15  ;;  %v6896_v41 = vmov 19  }
 0x3d6   :  { %v716_v30 = vmax.f32 %v694_v52, %v713_v14  ;;  %v717_v60 = vmax.f32 %v695_v21, %v714_v12  ;;  %v715_v16 = vmul.f32 %v712_v44, %v707_v35  ;;  %v823_v18 = vmul.f32 %v5313_v63, %v5174_v57 }
 0x3d7   :  { %4157 = vset.pattern.permute.xlu1 %v6894_v55  ;;  %v5326_v12 = vrot.slane %v604_v32, %v5251_v42  ;;  %v600_v53 = vadd.f32 %v5230_v36, %v5271_v6  ;;  %v845_v58 = vmul.f32 %v5318_v17, %v5187_v31  ;;  %v5345_v50 = vrot.slane %v604_v32, %v5275_v29 }
 0x3d8   :  { %v738_v11 = vmax.f32 %v716_v30, %v735_v23  ;;  %992 = vperm.xlu1 %4157, %v4969_v20   ;;  %v739_v34 = vmax.f32 %v717_v60, %v736_v7  ;;  %v718_v14 = vmax.f32 %v696_v38, %v715_v16  ;;  %v1029_v21 = vpop.permute.xlu0 %1028  ;;  %v5333_v23 = vrot.slane %v604_v32, %v5258_v39 }
 0x3d9   :  { %v867_v57 = vmul.f32 %v5326_v12, %v5194_v2  ;;  %v5339_v60 = vrot.slane %v604_v32, %v5265_v5  ;;  %v605_v36 = vmax.f32 %v600_v53, 0.0  ;;  %v5351_v7 = vrot.slane %v604_v32, %v5284_v0 }
 0x3da   :  { %v760_v56 = vmax.f32 %v738_v11, %v757_v47  ;;  %v747_v37 = vpop.permute.xlu1 %746  ;;  %v889_v31 = vmul.f32 %v5333_v23, %v5205_v49  ;;  %v933_v49 = vmul.f32 %v5345_v50, %v5222_v27 }
 0x3db   :  { %v758_v51 = vmul.f32 %v5290_v9, %v747_v37  ;;  %v911_v2 = vmul.f32 %v5339_v60, %v5214_v26  ;;  %v955_v26 = vmul.f32 %v5351_v7, %v5239_v24  ;;  %v5363_v32 = vrot.slane %v605_v36, %v5242_v40 }
 0x3dc   :  { %v782_v4 = vmax.f32 %v760_v56, %v779_v46  ;;  %4158 = vset.pattern.permute.xlu1 %v6896_v41  ;;  %v1051_v47 = vpop.permute.xlu0 %1050  ;;  %v6897_v46 = vmov 20   ;;  %v5376_v53 = vrot.slane %v605_v36, %v5251_v42 }
 0x3dd   :  { %1032 = vperm.xlu1 %4158, %v4942_v13   ;;  %v761_v52 = vmax.f32 %v739_v34, %v758_v51  ;;  %v5358_v34 = vrot.slane %v605_v36, %v5237_v33  ;;  %v999_v24 = vmul.f32 %v5363_v32, %v5292_v22 }
 0x3de   :  { %v804_v44 = vmax.f32 %v782_v4, %v801_v45  ;;  %v1043_v22 = vmul.f32 %v5376_v53, %v1029_v21 }
 0x3df   :  { %v729_v61 = vpop.permute.xlu1 %728  ;;  %v977_v27 = vmul.f32 %v5358_v34, %v5262_v25 }
 0x3e0   :  { %v826_v35 = vmax.f32 %v804_v44, %v823_v18  ;;  %v737_v30 = vmul.f32 %v734_v54, %v729_v61  ;;  %v5370_v18 = vrot.slane %v605_v36, %v5245_v15 }
 0x3e1   :  { %4160 = vset.pattern.permute.xlu1 %v6895_v1 }
 0x3e2   :  { %v848_v43 = vmax.f32 %v826_v35, %v845_v58  ;;  %v740_v6 = vmax.f32 %v718_v14, %v737_v30  ;;  %1014 = vperm.xlu1 %4160, %v4969_v20   ;;  %v1073_v14 = vpop.permute.xlu0 %1072  ;;  %v1021_v25 = vmul.f32 %v5370_v18, %v5308_v3  ;;  %v6898_v30 = vmov 21  }
 0x3e4   :  { %v870_v54 = vmax.f32 %v848_v43, %v867_v57  ;;  %v769_v11 = vpop.permute.xlu1 %768 }
 0x3e5   :  { %v780_v38 = vmul.f32 %v5298_v59, %v769_v11 }
 0x3e6   :  { %v892_v56 = vmax.f32 %v870_v54, %v889_v31  ;;  %4161 = vset.pattern.permute.xlu1 %v6897_v46  ;;  %v1095_v57 = vpop.permute.xlu0 %1094  ;;  %v5385_v31 = vrot.slane %v605_v36, %v5258_v39 }
 0x3e7   :  { %v783_v37 = vmax.f32 %v761_v52, %v780_v38  ;;  %1054 = vperm.xlu1 %4161, %v4942_v13  }
 0x3e8   :  { %v914_v16 = vmax.f32 %v892_v56, %v911_v2  ;;  %v1065_v38 = vmul.f32 %v5385_v31, %v1051_v47  ;;  %v5389_v2 = vrot.slane %v605_v36, %v5265_v5 }
 0x3e9   :  { %v751_v4 = vpop.permute.xlu1 %750 }
 0x3ea   :  { %v936_v45 = vmax.f32 %v914_v16, %v933_v49  ;;  %v759_v51 = vmul.f32 %v5290_v9, %v751_v4  ;;  %v5395_v49 = vrot.slane %v605_v36, %v5275_v29  ;;  %v1117_v16 = vpop.permute.xlu0 %1116 }
 0x3eb   :  { %4163 = vset.pattern.permute.xlu1 %v6896_v41 }
 0x3ec   :  { %v958_v44 = vmax.f32 %v936_v45, %v955_v26  ;;  %v762_v52 = vmax.f32 %v740_v6, %v759_v51  ;;  %1036 = vperm.xlu1 %4163, %v4969_v20   ;;  %v1109_v47 = vmul.f32 %v5395_v49, %v1095_v57  ;;  %v5400_v26 = vrot.slane %v605_v36, %v5284_v0  ;;  %v4419_v57 = vld [vmem:[%s6718_s1 + $0x38] sm:$0xff] }
 0x3ee   :  { %v980_v9 = vmax.f32 %v958_v44, %v977_v27  ;;  %v791_v61 = vpop.permute.xlu1 %790  ;;  %v1131_v27 = vmul.f32 %v5400_v26, %v1117_v16  ;;  %v4424_v16 = vld [vmem:[%s6718_s1 + $0x158] sm:$0xff] }
 0x3ef   :  { %v802_v58 = vmul.f32 %v5305_v28, %v791_v61  ;;  %v6900_v61 = vmov 23  }
 0x3f0   :  { %v1002_v35 = vmax.f32 %v980_v9, %v999_v24  ;;  %4164 = vset.pattern.permute.xlu1 %v6898_v30 }
 0x3f1   :  { %v805_v43 = vmax.f32 %v783_v37, %v802_v58  ;;  %1076 = vperm.xlu1 %4164, %v4942_v13   ;;  %v1087_v37 = vmul.f32 %v5389_v2, %v1073_v14  ;;  %v6899_v14 = vmov 22  }
 0x3f2   :  { %v1024_v6 = vmax.f32 %v1002_v35, %v1021_v25 }
 0x3f3   :  { %v773_v54 = vpop.permute.xlu1 %772 }
 0x3f4   :  { %v1046_v11 = vmax.f32 %v1024_v6, %v1043_v22  ;;  %v781_v3 = vmul.f32 %v5298_v59, %v773_v54  ;;  %v4420_v22 = vld [vmem:[%s6718_s1 + $0x58] sm:$0xff] }
 0x3f5   :  { %4166 = vset.pattern.permute.xlu1 %v6897_v46 }
 0x3f6   :  { %v1068_v56 = vmax.f32 %v1046_v11, %v1065_v38  ;;  %v784_v21 = vmax.f32 %v762_v52, %v781_v3  ;;  %1058 = vperm.xlu1 %4166, %v4969_v20   ;;  %v6901_v38 = vmov 0  }
 0x3f8   :  { %v1090_v4 = vmax.f32 %v1068_v56, %v1087_v37  ;;  %v813_v45 = vpop.permute.xlu1 %812  ;;  %v4423_v56 = vld [vmem:[%s6718_s1 + $0xf8] sm:$0xff] }
 0x3f9   :  { %v824_v59 = vmul.f32 %v5313_v63, %v813_v45 }
 0x3fa   :  { %v1112_v51 = vmax.f32 %v1090_v4, %v1109_v47  ;;  %4167 = vset.pattern.permute.xlu1 %v6899_v14  ;;  %v4425_v4 = vld [vmem:[%s6718_s1 + $0x178] sm:$0xff] }
 0x3fb   :  { %v5405_v44 = vmax.f32 %v805_v43, %v824_v59  ;;  %1098 = vperm.xlu1 %4167, %v4942_v13   ;;  %v4197_v47 = vpack.i.bf16 %v4425_v4, %v4424_v16 }
 0x3fc   :  { %v1134_v52 = vmax.f32 %v1112_v51, %v1131_v27 }
 0x3fd   :  { %v795_v24 = vpop.permute.xlu1 %794 }
 0x3fe   :  { %v803_v9 = vmul.f32 %v5305_v28, %v795_v24  ;;  %1202 = vmatmul.mubr.f32.vlgmr.msra.gmra.mrb[6].mxu0 %v1134_v52  ;;  %v4418_v28 = vld [vmem:[%s6718_s1 + $0x18] sm:$0xff] }
 0x3ff   :  { %4169 = vset.pattern.permute.xlu1 %v6900_v61  ;;  %1206 = vmatprep.mubr.f32.mxu0 %v4898_v48  ;;  %v4172_v43 = vpack.i.bf16 %v4419_v57, %v4418_v28  ;;  %v4427_v52 = vld [vmem:[%s6718_s1 + $0x1f8] sm:$0xff] }
 0x400   :  { %v806_v36 = vmax.f32 %v784_v21, %v803_v9  ;;  %1120 = vperm.xlu1 %4169, %v4942_v13   ;;  %v6904_v57 = vld [vmem:[#allocation13_spill] sm:$0xff] }
 0x402   :  { %v835_v58 = vpop.permute.xlu1 %834 }
 0x403   :  { %v846_v25 = vmul.f32 %v5318_v17, %v835_v58 }
 0x404   :  { %4170 = vset.pattern.permute.xlu1 %v6899_v14 }
 0x405   :  { %v849_v35 = vmax.f32 %v5405_v44, %v846_v25  ;;  %1102 = vperm.xlu1 %4170, %v4969_v20   ;;  %v4421_v20 = vld [vmem:[%s6718_s1 + $0x78] sm:$0xff]  ;;  %v6903_v25 = vld [vmem:[#allocation11_spill] sm:$0xff] }
 0x406   :  { %v4177_v54 = vpack.i.bf16 %v4421_v20, %v4420_v22  ;;  %v4426_v44 = vld [vmem:[%s6718_s1 + $0x1d8] sm:$0xff] }
 0x407   :  { %v817_v6 = vpop.permute.xlu1 %816  ;;  %v6906_v22 = vld [vmem:[#allocation17_spill] sm:$0xff] }
 0x408   :  { %v825_v13 = vmul.f32 %v5313_v63, %v817_v6  ;;  %v4422_v63 = vld [vmem:[%s6718_s1 + $0xd8] sm:$0xff]  ;;  %v6905_v6 = vld [vmem:[#allocation15_spill] sm:$0xff] }
 0x409   :  { %4173 = vrot.lane.b32.xlu1 %v4172_v43, %s4496_s15  ;;  %v4187_v37 = vpack.i.bf16 %v4423_v56, %v4422_v63 }
 0x40a   :  { %v828_v11 = vmax.f32 %v806_v36, %v825_v13  ;;  %4212 = vset.pattern.permute.xlu1 %v6901_v38  ;;  %v6902_v36 = vld [vmem:[#allocation9_spill] sm:$0xff] }
 0x40c   :  { %v857_v3 = vpop.permute.xlu1 %856 }
 0x40d   :  { %4178 = vrot.lane.b32.xlu1 %v4177_v54, %s4496_s15  ;;  %v868_v4 = vmul.f32 %v5326_v12, %v857_v3 }
 0x411   :  { %v839_v21 = vpop.permute.xlu1 %838  ;;  %4188 = vrot.lane.b32.xlu1 %v4187_v37, %s4496_s15 }
 0x412   :  { %v847_v45 = vmul.f32 %v5318_v17, %v839_v21  ;;  %v4207_v17 = vpack.i.bf16 %v4427_v52, %v4426_v44  ;;  %v871_v44 = vmax.f32 %v849_v35, %v868_v4 }
 0x414   :  { %v850_v59 = vmax.f32 %v828_v11, %v847_v45 }
 0x415   :  { %4198 = vrot.lane.b32.xlu1 %v4197_v47, %s4496_s15 }
 0x416   :  { %v879_v51 = vpop.permute.xlu1 %878 }
 0x417   :  { %v890_v45 = vmul.f32 %v5333_v23, %v879_v51 }
 0x419   :  { %1241 = vrot.lane.b32.xlu1 %v4544_v8, %s4496_s15 }
 0x41b   :  { %v861_v27 = vpop.permute.xlu1 %860 }
 0x41d   :  { %1243 = vrot.lane.b32.xlu1 %v4547_v10, %s4496_s15 }
 0x420   :  { %v901_v24 = vpop.permute.xlu1 %900 }
 0x421   :  { %4208 = vrot.lane.b32.xlu1 %v4207_v17, %s4496_s15  ;;  %v912_v52 = vmul.f32 %v5339_v60, %v901_v24  ;;  %v869_v17 = vmul.f32 %v5326_v12, %v861_v27 }
 0x423   :  { %v872_v10 = vmax.f32 %v850_v59, %v869_v17 }
 0x425   :  { %v883_v9 = vpop.permute.xlu1 %882  ;;  %1249 = vrot.lane.b32.xlu1 %v4570_v19, %s4496_s15 }
 0x429   :  { %1253 = vrot.lane.b32.xlu1 %v6902_v36, %s4496_s15 }
 0x42a   :  { %v923_v58 = vpop.permute.xlu1 %922 }
 0x42d   :  { %1257 = vrot.lane.b32.xlu1 %v6903_v25, %s4496_s15  ;;  %v891_v25 = vmul.f32 %v5333_v23, %v883_v9 }
 0x42f   :  { %v905_v28 = vpop.permute.xlu1 %904  ;;  %v894_v24 = vmax.f32 %v872_v10, %v891_v25 }
 0x430   :  { %v913_v3 = vmul.f32 %v5339_v60, %v905_v28 }
 0x431   :  { %1261 = vrot.lane.b32.xlu1 %v6904_v57, %s4496_s15  ;;  %v934_v57 = vmul.f32 %v5345_v50, %v923_v58 }
 0x432   :  { %v916_v58 = vmax.f32 %v894_v24, %v913_v3 }
 0x434   :  { %v945_v43 = vpop.permute.xlu1 %944 }
 0x435   :  { %1265 = vrot.lane.b32.xlu1 %v6905_v6, %s4496_s15  ;;  %v893_v6 = vmax.f32 %v871_v44, %v890_v45  ;;  %v956_v19 = vmul.f32 %v5351_v7, %v945_v43 }
 0x437   :  { %v915_v36 = vmax.f32 %v893_v6, %v912_v52 }
 0x439   :  { %v927_v13 = vpop.permute.xlu1 %926  ;;  %1269 = vrot.lane.b32.xlu1 %v6906_v22, %s4496_s15  ;;  %v1081_v22 = vpop.permute.xlu0 %1080  ;;  %v937_v8 = vmax.f32 %v915_v36, %v934_v57 }
 0x43a   :  { %v935_v12 = vmul.f32 %v5345_v50, %v927_v13 }
 0x43b   :  { %v959_v4 = vmax.f32 %v937_v8, %v956_v19 }
 0x43c   :  { %v938_v59 = vmax.f32 %v916_v58, %v935_v12  ;;  %v6907_v12 = vld [vmem:[#allocation33_spill] sm:$0xff] }
 0x43d   :  { %v1125_v27 = vpop.permute.xlu0 %1124 }
 0x43e   :  { %v967_v20 = vpop.permute.xlu1 %966 }
 0x43f   :  { %v978_v35 = vmul.f32 %v5358_v34, %v967_v20 }
 0x441   :  { %v981_v9 = vmax.f32 %v959_v4, %v978_v35  ;;  %v4184_v10 = vpop.permute.xlu0 %4183 }
 0x443   :  { %v949_v54 = vpop.permute.xlu1 %948 }
 0x444   :  { %v957_v23 = vmul.f32 %v5351_v7, %v949_v54 }
 0x446   :  { %v960_v25 = vmax.f32 %v938_v59, %v957_v23 }
 0x448   :  { %v989_v11 = vpop.permute.xlu1 %988 }
 0x449   :  { %v1000_v45 = vmul.f32 %v5363_v32, %v989_v11 }
 0x44b   :  { %v1003_v28 = vmax.f32 %v981_v9, %v1000_v45 }
 0x44d   :  { %v971_v63 = vpop.permute.xlu1 %970 }
 0x44e   :  { %v979_v60 = vmul.f32 %v5358_v34, %v971_v63 }
 0x450   :  { %v982_v6 = vmax.f32 %v960_v25, %v979_v60  ;;  %v6909_v25 = vmov 0.0|0.0  }
 0x452   :  { %v1011_v56 = vpop.permute.xlu1 %1010 }
 0x453   :  { %v1022_v43 = vmul.f32 %v5370_v18, %v1011_v56 }
 0x455   :  { %v1025_v8 = vmax.f32 %v1003_v28, %v1022_v43  ;;  %v4186_v28 = vunpack.i.h.bf16 %v4184_v10 }
 0x457   :  { %v993_v37 = vpop.permute.xlu1 %992 }
 0x458   :  { %v1001_v50 = vmul.f32 %v5363_v32, %v993_v37 }
 0x45a   :  { %v1004_v11 = vmax.f32 %v982_v6, %v1001_v50 }
 0x45c   :  { %v1033_v21 = vpop.permute.xlu1 %1032 }
 0x45d   :  { %v1044_v57 = vmul.f32 %v5376_v53, %v1033_v21  ;;  %v4194_v21 = vpop.permute.xlu0 %4193 }
 0x45f   :  { %v1047_v13 = vmax.f32 %v1025_v8, %v1044_v57 }
 0x461   :  { %v1015_v16 = vpop.permute.xlu1 %1014  ;;  %v1240_v35 = vpop.permute.xlu0 %1239 }
 0x462   :  { %v1023_v7 = vmul.f32 %v5370_v18, %v1015_v16 }
 0x464   :  { %v1026_v44 = vmax.f32 %v1004_v11, %v1023_v7 }
 0x465   :  { %v4204_v58 = vpop.permute.xlu0 %4203 }
 0x466   :  { %v1055_v47 = vpop.permute.xlu1 %1054 }
 0x467   :  { %v1066_v19 = vmul.f32 %v5385_v31, %v1055_v47 }
 0x469   :  { %v1069_v63 = vmax.f32 %v1047_v13, %v1066_v19  ;;  %v1246_v57 = vpop.permute.xlu0 %1245 }
 0x46b   :  { %v1037_v48 = vpop.permute.xlu1 %1036 }
 0x46c   :  { %v1045_v34 = vmul.f32 %v5376_v53, %v1037_v48 }
 0x46d   :  { %v1248_v7 = vpop.permute.xlu0 %1247 }
 0x46e   :  { %v1048_v52 = vmax.f32 %v1026_v44, %v1045_v34 }
 0x470   :  { %v1077_v51 = vpop.permute.xlu1 %1076 }
 0x471   :  { %v1088_v20 = vmul.f32 %v5389_v2, %v1077_v51  ;;  %v1089_v51 = vmul.f32 %v5389_v2, %v1081_v22 }
 0x473   :  { %v1091_v37 = vmax.f32 %v1069_v63, %v1088_v20  ;;  %v4196_v20 = vunpack.i.h.bf16 %v4194_v21 }
 0x475   :  { %v1059_v36 = vpop.permute.xlu1 %1058 }
 0x476   :  { %v1067_v32 = vmul.f32 %v5385_v31, %v1059_v36  ;;  %v1133_v31 = vmul.f32 %v5400_v26, %v1125_v27  ;;  %v6908_v36 = vmov 0.0  }
 0x478   :  { %v1070_v16 = vmax.f32 %v1048_v52, %v1067_v32  ;;  %v4206_v52 = vunpack.i.h.bf16 %v4204_v58 }
 0x47a   :  { %v1099_v54 = vpop.permute.xlu1 %1098  ;;  %v1092_v53 = vmax.f32 %v1070_v16, %v1089_v51  ;;  %v1292_v16 = vsel %vm106_vm0, %v1246_v57, 0.0 }
 0x47b   :  { %v1110_v56 = vmul.f32 %v5395_v49, %v1099_v54  ;;  %v4195_v54 = vunpack.i.l.bf16 %v4194_v21  ;;  %v4205_v21 = vunpack.i.l.bf16 %v4204_v58 }
 0x47d   :  { %v1113_v17 = vmax.f32 %v1091_v37, %v1110_v56  ;;  %v3882_v34 = vpack.c.bf16 %v4196_v20, %v4195_v54  ;;  %v1252_v37 = vpop.permute.xlu0 %1251 }
 0x47f   :  { %v1121_v47 = vpop.permute.xlu1 %1120 }
 0x480   :  { %v1132_v18 = vmul.f32 %v5400_v26, %v1121_v47 }
 0x482   :  { %v1135_v3 = vmax.f32 %v1113_v17, %v1132_v18 }
 0x484   :  { %1207 = vmatmul.mubr.f32.gmra.mrb[8].mxu0 %v1135_v3  ;;  %v1103_v48 = vpop.permute.xlu1 %1102 }
 0x485   :  { %v1111_v24 = vmul.f32 %v5395_v49, %v1103_v48  ;;  %1211 = vmatprep.mubr.f32.mxu0 %v6907_v12  ;;  %v4185_v49 = vunpack.i.l.bf16 %v4184_v10  ;;  %v1287_v10 = vsel %vm106_vm0, %v1240_v35, 0.0  ;;  %v1294_v35 = vsel %vm106_vm0, %v1248_v7, 0.0 }
 0x487   :  { %v1114_v4 = vmax.f32 %v1092_v53, %v1111_v24  ;;  %v3876_v50 = vpack.c.bf16 %v4186_v28, %v4185_v49  ;;  %v1256_v53 = vpop.permute.xlu0 %1255  ;;  %v3888_v24 = vpack.c.bf16 %v4206_v52, %v4205_v21 }
 0x488   :  { %v4174_v45 = vpop.permute.xlu1 %4173  ;;  %v1302_v49 = vsel %vm106_vm0, %v1256_v53, 0.0 }
 0x489   :  { %v4176_v23 = vunpack.i.h.bf16 %v4174_v45  ;;  %v4175_v9 = vunpack.i.l.bf16 %v4174_v45  ;;  %v1136_v43 = vmax.f32 %v1114_v4, %v1133_v31 }
 0x48b   :  { %v3870_v59 = vpack.c.bf16 %v4176_v23, %v4175_v9  ;;  %1212 = vmatmul.mubr.f32.gmra.mrb[10].mxu0 %v1136_v43  ;;  %v1298_v43 = vsel %vm106_vm0, %v1252_v37, 0.0 }
 0x48c   :  { %v4179_v60 = vpop.permute.xlu1 %4178  ;;  %3669 = vmatprep.mubr.msk.f32.mxu0 %vm4470_vm1, %v6908_v36 }
 0x48d   :  { %v4181_v2 = vunpack.i.h.bf16 %v4179_v60  ;;  %v4180_v22 = vunpack.i.l.bf16 %v4179_v60  ;;  %3871 = vmatpush3.bf16.msra.mxu1 %v3870_v59  ;;  %v1260_v60 = vpop.permute.xlu0 %1259 }
 0x48e   :  { %3872 = vmatprep.subr.bf16.mxu1 %v6909_v25 }
 0x48f   :  { %v3873_v26 = vpack.c.bf16 %v4181_v2, %v4180_v22 }
 0x490   :  { %v4189_v27 = vpop.permute.xlu1 %4188 }
 0x491   :  { %v4191_v8 = vunpack.i.h.bf16 %v4189_v27  ;;  %v4190_v19 = vunpack.i.l.bf16 %v4189_v27  ;;  %3874 = vmatpush3.bf16.msra.mxu1 %v3873_v26 }
 0x492   :  { %3875 = vmatprep.subr.bf16.mxu1 %v6909_v25 }
 0x493   :  { %v3879_v13 = vpack.c.bf16 %v4191_v8, %v4190_v19  ;;  %v1306_v19 = vsel %vm106_vm0, %v1260_v60, 0.0  ;;  %v6911_v60 = vld [vmem:[#allocation31_spill] sm:$0xff] }
 0x494   :  { %v4199_v6 = vpop.permute.xlu1 %4198 }
 0x495   :  { %3877 = vmatpush3.bf16.msra.mxu1 %v3876_v50  ;;  %v4201_v63 = vunpack.i.h.bf16 %v4199_v6  ;;  %v4200_v56 = vunpack.i.l.bf16 %v4199_v6  ;;  %v1264_v50 = vpop.permute.xlu0 %1263 }
 0x496   :  { %3878 = vmatprep.subr.bf16.mxu1 %v6909_v25  ;;  %v1310_v54 = vsel %vm106_vm0, %v1264_v50, 0.0 }
 0x497   :  { %v3885_v17 = vpack.c.bf16 %v4201_v63, %v4200_v56 }
 0x498   :  { %v1242_v11 = vpop.permute.xlu1 %1241 }
 0x499   :  { %v1288_v44 = vsel %vm106_vm0, %v1242_v11, 0.0  ;;  %3880 = vmatpush3.bf16.msra.mxu1 %v3879_v13  ;;  %v1268_v11 = vpop.permute.xlu0 %1267 }
 0x49a   :  { %v1289_v32 = vadd.f32 %v1288_v44, %v1287_v10  ;;  %3881 = vmatprep.subr.bf16.mxu1 %v6909_v25  ;;  %v1314_v44 = vsel %vm106_vm0, %v1268_v11, 0.0 }
 0x49c   :  { %v1244_v47 = vpop.permute.xlu1 %1243 }
 0x49d   :  { %v1290_v18 = vsel %vm106_vm0, %v1244_v47, 0.0  ;;  %3883 = vmatpush3.bf16.msra.mxu1 %v3882_v34 }
 0x49e   :  { %v1291_v3 = vadd.f32 %v1290_v18, %v1289_v32  ;;  %3884 = vmatprep.subr.bf16.mxu1 %v6909_v25 }
 0x4a0   :  { %v1293_v51 = vadd.f32 %v1292_v16, %v1291_v3  ;;  %v4209_v48 = vpop.permute.xlu1 %4208 }
 0x4a1   :  { %v4211_v31 = vunpack.i.h.bf16 %v4209_v48  ;;  %v4210_v4 = vunpack.i.l.bf16 %v4209_v48  ;;  %3886 = vmatpush3.bf16.msra.mxu1 %v3885_v17 }
 0x4a2   :  { %v1295_v45 = vadd.f32 %v1294_v35, %v1293_v51  ;;  %3887 = vmatprep.subr.bf16.mxu1 %v6909_v25  ;;  %v6910_v35 = vld [vmem:[#allocation28_spill] sm:$0xff] }
 0x4a3   :  { %v3891_v23 = vpack.c.bf16 %v4211_v31, %v4210_v4 }
 0x4a4   :  { %v1250_v58 = vpop.permute.xlu1 %1249 }
 0x4a5   :  { %v1296_v9 = vsel %vm106_vm0, %v1250_v58, 0.0  ;;  %3889 = vmatpush3.bf16.msra.mxu1 %v3888_v24 }
 0x4a6   :  { %v1297_v59 = vadd.f32 %v1296_v9, %v1295_v45  ;;  %3890 = vmatprep.subr.bf16.mxu1 %v6909_v25 }
 0x4a8   :  { %v1299_v2 = vadd.f32 %v1298_v43, %v1297_v59  ;;  %v1254_v22 = vpop.permute.xlu1 %1253 }
 0x4a9   :  { %v1300_v28 = vsel %vm106_vm0, %v1254_v22, 0.0  ;;  %3892 = vmatpush3.bf16.msra.mxu1 %v3891_v23 }
 0x4aa   :  { %v1301_v57 = vadd.f32 %v1300_v28, %v1299_v2 }
 0x4ac   :  { %v1303_v26 = vadd.f32 %v1302_v49, %v1301_v57  ;;  %v1258_v27 = vpop.permute.xlu1 %1257 }
 0x4ad   :  { %v1304_v8 = vsel %vm106_vm0, %v1258_v27, 0.0 }
 0x4ae   :  { %v1305_v6 = vadd.f32 %v1304_v8, %v1303_v26  ;;  %v6912_v26 = vld [vmem:[#allocation30_spill] sm:$0xff] }
 0x4b0   :  { %v1307_v7 = vadd.f32 %v1306_v19, %v1305_v6  ;;  %v1262_v13 = vpop.permute.xlu1 %1261 }
 0x4b1   :  { %v1308_v20 = vsel %vm106_vm0, %v1262_v13, 0.0 }
 0x4b2   :  { %v1309_v10 = vadd.f32 %v1308_v20, %v1307_v7 }
 0x4b4   :  { %v1311_v34 = vadd.f32 %v1310_v54, %v1309_v10  ;;  %v1266_v63 = vpop.permute.xlu1 %1265 }
 0x4b5   :  { %v1312_v56 = vsel %vm106_vm0, %v1266_v63, 0.0 }
 0x4b6   :  { %v1313_v32 = vadd.f32 %v1312_v56, %v1311_v34 }
 0x4b8   :  { %v1315_v37 = vadd.f32 %v1314_v44, %v1313_v32  ;;  %v1270_v52 = vpop.permute.xlu1 %1269 }
 0x4b9   :  { %v1316_v47 = vsel %vm106_vm0, %v1270_v52, 0.0 }
 0x4ba   :  { %v1317_v17 = vadd.f32 %v1316_v47, %v1315_v37  ;;  %v6913_v37 = vmov 2  }
 0x4bc   :  { %1318 = vadd.xlane.f32.xlu0 %v1317_v17  ;;  %v6914_v17 = vld [vmem:[#allocation22_spill] sm:$0xff] }
 0x4d1   :  { %v3338_v21 = vpop.f32.mrb[6].mxu0 }
 0x4d2   :  { %v3339_v18 = vpop.f32.mrb[7].mxu0 }
 0x4d3   :  { %v3340_v16 = vadd.f32 %v3339_v18, %v3338_v21  ;;  %v6915_v18 = vld [vmem:[#allocation23_spill] sm:$0xff] }
 0x4d5   :  { %v1217_v3 = vmax.f32 %v3340_v16, 0.0 }
 0x4d7   :  { %v5523_v51 = vmul.f32 %v1217_v3, %v6910_v35 }
 0x4d9   :  { %3629 = vmatmul.mubr.f32.vlgmr.msra.gmra.mrb[6].mxu1 %v5523_v51 }
 0x4da   :  { %3631 = vmatprep.mubr.msk.f32.mxu1 %vm4470_vm1, %v6908_v36 }
 0x549   :  { %v1319_v48 = vpop.xlane.xlu0 %1318 }
 0x54a   :  { %v1320_v53 = vrot.slane %v1319_v48, 4 }
 0x54c   :  { %v1321_v24 = vadd.f32 %v1320_v53, %v1319_v48 }
 0x54e   :  { %v1322_v31 = vrot.slane %v1321_v24, 2 }
 0x550   :  { %v1323_v4 = vadd.f32 %v1322_v31, %v1321_v24  ;;  %v6916_v24 = vld [vmem:[#allocation24_spill] sm:$0xff] }
 0x552   :  { %v1324_v45 = vrot.slane %v1323_v4, 1 }
 0x554   :  { %v1325_v58 = vadd.f32 %v1324_v45, %v1323_v4 }
 0x556   :  { %4057 = vpush %v1325_v58 }
 0x557   :  { %v3341_v23 = vpop.f32.mrb[8].mxu0 }
 0x558   :  { %v3342_v9 = vpop.f32.mrb[9].mxu0 }
 0x559   :  { %v3343_v43 = vadd.f32 %v3342_v9, %v3341_v23 }
 0x55b   :  { %v1218_v59 = vmax.f32 %v3343_v43, 0.0 }
 0x55d   :  { %v5529_v2 = vmul.f32 %v1218_v59, %v6911_v60 }
 0x55e   :  { %v3344_v22 = vpop.f32.mrb[10].mxu0 }
 0x55f   :  { %v3345_v28 = vpop.f32.mrb[11].mxu0  ;;  %3632 = vmatmul.mubr.f32.gmra.mrb[8].mxu1 %v5529_v2 }
 0x560   :  { %v3346_v49 = vadd.f32 %v3345_v28, %v3344_v22  ;;  %3634 = vmatprep.mubr.msk.f32.mxu1 %vm4470_vm1, %v6908_v36 }
 0x562   :  { %v1219_v57 = vmax.f32 %v3346_v49, 0.0 }
 0x564   :  { %v5535_v27 = vmul.f32 %v1219_v57, %v6912_v26 }
 0x566   :  { %3635 = vmatmul.mubr.f32.gmra.mrb[10].mxu1 %v5535_v27 }
 0x587   :  { %s4058_s12 = spop %4057 }
 0x588   :  { %v1327_v50 = vstv %s4058_s12 }
 0x589   :  { %4397 = vrsqrt.f32 %v1327_v50 }
 0x593   :  { %v4398_v8 = vpop.eup %4397 }
 0x594   :  { %4059 = vpush %v4398_v8  ;;  %v4428_v8 = vld [vmem:[%s6719_s0 + $0x30] sm:$0xff] }
 0x5ac   :  { %v1460_v19 = vpop.f32.mrb[6].mxu1 }
 0x5ad   :  { %v3630_v6 = vpop.f32.mrb[7].mxu1 }
 0x5c5   :  { %s4060_s13 = spop %4059 }
 0x5c6   :  { %v1474_v7 = vstv %s4060_s13 }
 0x5c7   :  { %v1475_v13 = vmul.f32 %v1474_v7, %v1460_v19 }
 0x5c9   :  { %4399 = vtanh.f32 %v1475_v13  ;;  %v6920_v13 = vld [vmem:[#allocation34_spill] sm:$0xff] }
 0x5d3   :  { %v4400_v20 = vpop.eup %4399 }
 0x5d4   :  { %1483 = vperm.xlu1 %4212, %v4400_v20  }
 0x632   :  { %v1465_v54 = vpop.f32.mrb[8].mxu1 }
 0x633   :  { %v1476_v10 = vmul.f32 %v1474_v7, %v1465_v54  ;;  %v3633_v11 = vpop.f32.mrb[9].mxu1  ;;  %v4429_v54 = vld [vmem:[%s6719_s0 + $0x10] sm:$0xff] }
 0x635   :  { %4401 = vtanh.f32 %v1476_v10 }
 0x639   :  { %v1470_v34 = vpop.f32.mrb[10].mxu1 }
 0x63a   :  { %v1477_v63 = vmul.f32 %v1474_v7, %v1470_v34  ;;  %v3636_v56 = vpop.f32.mrb[11].mxu1 }
 0x63b   :  { %v4430_v56 = vld [vmem:[%s6719_s0 + $0x50] sm:$0xff] }
 0x63c   :  { %4403 = vtanh.f32 %v1477_v63 }
 0x63f   :  { %v4402_v44 = vpop.eup %4401 }
 0x640   :  { %1488 = vperm.xlu1 %4212, %v4402_v44  }
 0x646   :  { %v4404_v32 = vpop.eup %4403 }
 0x647   :  { %1493 = vperm.xlu1 %4212, %v4404_v32  }
 0x64b   :  { %4214 = vset.pattern.permute.xlu1 %v6913_v37 }
 0x653   :  { %v5539_v52 = vpop.permute.xlu1 %1483 }
 0x654   :  { %v1496_v16 = vmul.f32 %v6915_v18, %v5539_v52 }
 0x656   :  { %v1499_v53 = vsel %vm78_vm5, %v1496_v16, 0.0 }
 0x6bf   :  { %v5541_v47 = vpop.permute.xlu1 %1488 }
 0x6c0   :  { %v1497_v21 = vmul.f32 %v6914_v17, %v5541_v47 }
 0x6c2   :  { %v1500_v3 = vsel %vm78_vm5, %v1497_v21, 0.0 }
 0x6c3   :  { %v1501_v4 = vadd.f32 %v1500_v3, %v1499_v53  ;;  %v1709_v3 = vld [vmem:[%s6718_s1 + $0x8] sm:$0xff] }
 0x6c4   :  { %v1710_v53 = vld [vmem:[%s6718_s1 + $0x28] sm:$0xff] }
 0x6c6   :  { %v5548_v48 = vpop.permute.xlu1 %1493 }
 0x6c7   :  { %v1498_v31 = vmul.f32 %v6916_v24, %v5548_v48 }
 0x6c9   :  { %v1502_v45 = vsel %vm78_vm5, %v1498_v31, 0.0  ;;  %v1711_v31 = vld [vmem:[%s6718_s1 + $0x48] sm:$0xff] }
 0x6ca   :  { %v1503_v58 = vadd.f32 %v1502_v45, %v1501_v4  ;;  %v3894_v4 = vpack.c.bf16 %v1710_v53, %v1709_v3  ;;  %v1712_v45 = vld [vmem:[%s6718_s1 + $0x68] sm:$0xff] }
 0x6cc   :  { %v1504_v23 = vrot.slane %v1503_v58, 4  ;;  %3895 = vmatpush3.bf16.msra.mxu0 %v3894_v4  ;;  %v6923_v4 = vld [vmem:[#allocation25_spill] sm:$0xff] }
 0x6cd   :  { %3896 = vmatprep.subr.bf16.mxu0 %v6909_v25 }
 0x6ce   :  { %v1505_v9 = vadd.f32 %v1504_v23, %v1503_v58  ;;  %v3897_v58 = vpack.c.bf16 %v1712_v45, %v1711_v31  ;;  %v1713_v23 = vld [vmem:[%s6718_s1 + $0x88] sm:$0xff] }
 0x6d0   :  { %v1506_v43 = vrot.slane %v1505_v9, 2  ;;  %3898 = vmatpush3.bf16.msra.mxu0 %v3897_v58 }
 0x6d1   :  { %3899 = vmatprep.subr.bf16.mxu0 %v6909_v25 }
 0x6d2   :  { %v1507_v59 = vadd.f32 %v1506_v43, %v1505_v9  ;;  %v1714_v9 = vld [vmem:[%s6718_s1 + $0xa8] sm:$0xff] }
 0x6d3   :  { %v3900_v43 = vpack.c.bf16 %v1714_v9, %v1713_v23  ;;  %v6925_v23 = vld [vmem:[#allocation27_spill] sm:$0xff] }
 0x6d4   :  { %v1508_v22 = vrot.slane %v1507_v59, 1 }
 0x6d5   :  { %3901 = vmatpush3.bf16.msra.mxu0 %v3900_v43 }
 0x6d6   :  { %v1509_v28 = vadd.f32 %v1508_v22, %v1507_v59  ;;  %v1715_v59 = vld [vmem:[%s6718_s1 + $0xc8] sm:$0xff]  ;;  %3902 = vmatprep.subr.bf16.mxu0 %v6909_v25 }
 0x6d7   :  { %v1716_v22 = vld [vmem:[%s6718_s1 + $0xe8] sm:$0xff] }
 0x6d8   :  { %vm1511_vm13 = vcmp.gt.f32.partialorder %v1509_v28, %v5541_v47  ;;  %vm1514_vm14 = vcmp.eq.f32.partialorder %v1509_v28, %v5541_v47  ;;  %vm1513_vm2 = vcmp.eq.f32.partialorder %v1509_v28, %v5539_v52  ;;  %vm1510_vm4 = vcmp.gt.f32.partialorder %v1509_v28, %v5539_v52 }
 0x6d9   :  { %vm1517_vm3 = vmand %vm1514_vm14, %vm273_vm6  ;;  %vm1515_vm8 = vcmp.eq.f32.partialorder %v1509_v28, %v5548_v48  ;;  %vm1512_vm11 = vcmp.gt.f32.partialorder %v1509_v28, %v5548_v48  ;;  %v3903_v28 = vpack.c.bf16 %v1716_v22, %v1715_v59  ;;  %v1584_v59 = vmul.f32 %v5539_v52, %v5523_v51 }
 0x6da   :  { %vm1520_vm7 = vmor %vm1511_vm13, %vm1517_vm3 }
 0x6db   :  { %v3247_v50 = vsel %vm1520_vm7, 1.0, %v6908_v36  ;;  %vm1516_vm9 = vmand %vm1513_vm2, %vm272_vm10  ;;  %3904 = vmatpush3.bf16.msra.mxu0 %v3903_v28 }
 0x6dc   :  { %v1529_v19 = vmul.f32 %v4428_v8, %v3247_v50  ;;  %vm1519_vm12 = vmor %vm1510_vm4, %vm1516_vm9  ;;  %v1717_v50 = vld [vmem:[%s6718_s1 + $0x108] sm:$0xff]  ;;  %3905 = vmatprep.subr.bf16.mxu0 %v6909_v25 }
 0x6dd   :  { %v3246_v6 = vsel %vm1519_vm12, 1.0, %v6908_v36  ;;  %vm1518_vm13 = vmand %vm1515_vm8, %vm274_vm15  ;;  %v1718_v8 = vld [vmem:[%s6718_s1 + $0x128] sm:$0xff] }
 0x6de   :  { %v1532_v20 = vmul.f32 %v1529_v19, %v6920_v13  ;;  %v1528_v10 = vmul.f32 %v4429_v54, %v3246_v6  ;;  %vm1521_vm14 = vmor %vm1512_vm11, %vm1518_vm13  ;;  %v3906_v19 = vpack.c.bf16 %v1718_v8, %v1717_v50  ;;  %v1719_v6 = vld [vmem:[%s6718_s1 + $0x148] sm:$0xff] }
 0x6df   :  { %v3248_v11 = vsel %vm1521_vm14, 1.0, %v6908_v36  ;;  %v1721_v54 = vld [vmem:[%s6718_s1 + $0x188] sm:$0xff] }
 0x6e0   :  { %v1537_v34 = vsel %vm78_vm5, %v1532_v20, 0.0  ;;  %v1531_v63 = vmul.f32 %v1528_v10, %v6920_v13  ;;  %v1530_v44 = vmul.f32 %v4430_v56, %v3248_v11  ;;  %3907 = vmatpush3.bf16.msra.mxu0 %v3906_v19  ;;  %v1722_v10 = vld [vmem:[%s6718_s1 + $0x1a8] sm:$0xff] }
 0x6e1   :  { %1538 = vadd.xlane.f32.xlu0 %v1537_v34  ;;  %3908 = vmatprep.subr.bf16.mxu0 %v6909_v25  ;;  %v3912_v11 = vpack.c.bf16 %v1722_v10, %v1721_v54  ;;  %v1723_v34 = vld [vmem:[%s6718_s1 + $0x1c8] sm:$0xff] }
 0x6e2   :  { %v1534_v32 = vsel %vm78_vm5, %v1531_v63, 0.0  ;;  %v1533_v21 = vmul.f32 %v1530_v44, %v6920_v13  ;;  %v1720_v13 = vld [vmem:[%s6718_s1 + $0x168] sm:$0xff] }
 0x6e3   :  { %1535 = vadd.xlane.f32.xlu1 %v1534_v32  ;;  %v3909_v20 = vpack.c.bf16 %v1720_v13, %v1719_v6  ;;  %v1724_v63 = vld [vmem:[%s6718_s1 + $0x1e8] sm:$0xff]  ;;  %v1585_v13 = vmul.f32 %v5541_v47, %v5529_v2  ;;  %v1586_v2 = vmul.f32 %v5548_v48, %v5535_v27 }
 0x6e4   :  { %v1540_v16 = vsel %vm78_vm5, %v1533_v21, 0.0  ;;  %v3915_v56 = vpack.c.bf16 %v1724_v63, %v1723_v34 }
 0x6e5   :  { %1541 = vadd.xlane.f32.xlu0 %v1540_v16  ;;  %3910 = vmatpush3.bf16.msra.mxu0 %v3909_v20  ;;  %v6921_v16 = vld [vmem:[#allocation26_spill] sm:$0xff] }
 0x6e6   :  { %3911 = vmatprep.subr.bf16.mxu0 %v6909_v25 }
 0x6e9   :  { %3913 = vmatpush3.bf16.msra.mxu0 %v3912_v11 }
 0x6ea   :  { %3914 = vmatprep.subr.bf16.mxu0 %v6909_v25 }
 0x6ed   :  { %3916 = vmatpush3.bf16.msra.mxu0 %v3915_v56 }
 0x6ee   :  { %3949 = vmatprep.subr.bf16.mxu0 %v6909_v25 }
 0x76e   :  { %v1539_v44 = vpop.xlane.xlu0 %1538 }
 0x76f   :  { %vm1544_vm2 = vcmp.lt.f32.partialorder %v1539_v44, 7.0 }
 0x770   :  { %v3250_v32 = vsel %vm1544_vm2, 1.0, %v6908_v36  ;;  %v1536_v21 = vpop.xlane.xlu1 %1535 }
 0x771   :  { %v5645_v3 = vmul.f32 %v3250_v32, %v6921_v16  ;;  %vm1543_vm3 = vcmp.lt.f32.partialorder %v1536_v21, 7.0  ;;  %v6933_v21 = vld [vmem:[#allocation35_spill] sm:$0xff] }
 0x772   :  { %v3249_v53 = vsel %vm1543_vm3, 1.0, %v6908_v36  ;;  %v1542_v31 = vpop.xlane.xlu0 %1541 }
 0x773   :  { %6922 = vst [vmem:[#allocation34_spill] sm:$0xff] %v5645_v3  ;;  %v5649_v45 = vmul.f32 %v3249_v53, %v6923_v4  ;;  %vm1545_vm4 = vcmp.lt.f32.partialorder %v1542_v31, 7.0  ;;  %1562 = vperm.xlu1 %4214, %v5645_v3   ;;  %v6935_v31 = vld [vmem:[#allocation36_spill] sm:$0xff] }
 0x774   :  { %v3251_v58 = vsel %vm1545_vm4, 1.0, %v6908_v36 }
 0x775   :  { %6924 = vst [vmem:[#allocation26_spill] sm:$0xff] %v5649_v45  ;;  %v5654_v9 = vmul.f32 %v3251_v58, %v6925_v23  ;;  %1557 = vperm.xlu0 %4213, %v5649_v45   ;;  %v6936_v23 = vmov 3  }
 0x777   :  { %6926 = vst [vmem:[#allocation25_spill] sm:$0xff] %v5654_v9  ;;  %1567 = vperm.xlu1 %4214, %v5654_v9   ;;  %v6959_v9 = vld [vmem:[#allocation16_spill] sm:$0xff] }
 0x77b   :  { %4215 = vset.pattern.permute.xlu1 %v6901_v38 }
 0x7f2   :  { %v5659_v43 = vpop.permute.xlu1 %1562 }
 0x7f3   :  { %6927 = vst [vmem:[#allocation27_spill] sm:$0xff] %v5659_v43  ;;  %v1571_v22 = vmul.f32 %v6914_v17, %v5659_v43  ;;  %v5685_v54 = vmul.f32 %v1585_v13, %v5659_v43  ;;  %v1591_v4 = vmul.f32 %v5659_v43, %v6935_v31  ;;  %v1742_v31 = vld [vmem:[%s6720_s2 + $0x188] sm:$0xff] }
 0x7f4   :  { %v5665_v28 = vpop.permute.xlu0 %1557 }
 0x7f5   :  { %6928 = vst [vmem:[#allocation38_spill] sm:$0xff] %v5665_v28  ;;  %v1570_v50 = vmul.f32 %v6915_v18, %v5665_v28  ;;  %v5670_v8 = vmul.f32 %v1584_v59, %v5665_v28  ;;  %v1574_v19 = vsel %vm78_vm5, %v1571_v22, 0.0  ;;  %6931 = vst [vmem:[#allocation41_spill] sm:$0xff] %v5685_v54  ;;  %v1590_v27 = vmul.f32 %v5665_v28, %v6933_v21 }
 0x7f6   :  { %v5673_v6 = vpop.permute.xlu1 %1567  ;;  %v6937_v59 = vmov 1   ;;  %v6949_v21 = vmov 14  }
 0x7f7   :  { %6929 = vst [vmem:[#allocation39_spill] sm:$0xff] %v5670_v8  ;;  %6930 = vst [vmem:[#allocation40_spill] sm:$0xff] %v5673_v6  ;;  %v1573_v51 = vsel %vm78_vm5, %v1570_v50, 0.0  ;;  %3670 = vmatmul.mubr.f32.vlgmr.msra.gmra.mrb[12].mxu0 %v5670_v8  ;;  %2443 = vmatprep.mubr.f32.mxu1 %v5670_v8  ;;  %v1572_v52 = vmul.f32 %v6916_v24, %v5673_v6  ;;  %v5694_v34 = vmul.f32 %v1586_v2, %v5673_v6  ;;  %v6938_v50 = vmov 4   ;;  %v6956_v8 = vld [vmem:[#allocation10_spill] sm:$0xff] }
 0x7f8   :  { %v1575_v20 = vadd.f32 %v1574_v19, %v1573_v51  ;;  %3672 = vmatprep.mubr.msk.f32.mxu0 %vm4470_vm1, %v6908_v36  ;;  %v6939_v19 = vld [vmem:[#allocation37_spill] sm:$0xff]  ;;  %v6943_v2 = vmov 8  }
 0x7f9   :  { %v1576_v10 = vsel %vm78_vm5, %v1572_v52, 0.0  ;;  %6932 = vst [vmem:[#allocation42_spill] sm:$0xff] %v5694_v34  ;;  %v1592_v13 = vmul.f32 %v5673_v6, %v6939_v19  ;;  %v6940_v52 = vmov 5  }
 0x7fa   :  { %v1577_v11 = vadd.f32 %v1576_v10, %v1575_v20  ;;  %v6941_v10 = vmov 6  }
 0x7fb   :  { %3673 = vmatmul.mubr.f32.gmra.mrb[14].mxu0 %v5685_v54 }
 0x7fc   :  { %v1578_v47 = vrot.slane %v1577_v11, 4  ;;  %3675 = vmatprep.mubr.msk.f32.mxu0 %vm4470_vm1, %v6908_v36 }
 0x7fe   :  { %v1579_v63 = vadd.f32 %v1578_v47, %v1577_v11  ;;  %v6942_v11 = vmov 7   ;;  %v6944_v47 = vmov 9  }
 0x7ff   :  { %3676 = vmatmul.mubr.f32.gmra.mrb[16].mxu0 %v5694_v34 }
 0x800   :  { %v1580_v56 = vrot.slane %v1579_v63, 2  ;;  %3710 = vmatprep.mubr.msk.f32.mxu0 %vm4470_vm1, %v6908_v36 }
 0x802   :  { %v1581_v44 = vadd.f32 %v1580_v56, %v1579_v63  ;;  %v6945_v63 = vmov 10   ;;  %v6946_v56 = vmov 11  }
 0x804   :  { %v1582_v32 = vrot.slane %v1581_v44, 1 }
 0x806   :  { %v5701_v48 = vadd.f32 %v1582_v32, %v1581_v44  ;;  %v6947_v44 = vmov 12   ;;  %v6948_v32 = vmov 13  }
 0x808   :  { %6934 = vst [vmem:[#allocation35_spill] sm:$0xff] %v5701_v48  ;;  %v1593_v16 = vmul.f32 %v1590_v27, %v5701_v48  ;;  %v1594_v58 = vmul.f32 %v1591_v4, %v5701_v48  ;;  %v1595_v51 = vmul.f32 %v1592_v13, %v5701_v48  ;;  %v6950_v27 = vmov 15   ;;  %v1743_v4 = vld [vmem:[%s6720_s2 + $0x1a0] sm:$0xff]  ;;  %v1744_v13 = vld [vmem:[%s6720_s2 + $0x1b8] sm:$0xff] }
 0x80a   :  { %v5705_v53 = vmax.f32 %v1593_v16, %v6915_v18  ;;  %v5717_v22 = vmax.f32 %v1594_v58, %v6914_v17  ;;  %v5731_v20 = vmax.f32 %v1595_v51, %v6916_v24  ;;  %v6951_v16 = vmov 16   ;;  %v1745_v51 = vld [vmem:[%s6720_s2 + $0x1d0] sm:$0xff] }
 0x80b   :  { %v3917_v58 = vpack.c.bf16 %v1743_v4, %v1742_v31  ;;  %v1747_v4 = vld [vmem:[%s6720_s2 + $0x200] sm:$0xff] }
 0x80c   :  { %1896 = vperm.xlu0 %4213, %v5705_v53   ;;  %1850 = vperm.xlu1 %4215, %v5705_v53  }
 0x80d   :  { %3918 = vmatprep.subr.bf16.mxu1 %v3917_v58 }
 0x810   :  { %4219 = vset.pattern.permute.xlu0 %v6936_v23  ;;  %4216 = vset.pattern.permute.xlu1 %v6937_v59 }
 0x811   :  { %1918 = vperm.xlu0 %4219, %v5705_v53   ;;  %1874 = vperm.xlu1 %4216, %v5705_v53  }
 0x815   :  { %4222 = vset.pattern.permute.xlu0 %v6938_v50  ;;  %4217 = vset.pattern.permute.xlu1 %v6901_v38 }
 0x816   :  { %1940 = vperm.xlu0 %4222, %v5705_v53   ;;  %1855 = vperm.xlu1 %4217, %v5717_v22  }
 0x81a   :  { %4225 = vset.pattern.permute.xlu0 %v6940_v52  ;;  %4218 = vset.pattern.permute.xlu1 %v6937_v59 }
 0x81b   :  { %1962 = vperm.xlu0 %4225, %v5705_v53   ;;  %1878 = vperm.xlu1 %4218, %v5717_v22  }
 0x81f   :  { %4228 = vset.pattern.permute.xlu0 %v6941_v10  ;;  %4220 = vset.pattern.permute.xlu1 %v6901_v38 }
 0x820   :  { %1984 = vperm.xlu0 %4228, %v5705_v53   ;;  %1860 = vperm.xlu1 %4220, %v5731_v20  }
 0x824   :  { %4231 = vset.pattern.permute.xlu0 %v6942_v11  ;;  %4221 = vset.pattern.permute.xlu1 %v6913_v37 }
 0x825   :  { %2006 = vperm.xlu0 %4231, %v5705_v53   ;;  %1900 = vperm.xlu1 %4221, %v5717_v22  }
 0x829   :  { %4234 = vset.pattern.permute.xlu0 %v6943_v2  ;;  %4223 = vset.pattern.permute.xlu1 %v6937_v59 }
 0x82a   :  { %2028 = vperm.xlu0 %4234, %v5705_v53   ;;  %1882 = vperm.xlu1 %4223, %v5731_v20  }
 0x82e   :  { %4237 = vset.pattern.permute.xlu0 %v6944_v47  ;;  %4224 = vset.pattern.permute.xlu1 %v6936_v23 }
 0x82f   :  { %2050 = vperm.xlu0 %4237, %v5705_v53   ;;  %1922 = vperm.xlu1 %4224, %v5717_v22  }
 0x833   :  { %4240 = vset.pattern.permute.xlu0 %v6945_v63  ;;  %4226 = vset.pattern.permute.xlu1 %v6913_v37 }
 0x834   :  { %2072 = vperm.xlu0 %4240, %v5705_v53   ;;  %1904 = vperm.xlu1 %4226, %v5731_v20  }
 0x838   :  { %4243 = vset.pattern.permute.xlu0 %v6946_v56  ;;  %4227 = vset.pattern.permute.xlu1 %v6938_v50 }
 0x839   :  { %2094 = vperm.xlu0 %4243, %v5705_v53   ;;  %1944 = vperm.xlu1 %4227, %v5717_v22  }
 0x83d   :  { %4246 = vset.pattern.permute.xlu0 %v6947_v44  ;;  %4229 = vset.pattern.permute.xlu1 %v6936_v23  ;;  %v1726_v23 = vld [vmem:[%s6720_s2 + $0x8] sm:$0xff] }
 0x83e   :  { %2116 = vperm.xlu0 %4246, %v5705_v53   ;;  %1926 = vperm.xlu1 %4229, %v5731_v20  }
 0x842   :  { %4249 = vset.pattern.permute.xlu0 %v6948_v32  ;;  %4230 = vset.pattern.permute.xlu1 %v6940_v52 }
 0x843   :  { %2138 = vperm.xlu0 %4249, %v5705_v53   ;;  %1966 = vperm.xlu1 %4230, %v5717_v22  }
 0x847   :  { %4252 = vset.pattern.permute.xlu0 %v6949_v21  ;;  %4232 = vset.pattern.permute.xlu1 %v6938_v50  ;;  %v1727_v50 = vld [vmem:[%s6720_s2 + $0x20] sm:$0xff] }
 0x848   :  { %2160 = vperm.xlu0 %4252, %v5705_v53   ;;  %1948 = vperm.xlu1 %4232, %v5731_v20   ;;  %v3919_v19 = vpack.c.bf16 %v1727_v50, %v1726_v23  ;;  %v1730_v23 = vld [vmem:[%s6720_s2 + $0x68] sm:$0xff]  ;;  %v1731_v50 = vld [vmem:[%s6720_s2 + $0x80] sm:$0xff] }
 0x84a   :  { %3920 = vmatpush3.bf16.msra.mxu1 %v3919_v19  ;;  %v3927_v19 = vpack.c.bf16 %v1731_v50, %v1730_v23  ;;  %v1752_v50 = vld [vmem:[%s6720_s2 + $0x278] sm:$0xff] }
 0x84c   :  { %4255 = vset.pattern.permute.xlu0 %v6950_v27  ;;  %4233 = vset.pattern.permute.xlu1 %v6941_v10 }
 0x84d   :  { %2182 = vperm.xlu0 %4255, %v5705_v53   ;;  %1988 = vperm.xlu1 %4233, %v5717_v22  }
 0x851   :  { %4258 = vset.pattern.permute.xlu0 %v6951_v16  ;;  %4235 = vset.pattern.permute.xlu1 %v6940_v52  ;;  %v3921_v52 = vpack.c.bf16 %v1745_v51, %v1744_v13  ;;  %v1748_v13 = vld [vmem:[%s6720_s2 + $0x218] sm:$0xff]  ;;  %v1749_v51 = vld [vmem:[%s6720_s2 + $0x230] sm:$0xff] }
 0x852   :  { %2204 = vperm.xlu0 %4258, %v5705_v53   ;;  %1970 = vperm.xlu1 %4235, %v5731_v20  }
 0x853   :  { %3922 = vmatprep.subr.bf16.mxu1 %v3921_v52  ;;  %v3929_v52 = vpack.c.bf16 %v1749_v51, %v1748_v13  ;;  %v1736_v51 = vld [vmem:[%s6720_s2 + $0xf8] sm:$0xff] }
 0x856   :  { %4261 = vset.pattern.permute.xlu0 %v6894_v55  ;;  %4236 = vset.pattern.permute.xlu1 %v6942_v11 }
 0x857   :  { %2226 = vperm.xlu0 %4261, %v5705_v53   ;;  %2010 = vperm.xlu1 %4236, %v5717_v22  }
 0x85b   :  { %4264 = vset.pattern.permute.xlu0 %v6895_v1  ;;  %4238 = vset.pattern.permute.xlu1 %v6941_v10  ;;  %v1728_v10 = vld [vmem:[%s6720_s2 + $0x38] sm:$0xff] }
 0x85c   :  { %2248 = vperm.xlu0 %4264, %v5705_v53   ;;  %1992 = vperm.xlu1 %4238, %v5731_v20  }
 0x860   :  { %4267 = vset.pattern.permute.xlu0 %v6896_v41  ;;  %4239 = vset.pattern.permute.xlu1 %v6943_v2 }
 0x861   :  { %2270 = vperm.xlu0 %4267, %v5705_v53   ;;  %2032 = vperm.xlu1 %4239, %v5717_v22  }
 0x865   :  { %4270 = vset.pattern.permute.xlu0 %v6897_v46  ;;  %4241 = vset.pattern.permute.xlu1 %v6942_v11  ;;  %v1729_v11 = vld [vmem:[%s6720_s2 + $0x50] sm:$0xff] }
 0x866   :  { %2292 = vperm.xlu0 %4270, %v5705_v53   ;;  %2014 = vperm.xlu1 %4241, %v5731_v20   ;;  %v3923_v31 = vpack.c.bf16 %v1729_v11, %v1728_v10  ;;  %v1732_v10 = vld [vmem:[%s6720_s2 + $0x98] sm:$0xff] }
 0x868   :  { %3924 = vmatpush3.bf16.msra.mxu1 %v3923_v31  ;;  %v1750_v31 = vld [vmem:[%s6720_s2 + $0x248] sm:$0xff] }
 0x86a   :  { %4273 = vset.pattern.permute.xlu0 %v6898_v30  ;;  %4242 = vset.pattern.permute.xlu1 %v6944_v47 }
 0x86b   :  { %2314 = vperm.xlu0 %4273, %v5705_v53   ;;  %2054 = vperm.xlu1 %4242, %v5717_v22  }
 0x86f   :  { %4276 = vset.pattern.permute.xlu0 %v6899_v14  ;;  %4244 = vset.pattern.permute.xlu1 %v6943_v2  ;;  %v1746_v2 = vld [vmem:[%s6720_s2 + $0x1e8] sm:$0xff] }
 0x870   :  { %2336 = vperm.xlu0 %4276, %v5705_v53   ;;  %2036 = vperm.xlu1 %4244, %v5731_v20   ;;  %v3925_v58 = vpack.c.bf16 %v1747_v4, %v1746_v2  ;;  %v1751_v2 = vld [vmem:[%s6720_s2 + $0x260] sm:$0xff] }
 0x871   :  { %v3933_v4 = vpack.c.bf16 %v1751_v2, %v1750_v31  ;;  %v1738_v2 = vld [vmem:[%s6720_s2 + $0x128] sm:$0xff] }
 0x872   :  { %3926 = vmatprep.subr.bf16.mxu1 %v3925_v58  ;;  %v1735_v58 = vld [vmem:[%s6720_s2 + $0xe0] sm:$0xff] }
 0x873   :  { %3928 = vmatpush3.bf16.msra.mxu1 %v3927_v19  ;;  %v1753_v19 = vld [vmem:[%s6720_s2 + $0x290] sm:$0xff] }
 0x874   :  { %4279 = vset.pattern.permute.xlu0 %v6900_v61  ;;  %4245 = vset.pattern.permute.xlu1 %v6945_v63  ;;  %v3937_v13 = vpack.c.bf16 %v1753_v19, %v1752_v50  ;;  %v1740_v50 = vld [vmem:[%s6720_s2 + $0x158] sm:$0xff]  ;;  %v1741_v19 = vld [vmem:[%s6720_s2 + $0x170] sm:$0xff] }
 0x875   :  { %2358 = vperm.xlu0 %4279, %v5705_v53   ;;  %2076 = vperm.xlu1 %4245, %v5717_v22   ;;  %v1733_v53 = vld [vmem:[%s6720_s2 + $0xb0] sm:$0xff] }
 0x876   :  { %v3931_v11 = vpack.c.bf16 %v1733_v53, %v1732_v10  ;;  %3930 = vmatprep.subr.bf16.mxu1 %v3929_v52  ;;  %v1737_v52 = vld [vmem:[%s6720_s2 + $0x110] sm:$0xff]  ;;  %v1754_v53 = vld [vmem:[%s6720_s2 + $0x2a8] sm:$0xff] }
 0x877   :  { %v3939_v10 = vpack.c.bf16 %v1737_v52, %v1736_v51 }
 0x878   :  { %3932 = vmatpush3.bf16.msra.mxu1 %v3931_v11  ;;  %v1755_v11 = vld [vmem:[%s6720_s2 + $0x2c0] sm:$0xff] }
 0x879   :  { %4282 = vset.pattern.permute.xlu0 %v6898_v30  ;;  %4247 = vset.pattern.permute.xlu1 %v6944_v47  ;;  %v1734_v47 = vld [vmem:[%s6720_s2 + $0xc8] sm:$0xff]  ;;  %v3941_v31 = vpack.c.bf16 %v1755_v11, %v1754_v53  ;;  %v4431_v11 = vld [vmem:[%s6718_s1 + $0x98] sm:$0xff] }
 0x87a   :  { %2322 = vperm.xlu0 %4282, %v5731_v20   ;;  %2058 = vperm.xlu1 %4247, %v5731_v20   ;;  %v3935_v23 = vpack.c.bf16 %v1735_v58, %v1734_v47  ;;  %v1756_v47 = vld [vmem:[%s6720_s2 + $0x2d8] sm:$0xff]  ;;  %v1757_v58 = vld [vmem:[%s6720_s2 + $0x2f0] sm:$0xff] }
 0x87b   :  { %3934 = vmatprep.subr.bf16.mxu1 %v3933_v4 }
 0x87c   :  { %3936 = vmatpush3.bf16.msra.mxu1 %v3935_v23  ;;  %v3945_v23 = vpack.c.bf16 %v1757_v58, %v1756_v47 }
 0x87d   :  { %3938 = vmatprep.subr.bf16.mxu1 %v3937_v13  ;;  %v3947_v13 = vpack.c.bf16 %v1741_v19, %v1740_v50  ;;  %v6952_v19 = vld [vmem:[#allocation2_spill] sm:$0xff] }
 0x87e   :  { %4285 = vset.pattern.permute.xlu0 %v6900_v61  ;;  %4248 = vset.pattern.permute.xlu1 %v6946_v56 }
 0x87f   :  { %2366 = vperm.xlu0 %4285, %v5731_v20   ;;  %2098 = vperm.xlu1 %4248, %v5717_v22  }
 0x880   :  { %3940 = vmatpush3.bf16.msra.mxu1 %v3939_v10 }
 0x881   :  { %3942 = vmatprep.subr.bf16.mxu1 %v3941_v31  ;;  %v4432_v31 = vld [vmem:[%s6718_s1 + $0xb8] sm:$0xff] }
 0x883   :  { %4250 = vset.pattern.permute.xlu1 %v6945_v63  ;;  %4327 = vset.pattern.permute.xlu0 %v6913_v37  ;;  %v1739_v63 = vld [vmem:[%s6720_s2 + $0x140] sm:$0xff] }
 0x884   :  { %2080 = vperm.xlu1 %4250, %v5731_v20   ;;  %v3943_v4 = vpack.c.bf16 %v1739_v63, %v1738_v2  ;;  %v4296_v2 = vpack.i.bf16 %v4432_v31, %v4431_v11  ;;  %v4434_v63 = vld [vmem:[%s6718_s1 + $0x138] sm:$0xff] }
 0x885   :  { %v4436_v11 = vld [vmem:[%s6718_s1 + $0x1b8] sm:$0xff] }
 0x886   :  { %3944 = vmatpush3.bf16.msra.mxu1 %v3943_v4  ;;  %4297 = vrot.lane.b32.xlu0 %v4296_v2, %s4497_s16 }
 0x887   :  { %3946 = vmatprep.subr.bf16.mxu1 %v3945_v23 }
 0x888   :  { %4251 = vset.pattern.permute.xlu1 %v6947_v44 }
 0x889   :  { %2120 = vperm.xlu1 %4251, %v5717_v22  }
 0x88a   :  { %3948 = vmatpush3.bf16.msra.mxu1 %v3947_v13  ;;  %v4435_v13 = vld [vmem:[%s6718_s1 + $0x198] sm:$0xff] }
 0x88b   :  { %v5914_v51 = vpop.permute.xlu0 %1896  ;;  %v5916_v52 = vpop.permute.xlu1 %1850  ;;  %v4316_v31 = vpack.i.bf16 %v4436_v11, %v4435_v13 }
 0x88d   :  { %4253 = vset.pattern.permute.xlu1 %v6946_v56  ;;  %v4433_v56 = vld [vmem:[%s6718_s1 + $0x118] sm:$0xff] }
 0x88e   :  { %2102 = vperm.xlu1 %4253, %v5731_v20   ;;  %v4306_v4 = vpack.i.bf16 %v4434_v63, %v4433_v56  ;;  %v6953_v56 = vld [vmem:[#allocation5_spill] sm:$0xff] }
 0x890   :  { %v5920_v10 = vpop.permute.xlu0 %1918  ;;  %v5922_v53 = vpop.permute.xlu1 %1874  ;;  %4307 = vrot.lane.b32.xlu0 %v4306_v4, %s4497_s16 }
 0x892   :  { %4254 = vset.pattern.permute.xlu1 %v6948_v32 }
 0x893   :  { %2142 = vperm.xlu1 %4254, %v5717_v22  }
 0x894   :  { %2465 = vrot.lane.b32.xlu0 %v6952_v19, %s4497_s16  ;;  %v6954_v19 = vld [vmem:[#allocation6_spill] sm:$0xff] }
 0x895   :  { %v5939_v47 = vpop.permute.xlu0 %1940  ;;  %v5941_v58 = vpop.permute.xlu1 %1855 }
 0x897   :  { %4256 = vset.pattern.permute.xlu1 %v6947_v44 }
 0x898   :  { %2124 = vperm.xlu1 %4256, %v5731_v20   ;;  %4317 = vrot.lane.b32.xlu0 %v4316_v31, %s4497_s16 }
 0x89a   :  { %v5946_v23 = vpop.permute.xlu0 %1962  ;;  %v5948_v50 = vpop.permute.xlu1 %1878 }
 0x89c   :  { %4257 = vset.pattern.permute.xlu1 %v6949_v21  ;;  %2471 = vrot.lane.b32.xlu0 %v6953_v56, %s4497_s16 }
 0x89d   :  { %2164 = vperm.xlu1 %4257, %v5717_v22  }
 0x89f   :  { %v5961_v44 = vpop.permute.xlu0 %1984  ;;  %v5963_v2 = vpop.permute.xlu1 %1860 }
 0x8a0   :  { %2473 = vrot.lane.b32.xlu0 %v6954_v19, %s4497_s16  ;;  %v6957_v19 = vld [vmem:[#allocation12_spill] sm:$0xff] }
 0x8a1   :  { %4259 = vset.pattern.permute.xlu1 %v6948_v32  ;;  %v6955_v32 = vld [vmem:[#allocation8_spill] sm:$0xff] }
 0x8a2   :  { %2146 = vperm.xlu1 %4259, %v5731_v20  }
 0x8a4   :  { %v5969_v63 = vpop.permute.xlu0 %2006  ;;  %v5971_v4 = vpop.permute.xlu1 %1900  ;;  %2477 = vrot.lane.b32.xlu0 %v6955_v32, %s4497_s16 }
 0x8a6   :  { %4260 = vset.pattern.permute.xlu1 %v6950_v27 }
 0x8a7   :  { %2186 = vperm.xlu1 %4260, %v5717_v22  }
 0x8a8   :  { %2481 = vrot.lane.b32.xlu0 %v6956_v8, %s4497_s16 }
 0x8a9   :  { %v5977_v13 = vpop.permute.xlu0 %2028  ;;  %v5979_v11 = vpop.permute.xlu1 %1882 }
 0x8ab   :  { %4262 = vset.pattern.permute.xlu1 %v6949_v21  ;;  %v6958_v21 = vld [vmem:[#allocation14_spill] sm:$0xff] }
 0x8ac   :  { %2168 = vperm.xlu1 %4262, %v5731_v20   ;;  %2485 = vrot.lane.b32.xlu0 %v6957_v19, %s4497_s16 }
 0x8ae   :  { %v5985_v31 = vpop.permute.xlu0 %2050  ;;  %v5987_v56 = vpop.permute.xlu1 %1922 }
 0x8b0   :  { %4263 = vset.pattern.permute.xlu1 %v6951_v16  ;;  %2489 = vrot.lane.b32.xlu0 %v6958_v21, %s4497_s16 }
 0x8b1   :  { %2208 = vperm.xlu1 %4263, %v5717_v22  }
 0x8b3   :  { %v5995_v12 = vpop.permute.xlu0 %2072  ;;  %v5997_v32 = vpop.permute.xlu1 %1904 }
 0x8b4   :  { %2493 = vrot.lane.b32.xlu0 %v6959_v9, %s4497_s16  ;;  %v6028_v9 = vld [vmem:[%s6721_s3 + $0x1] ss:$0 sm:$0xff] }
 0x8b5   :  { %4265 = vset.pattern.permute.xlu1 %v6950_v27 }
 0x8b6   :  { %2190 = vperm.xlu1 %4265, %v5731_v20  }
 0x8b8   :  { %v6003_v26 = vpop.permute.xlu0 %2094  ;;  %v6005_v8 = vpop.permute.xlu1 %1944 }
 0x8ba   :  { %4266 = vset.pattern.permute.xlu1 %v6894_v55 }
 0x8bb   :  { %2230 = vperm.xlu1 %4266, %v5717_v22  }
 0x8bd   :  { %v6011_v19 = vpop.permute.xlu1 %1926  ;;  %v6013_v45 = vpop.permute.xlu0 %2116 }
 0x8bf   :  { %4268 = vset.pattern.permute.xlu1 %v6951_v16 }
 0x8c0   :  { %2212 = vperm.xlu1 %4268, %v5731_v20  }
 0x8c2   :  { %v6017_v27 = vpop.permute.xlu1 %1966  ;;  %v6019_v21 = vpop.permute.xlu0 %2138 }
 0x8c4   :  { %4269 = vset.pattern.permute.xlu1 %v6895_v1 }
 0x8c5   :  { %2252 = vperm.xlu1 %4269, %v5717_v22  }
 0x8c7   :  { %v6023_v3 = vpop.permute.xlu1 %1948  ;;  %v6031_v16 = vpop.permute.xlu0 %2160 }
 0x8c8   :  { %6960 = vst [vmem:[#allocation36_spill] sm:$0xff] %v6031_v16 }
 0x8c9   :  { %4271 = vset.pattern.permute.xlu1 %v6894_v55 }
 0x8ca   :  { %v1831_v37 = vpop.f32.mrb[12].mxu0  ;;  %2234 = vperm.xlu1 %4271, %v5731_v20  }
 0x8cb   :  { %v1832_v59 = vadd.f32 %v6028_v9, %v1831_v37  ;;  %v3671_v60 = vpop.f32.mrb[13].mxu0 }
 0x8cc   :  { %v6035_v35 = vpop.permute.xlu1 %1988  ;;  %v6040_v55 = vpop.permute.xlu0 %2182 }
 0x8cd   :  { %v1845_v48 = vmax.f32 %v1832_v59, 0.0  ;;  %6961 = vst [vmem:[#allocation37_spill] sm:$0xff] %v6040_v55 }
 0x8ce   :  { %v1836_v62 = vpop.f32.mrb[14].mxu0  ;;  %4272 = vset.pattern.permute.xlu1 %v6896_v41 }
 0x8cf   :  { %v1866_v57 = vrot.slane %v1845_v48, %v5237_v33  ;;  %v3674_v7 = vpop.f32.mrb[15].mxu0  ;;  %2274 = vperm.xlu1 %4272, %v5717_v22   ;;  %v1888_v37 = vrot.slane %v1845_v48, %v5242_v40  ;;  %v1910_v59 = vrot.slane %v1845_v48, %v5245_v15  ;;  %v1932_v6 = vrot.slane %v1845_v48, %v5251_v42 }
 0x8d1   :  { %v6042_v49 = vpop.permute.xlu1 %1970  ;;  %v1867_v60 = vmul.f32 %v1866_v57, %v5916_v52  ;;  %v6051_v7 = vpop.permute.xlu0 %2204  ;;  %v1889_v36 = vmul.f32 %v1888_v37, %v5922_v53  ;;  %v1868_v28 = vmul.f32 %v1866_v57, %v5941_v58  ;;  %v1837_v52 = vadd.f32 %v6028_v9, %v1836_v62 }
 0x8d2   :  { %v6044_v24 = vpop.f32.mrb[16].mxu0  ;;  %6962 = vst [vmem:[#allocation2_spill] sm:$0xff] %v6051_v7  ;;  %v1890_v54 = vmul.f32 %v1888_v37, %v5948_v50  ;;  %v1869_v53 = vmul.f32 %v1866_v57, %v5963_v2  ;;  %v1933_v58 = vmul.f32 %v1932_v6, %v5920_v10  ;;  %v1912_v7 = vmul.f32 %v1910_v59, %v5971_v4 }
 0x8d3   :  { %v3677_v18 = vpop.f32.mrb[17].mxu0  ;;  %4274 = vset.pattern.permute.xlu1 %v6895_v1  ;;  %v1870_v43 = vmax.f32 %v1867_v60, 0.0  ;;  %v1911_v1 = vmul.f32 %v1910_v59, %v5914_v51  ;;  %v1871_v34 = vmax.f32 %v1868_v28, 0.0  ;;  %v1976_v60 = vrot.slane %v1845_v48, %v5265_v5 }
 0x8d4   :  { %2256 = vperm.xlu1 %4274, %v5731_v20   ;;  %v1954_v18 = vrot.slane %v1845_v48, %v5258_v39  ;;  %v6068_v61 = vmax.f32 %v1837_v52, 0.0  ;;  %v1891_v28 = vmul.f32 %v1888_v37, %v5979_v11  ;;  %v1934_v10 = vmul.f32 %v1932_v6, %v5987_v56 }
 0x8d5   :  { %v1892_v25 = vmax.f32 %v1870_v43, %v1889_v36  ;;  %v1893_v62 = vmax.f32 %v1871_v34, %v1890_v54  ;;  %v1998_v36 = vrot.slane %v1845_v48, %v5275_v29  ;;  %v1872_v43 = vmax.f32 %v1869_v53, 0.0 }
 0x8d6   :  { %v6053_v17 = vpop.permute.xlu1 %2010  ;;  %v6072_v51 = vpop.permute.xlu0 %2226  ;;  %v1955_v50 = vmul.f32 %v1954_v18, %v5939_v47  ;;  %v1913_v34 = vmul.f32 %v1910_v59, %v5997_v32  ;;  %v1977_v2 = vmul.f32 %v1976_v60, %v5946_v23  ;;  %v1956_v37 = vmul.f32 %v1954_v18, %v6005_v8 }
 0x8d7   :  { %v1914_v38 = vmax.f32 %v1892_v25, %v1911_v1  ;;  %v1915_v57 = vmax.f32 %v1893_v62, %v1912_v7  ;;  %v2020_v25 = vrot.slane %v1845_v48, %v5284_v0  ;;  %v1894_v54 = vmax.f32 %v1872_v43, %v1891_v28 }
 0x8d8   :  { %4275 = vset.pattern.permute.xlu1 %v6897_v46  ;;  %v1935_v56 = vmul.f32 %v1932_v6, %v6011_v19  ;;  %v1999_v48 = vmul.f32 %v1998_v36, %v5961_v44  ;;  %v1978_v32 = vmul.f32 %v1976_v60, %v6017_v27  ;;  %v6090_v23 = vrot.slane %v6068_v61, %v5242_v40 }
 0x8d9   :  { %2296 = vperm.xlu1 %4275, %v5717_v22   ;;  %v1936_v16 = vmax.f32 %v1914_v38, %v1933_v58  ;;  %v1937_v11 = vmax.f32 %v1915_v57, %v1934_v10  ;;  %v2042_v38 = vrot.slane %v6068_v61, %v5237_v33  ;;  %v1916_v47 = vmax.f32 %v1894_v54, %v1913_v34 }
 0x8da   :  { %v2021_v59 = vmul.f32 %v2020_v25, %v5969_v63  ;;  %v6098_v6 = vrot.slane %v6068_v61, %v5245_v15  ;;  %v2000_v27 = vmul.f32 %v1998_v36, %v6035_v35  ;;  %v1979_v58 = vmul.f32 %v1976_v60, %v6042_v49 }
 0x8db   :  { %v1993_v55 = vpop.permute.xlu1 %1992  ;;  %v1958_v4 = vmax.f32 %v1936_v16, %v1955_v50  ;;  %v1959_v52 = vmax.f32 %v1937_v11, %v1956_v37  ;;  %v1938_v8 = vmax.f32 %v1916_v47, %v1935_v56  ;;  %v1957_v16 = vmul.f32 %v1954_v18, %v6023_v3  ;;  %v6093_v1 = vpop.permute.xlu0 %2248 }
 0x8dc   :  { %v2043_v63 = vmul.f32 %v2042_v38, %v5977_v13  ;;  %v2001_v3 = vmul.f32 %v1998_v36, %v1993_v55  ;;  %v2065_v10 = vmul.f32 %v6090_v23, %v5985_v31  ;;  %v6109_v35 = vrot.slane %v6068_v61, %v5251_v42 }
 0x8dd   :  { %4277 = vset.pattern.permute.xlu1 %v6896_v41  ;;  %v1980_v7 = vmax.f32 %v1958_v4, %v1977_v2  ;;  %v1981_v19 = vmax.f32 %v1959_v52, %v1978_v32  ;;  %v1960_v53 = vmax.f32 %v1938_v8, %v1957_v16  ;;  %v6114_v49 = vrot.slane %v6068_v61, %v5258_v39 }
 0x8de   :  { %2278 = vperm.xlu1 %4277, %v5731_v20   ;;  %v2087_v60 = vmul.f32 %v6098_v6, %v5995_v12  ;;  %v1842_v36 = vadd.f32 %v6028_v9, %v6044_v24  ;;  %v6125_v4 = vrot.slane %v6068_v61, %v5265_v5  ;;  %v6130_v12 = vrot.slane %v6068_v61, %v5275_v29 }
 0x8df   :  { %v2002_v44 = vmax.f32 %v1980_v7, %v1999_v48  ;;  %v2003_v62 = vmax.f32 %v1981_v19, %v2000_v27  ;;  %v1982_v50 = vmax.f32 %v1960_v53, %v1979_v58  ;;  %v2131_v24 = vmul.f32 %v6114_v49, %v6013_v45  ;;  %v6965_v27 = vld [vmem:[#allocation37_spill] sm:$0xff] }
 0x8e0   :  { %v2033_v41 = vpop.permute.xlu1 %2032  ;;  %v2271_v55 = vpop.permute.xlu0 %2270  ;;  %v1847_v47 = vmax.f32 %v1842_v36, 0.0  ;;  %v6142_v48 = vrot.slane %v6068_v61, %v5284_v0  ;;  %v6967_v36 = vmov 0  }
 0x8e1   :  { %v2024_v18 = vmax.f32 %v2002_v44, %v2021_v59  ;;  %v2044_v43 = vmul.f32 %v2042_v38, %v2033_v41  ;;  %v2153_v41 = vmul.f32 %v6125_v4, %v6019_v21  ;;  %v6963_v59 = vld [vmem:[#allocation36_spill] sm:$0xff]  ;;  %v6964_v44 = vmov 23  }
 0x8e2   :  { %4278 = vset.pattern.permute.xlu1 %v6898_v30  ;;  %v2022_v30 = vmul.f32 %v2020_v25, %v6053_v17  ;;  %v2004_v17 = vmax.f32 %v1982_v50, %v2001_v3  ;;  %v2175_v45 = vmul.f32 %v6130_v12, %v6963_v59  ;;  %v6147_v16 = vrot.slane %v1847_v47, %v5237_v33  ;;  %v6966_v3 = vld [vmem:[#allocation2_spill] sm:$0xff] }
 0x8e3   :  { %2318 = vperm.xlu1 %4278, %v5717_v22   ;;  %v2046_v13 = vmax.f32 %v2024_v18, %v2043_v63  ;;  %v2197_v61 = vmul.f32 %v6142_v48, %v6965_v27  ;;  %v6154_v63 = vrot.slane %v1847_v47, %v5242_v40  ;;  %v6969_v27 = vld [vmem:[#allocation3_spill] sm:$0xff] }
 0x8e4   :  { %v2025_v54 = vmax.f32 %v2003_v62, %v2022_v30  ;;  %v2219_v18 = vmul.f32 %v6147_v16, %v6966_v3  ;;  %v4438_v62 = vld [vmem:[%s6718_s1 + $0x38] sm:$0xff] }
 0x8e5   :  { %v2015_v28 = vpop.permute.xlu1 %2014  ;;  %v2068_v31 = vmax.f32 %v2046_v13, %v2065_v10  ;;  %v6176_v10 = vrot.slane %v1847_v47, %v5251_v42  ;;  %v4440_v42 = vld [vmem:[%s6718_s1 + $0x78] sm:$0xff] }
 0x8e6   :  { %v2023_v57 = vmul.f32 %v2020_v25, %v2015_v28  ;;  %v2047_v25 = vmax.f32 %v2025_v54, %v2044_v43  ;;  %v2241_v43 = vmul.f32 %v6154_v63, %v6072_v51  ;;  %v6169_v28 = vrot.slane %v1847_v47, %v5245_v15 }
 0x8e7   :  { %4280 = vset.pattern.permute.xlu1 %v6897_v46  ;;  %v2109_v46 = vmul.f32 %v6109_v35, %v6003_v26  ;;  %v2090_v11 = vmax.f32 %v2068_v31, %v2087_v60  ;;  %v2293_v26 = vpop.permute.xlu0 %2292  ;;  %v2285_v51 = vmul.f32 %v6176_v10, %v2271_v55  ;;  %v6181_v15 = vrot.slane %v1847_v47, %v5258_v39 }
 0x8e8   :  { %2300 = vperm.xlu1 %4280, %v5731_v20   ;;  %v2026_v34 = vmax.f32 %v2004_v17, %v2023_v57  ;;  %v2263_v57 = vmul.f32 %v6169_v28, %v6093_v1  ;;  %v6193_v39 = vrot.slane %v1847_v47, %v5265_v5 }
 0x8e9   :  { %v2112_v9 = vmax.f32 %v2090_v11, %v2109_v46  ;;  %v2307_v55 = vmul.f32 %v6181_v15, %v2293_v26 }
 0x8ea   :  { %v2055_v2 = vpop.permute.xlu1 %2054 }
 0x8eb   :  { %v2066_v37 = vmul.f32 %v6090_v23, %v2055_v2  ;;  %v2134_v7 = vmax.f32 %v2112_v9, %v2131_v24  ;;  %v4442_v2 = vld [vmem:[%s6718_s1 + $0xf8] sm:$0xff]  ;;  %v6203_v24 = vrot.slane %v1847_v47, %v5275_v29 }
 0x8ec   :  { %4281 = vset.pattern.permute.xlu1 %v6899_v14  ;;  %v4443_v29 = vld [vmem:[%s6718_s1 + $0x158] sm:$0xff] }
 0x8ed   :  { %v6135_v56 = vmax.f32 %v2047_v25, %v2066_v37  ;;  %2340 = vperm.xlu1 %4281, %v5717_v22   ;;  %v2156_v8 = vmax.f32 %v2134_v7, %v2153_v41  ;;  %v6209_v41 = vrot.slane %v1847_v47, %v5284_v0 }
 0x8ef   :  { %v2037_v52 = vpop.permute.xlu1 %2036  ;;  %v2178_v21 = vmax.f32 %v2156_v8, %v2175_v45  ;;  %v4444_v45 = vld [vmem:[%s6718_s1 + $0x178] sm:$0xff] }
 0x8f0   :  { %v2045_v32 = vmul.f32 %v2042_v38, %v2037_v52  ;;  %v2315_v38 = vpop.permute.xlu0 %2314  ;;  %v4311_v8 = vpack.i.bf16 %v4444_v45, %v4443_v29 }
 0x8f1   :  { %4283 = vset.pattern.permute.xlu1 %v6964_v44  ;;  %v2200_v58 = vmax.f32 %v2178_v21, %v2197_v61  ;;  %v2329_v37 = vmul.f32 %v6193_v39, %v2315_v38 }
 0x8f2   :  { %v2048_v19 = vmax.f32 %v2026_v34, %v2045_v32  ;;  %2362 = vperm.xlu1 %4283, %v5717_v22   ;;  %v4437_v22 = vld [vmem:[%s6718_s1 + $0x18] sm:$0xff] }
 0x8f3   :  { %v4286_v40 = vpack.i.bf16 %v4438_v62, %v4437_v22  ;;  %v2222_v30 = vmax.f32 %v2200_v58, %v2219_v18  ;;  %v4441_v34 = vld [vmem:[%s6718_s1 + $0xd8] sm:$0xff]  ;;  %v6971_v62 = vld [vmem:[#allocation7_spill] sm:$0xff] }
 0x8f4   :  { %v2077_v53 = vpop.permute.xlu1 %2076  ;;  %v2337_v54 = vpop.permute.xlu0 %2336  ;;  %v4301_v46 = vpack.i.bf16 %v4442_v2, %v4441_v34  ;;  %v4446_v58 = vld [vmem:[%s6718_s1 + $0x1f8] sm:$0xff] }
 0x8f5   :  { %v2088_v33 = vmul.f32 %v6098_v6, %v2077_v53  ;;  %v2351_v26 = vmul.f32 %v6203_v24, %v2337_v54  ;;  %v6970_v53 = vld [vmem:[#allocation4_spill] sm:$0xff]  ;;  %v6976_v54 = vld [vmem:[#allocation17_spill] sm:$0xff] }
 0x8f6   :  { %4284 = vset.pattern.permute.xlu1 %v6899_v14  ;;  %v2244_v14 = vmax.f32 %v2222_v30, %v2241_v43  ;;  %v6973_v30 = vld [vmem:[#allocation11_spill] sm:$0xff] }
 0x8f7   :  { %v2091_v50 = vmax.f32 %v6135_v56, %v2088_v33  ;;  %2344 = vperm.xlu1 %4284, %v5731_v20   ;;  %v4439_v20 = vld [vmem:[%s6718_s1 + $0x58] sm:$0xff] }
 0x8f8   :  { %v2266_v60 = vmax.f32 %v2244_v14, %v2263_v57  ;;  %v4291_v1 = vpack.i.bf16 %v4440_v42, %v4439_v20  ;;  %v2359_v5 = vpop.permute.xlu0 %2358  ;;  %v6975_v57 = vld [vmem:[#allocation15_spill] sm:$0xff] }
 0x8f9   :  { %v2059_v13 = vpop.permute.xlu1 %2058  ;;  %v2373_v32 = vmul.f32 %v6209_v41, %v2359_v5 }
 0x8fa   :  { %v2067_v17 = vmul.f32 %v6090_v23, %v2059_v13  ;;  %v2288_v23 = vmax.f32 %v2266_v60, %v2285_v51 }
 0x8fb   :  { %4287 = vrot.lane.b32.xlu1 %v4286_v40, %s4497_s16 }
 0x8fc   :  { %v2070_v31 = vmax.f32 %v2048_v19, %v2067_v17  ;;  %4326 = vset.pattern.permute.xlu1 %v6967_v36  ;;  %v2310_v11 = vmax.f32 %v2288_v23, %v2307_v55  ;;  %v6968_v19 = vld [vmem:[#allocation41_spill] sm:$0xff] }
 0x8fe   :  { %v2099_v25 = vpop.permute.xlu1 %2098  ;;  %v2332_v56 = vmax.f32 %v2310_v11, %v2329_v37 }
 0x8ff   :  { %v2110_v9 = vmul.f32 %v6109_v35, %v2099_v25  ;;  %4292 = vrot.lane.b32.xlu1 %v4291_v1, %s4497_s16 }
 0x900   :  { %v2354_v52 = vmax.f32 %v2332_v56, %v2351_v26 }
 0x901   :  { %v2113_v7 = vmax.f32 %v2091_v50, %v2110_v9  ;;  %v6974_v50 = vld [vmem:[#allocation13_spill] sm:$0xff] }
 0x902   :  { %v2376_v0 = vmax.f32 %v2354_v52, %v2373_v32 }
 0x903   :  { %v2081_v59 = vpop.permute.xlu1 %2080  ;;  %4302 = vrot.lane.b32.xlu1 %v4301_v46, %s4497_s16  ;;  %v2323_v46 = vpop.permute.xlu0 %2322 }
 0x904   :  { %v2089_v44 = vmul.f32 %v6098_v6, %v2081_v59  ;;  %2444 = vmatmul.mubr.f32.vlgmr.msra.gmra.mrb[12].mxu1 %v2376_v0  ;;  %v4445_v6 = vld [vmem:[%s6718_s1 + $0x1d8] sm:$0xff] }
 0x905   :  { %2448 = vmatprep.mubr.f32.mxu1 %v6968_v19  ;;  %v4321_v3 = vpack.i.bf16 %v4446_v58, %v4445_v6 }
 0x906   :  { %v2092_v47 = vmax.f32 %v2070_v31, %v2089_v44 }
 0x907   :  { %4312 = vrot.lane.b32.xlu1 %v4311_v8, %s4497_s16  ;;  %v2367_v8 = vpop.permute.xlu0 %2366 }
 0x908   :  { %v2121_v21 = vpop.permute.xlu1 %2120 }
 0x909   :  { %v2132_v25 = vmul.f32 %v6114_v49, %v2121_v21 }
 0x90b   :  { %2467 = vrot.lane.b32.xlu1 %v6969_v27, %s4497_s16  ;;  %v2135_v11 = vmax.f32 %v2113_v7, %v2132_v25  ;;  %v4298_v6 = vpop.permute.xlu0 %4297 }
 0x90d   :  { %v2103_v61 = vpop.permute.xlu1 %2102 }
 0x90e   :  { %v2111_v38 = vmul.f32 %v6109_v35, %v2103_v61  ;;  %v6972_v35 = vld [vmem:[#allocation9_spill] sm:$0xff] }
 0x90f   :  { %2469 = vrot.lane.b32.xlu1 %v6970_v53, %s4497_s16 }
 0x910   :  { %v2114_v18 = vmax.f32 %v2092_v47, %v2111_v38 }
 0x912   :  { %v2143_v33 = vpop.permute.xlu1 %2142 }
 0x913   :  { %4322 = vrot.lane.b32.xlu1 %v4321_v3, %s4497_s16  ;;  %v2154_v34 = vmul.f32 %v6125_v4, %v2143_v33 }
 0x915   :  { %v2157_v5 = vmax.f32 %v2135_v11, %v2154_v34 }
 0x917   :  { %v2125_v22 = vpop.permute.xlu1 %2124  ;;  %2475 = vrot.lane.b32.xlu1 %v6971_v62, %s4497_s16 }
 0x918   :  { %v2133_v9 = vmul.f32 %v6114_v49, %v2125_v22 }
 0x91a   :  { %v2136_v29 = vmax.f32 %v2114_v18, %v2133_v9 }
 0x91b   :  { %2479 = vrot.lane.b32.xlu1 %v6972_v35, %s4497_s16 }
 0x91c   :  { %v2165_v40 = vpop.permute.xlu1 %2164 }
 0x91d   :  { %v2176_v37 = vmul.f32 %v6130_v12, %v2165_v40 }
 0x91f   :  { %2483 = vrot.lane.b32.xlu1 %v6973_v30, %s4497_s16  ;;  %v2179_v52 = vmax.f32 %v2157_v5, %v2176_v37 }
 0x921   :  { %v2147_v43 = vpop.permute.xlu1 %2146 }
 0x922   :  { %v2155_v26 = vmul.f32 %v6125_v4, %v2147_v43 }
 0x923   :  { %2487 = vrot.lane.b32.xlu1 %v6974_v50, %s4497_s16  ;;  %v4308_v50 = vpop.permute.xlu0 %4307 }
 0x924   :  { %v2158_v0 = vmax.f32 %v2136_v29, %v2155_v26  ;;  %v4299_v26 = vunpack.i.l.bf16 %v4298_v6 }
 0x926   :  { %v2187_v14 = vpop.permute.xlu1 %2186 }
 0x927   :  { %2491 = vrot.lane.b32.xlu1 %v6975_v57, %s4497_s16  ;;  %v2198_v56 = vmul.f32 %v6142_v48, %v2187_v14 }
 0x929   :  { %v2201_v44 = vmax.f32 %v2179_v52, %v2198_v56 }
 0x92b   :  { %v2169_v13 = vpop.permute.xlu1 %2168  ;;  %2495 = vrot.lane.b32.xlu1 %v6976_v54, %s4497_s16 }
 0x92c   :  { %v2177_v45 = vmul.f32 %v6130_v12, %v2169_v13 }
 0x92e   :  { %v2180_v27 = vmax.f32 %v2158_v0, %v2177_v45  ;;  %v4310_v0 = vunpack.i.h.bf16 %v4308_v50 }
 0x930   :  { %v2209_v17 = vpop.permute.xlu1 %2208 }
 0x931   :  { %v2220_v32 = vmul.f32 %v6147_v16, %v2209_v17 }
 0x933   :  { %v2223_v49 = vmax.f32 %v2201_v44, %v2220_v32 }
 0x935   :  { %v2191_v60 = vpop.permute.xlu1 %2190 }
 0x936   :  { %v2199_v47 = vmul.f32 %v6142_v48, %v2191_v60 }
 0x938   :  { %v2202_v58 = vmax.f32 %v2180_v27, %v2199_v47  ;;  %v4309_v47 = vunpack.i.l.bf16 %v4308_v50 }
 0x93a   :  { %v2231_v51 = vpop.permute.xlu1 %2230  ;;  %v3962_v27 = vpack.c.bf16 %v4310_v0, %v4309_v47  ;;  %v6979_v47 = vld [vmem:[#allocation38_spill] sm:$0xff] }
 0x93b   :  { %v2242_v7 = vmul.f32 %v6154_v63, %v2231_v51 }
 0x93d   :  { %v2245_v38 = vmax.f32 %v2223_v49, %v2242_v7 }
 0x93f   :  { %v2213_v20 = vpop.permute.xlu1 %2212 }
 0x940   :  { %v2221_v4 = vmul.f32 %v6147_v16, %v2213_v20  ;;  %v2466_v20 = vpop.permute.xlu0 %2465 }
 0x941   :  { %v2513_v49 = vsel %vm106_vm0, %v2466_v20, 0.0 }
 0x942   :  { %v2224_v33 = vmax.f32 %v2202_v58, %v2221_v4 }
 0x944   :  { %v2253_v42 = vpop.permute.xlu1 %2252  ;;  %v4318_v34 = vpop.permute.xlu0 %4317 }
 0x945   :  { %v2264_v21 = vmul.f32 %v6169_v28, %v2253_v42  ;;  %v2331_v42 = vmul.f32 %v6193_v39, %v2323_v46  ;;  %v4300_v46 = vunpack.i.h.bf16 %v4298_v6  ;;  %v4320_v58 = vunpack.i.h.bf16 %v4318_v34 }
 0x947   :  { %v2267_v3 = vmax.f32 %v2245_v38, %v2264_v21 }
 0x948   :  { %v2472_v52 = vpop.permute.xlu0 %2471 }
 0x949   :  { %v2235_v1 = vpop.permute.xlu1 %2234 }
 0x94a   :  { %v2243_v12 = vmul.f32 %v6154_v63, %v2235_v1 }
 0x94c   :  { %v2246_v40 = vmax.f32 %v2224_v33, %v2243_v12  ;;  %v2474_v44 = vpop.permute.xlu0 %2473 }
 0x94e   :  { %v2275_v31 = vpop.permute.xlu1 %2274 }
 0x94f   :  { %v2286_v53 = vmul.f32 %v6176_v10, %v2275_v31 }
 0x950   :  { %v2478_v6 = vpop.permute.xlu0 %2477 }
 0x951   :  { %v2289_v22 = vmax.f32 %v2267_v3, %v2286_v53 }
 0x953   :  { %v2257_v23 = vpop.permute.xlu1 %2256 }
 0x954   :  { %v2265_v48 = vmul.f32 %v6169_v28, %v2257_v23  ;;  %v6977_v23 = vld [vmem:[#allocation42_spill] sm:$0xff] }
 0x956   :  { %v2268_v14 = vmax.f32 %v2246_v40, %v2265_v48  ;;  %v2518_v48 = vsel %vm106_vm0, %v2472_v52, 0.0 }
 0x958   :  { %v2297_v55 = vpop.permute.xlu1 %2296 }
 0x959   :  { %v2308_v18 = vmul.f32 %v6181_v15, %v2297_v55 }
 0x95b   :  { %v2311_v30 = vmax.f32 %v2289_v22, %v2308_v18  ;;  %v4319_v18 = vunpack.i.l.bf16 %v4318_v34 }
 0x95d   :  { %v2279_v2 = vpop.permute.xlu1 %2278 }
 0x95e   :  { %v2287_v16 = vmul.f32 %v6176_v10, %v2279_v2 }
 0x960   :  { %v2290_v13 = vmax.f32 %v2268_v14, %v2287_v16  ;;  %v2482_v16 = vpop.permute.xlu0 %2481 }
 0x962   :  { %v2319_v59 = vpop.permute.xlu1 %2318 }
 0x963   :  { %v2330_v62 = vmul.f32 %v6193_v39, %v2319_v59 }
 0x965   :  { %v2333_v57 = vmax.f32 %v2311_v30, %v2330_v62  ;;  %v2520_v62 = vsel %vm106_vm0, %v2474_v44, 0.0  ;;  %v3968_v30 = vpack.c.bf16 %v4320_v58, %v4319_v18 }
 0x967   :  { %v2301_v61 = vpop.permute.xlu1 %2300 }
 0x968   :  { %v2309_v63 = vmul.f32 %v6181_v15, %v2301_v61  ;;  %v2375_v15 = vmul.f32 %v6209_v41, %v2367_v8 }
 0x96a   :  { %v2312_v60 = vmax.f32 %v2290_v13, %v2309_v63 }
 0x96c   :  { %v2341_v35 = vpop.permute.xlu1 %2340  ;;  %v2334_v1 = vmax.f32 %v2312_v60, %v2331_v42  ;;  %v2528_v42 = vsel %vm106_vm0, %v2482_v16, 0.0 }
 0x96d   :  { %v2352_v43 = vmul.f32 %v6203_v24, %v2341_v35 }
 0x96f   :  { %v2355_v17 = vmax.f32 %v2333_v57, %v2352_v43 }
 0x971   :  { %v2363_v54 = vpop.permute.xlu1 %2362 }
 0x972   :  { %v2374_v28 = vmul.f32 %v6209_v41, %v2363_v54  ;;  %v3956_v41 = vpack.c.bf16 %v4300_v46, %v4299_v26  ;;  %v2524_v54 = vsel %vm106_vm0, %v2478_v6, 0.0 }
 0x974   :  { %v2377_v51 = vmax.f32 %v2355_v17, %v2374_v28  ;;  %v2486_v28 = vpop.permute.xlu0 %2485 }
 0x976   :  { %2449 = vmatmul.mubr.f32.gmra.mrb[14].mxu1 %v2377_v51  ;;  %v2345_v10 = vpop.permute.xlu1 %2344 }
 0x977   :  { %v2353_v31 = vmul.f32 %v6203_v24, %v2345_v10  ;;  %2453 = vmatprep.mubr.f32.mxu1 %v6977_v23  ;;  %v6978_v24 = vmov 0.0|0.0  }
 0x979   :  { %v2356_v55 = vmax.f32 %v2334_v1, %v2353_v31 }
 0x97a   :  { %v4288_v25 = vpop.permute.xlu1 %4287 }
 0x97b   :  { %v4290_v2 = vunpack.i.h.bf16 %v4288_v25  ;;  %v4289_v11 = vunpack.i.l.bf16 %v4288_v25  ;;  %v2378_v37 = vmax.f32 %v2356_v55, %v2375_v15  ;;  %v2490_v15 = vpop.permute.xlu0 %2489  ;;  %v2532_v25 = vsel %vm106_vm0, %v2486_v28, 0.0 }
 0x97d   :  { %v3950_v9 = vpack.c.bf16 %v4290_v2, %v4289_v11  ;;  %2454 = vmatmul.mubr.f32.gmra.mrb[16].mxu1 %v2378_v37 }
 0x97e   :  { %v4293_v5 = vpop.permute.xlu1 %4292 }
 0x97f   :  { %v4295_v56 = vunpack.i.h.bf16 %v4293_v5  ;;  %v4294_v39 = vunpack.i.l.bf16 %v4293_v5  ;;  %3951 = vmatpush3.bf16.msra.mxu0 %v3950_v9  ;;  %v2536_v9 = vsel %vm106_vm0, %v2490_v15, 0.0 }
 0x980   :  { %3952 = vmatprep.subr.bf16.mxu0 %v6978_v24 }
 0x981   :  { %v3953_v32 = vpack.c.bf16 %v4295_v56, %v4294_v39  ;;  %v2494_v56 = vpop.permute.xlu0 %2493 }
 0x982   :  { %v4303_v59 = vpop.permute.xlu1 %4302  ;;  %v2540_v52 = vsel %vm106_vm0, %v2494_v56, 0.0  ;;  %v6985_v56 = vld [vmem:[#allocation24_spill] sm:$0xff] }
 0x983   :  { %v4305_v29 = vunpack.i.h.bf16 %v4303_v59  ;;  %v4304_v45 = vunpack.i.l.bf16 %v4303_v59  ;;  %3954 = vmatpush3.bf16.msra.mxu0 %v3953_v32 }
 0x984   :  { %3955 = vmatprep.subr.bf16.mxu0 %v6978_v24 }
 0x985   :  { %v3959_v7 = vpack.c.bf16 %v4305_v29, %v4304_v45 }
 0x986   :  { %v4313_v8 = vpop.permute.xlu1 %4312 }
 0x987   :  { %3957 = vmatpush3.bf16.msra.mxu0 %v3956_v41  ;;  %v4315_v4 = vunpack.i.h.bf16 %v4313_v8  ;;  %v4314_v61 = vunpack.i.l.bf16 %v4313_v8 }
 0x988   :  { %3958 = vmatprep.subr.bf16.mxu0 %v6978_v24 }
 0x989   :  { %v3965_v3 = vpack.c.bf16 %v4315_v4, %v4314_v61 }
 0x98a   :  { %v2468_v21 = vpop.permute.xlu1 %2467 }
 0x98b   :  { %v2514_v38 = vsel %vm106_vm0, %v2468_v21, 0.0  ;;  %3960 = vmatpush3.bf16.msra.mxu0 %v3959_v7  ;;  %v6980_v21 = vmov 0.0  }
 0x98c   :  { %v2515_v53 = vadd.f32 %v2514_v38, %v2513_v49  ;;  %3961 = vmatprep.subr.bf16.mxu0 %v6978_v24 }
 0x98e   :  { %v2470_v12 = vpop.permute.xlu1 %2469 }
 0x98f   :  { %v2516_v33 = vsel %vm106_vm0, %v2470_v12, 0.0  ;;  %3963 = vmatpush3.bf16.msra.mxu0 %v3962_v27 }
 0x990   :  { %v2517_v22 = vadd.f32 %v2516_v33, %v2515_v53  ;;  %3964 = vmatprep.subr.bf16.mxu0 %v6978_v24 }
 0x992   :  { %v2519_v35 = vadd.f32 %v2518_v48, %v2517_v22  ;;  %v4323_v40 = vpop.permute.xlu1 %4322  ;;  %v6981_v48 = vld [vmem:[#allocation27_spill] sm:$0xff] }
 0x993   :  { %v4325_v43 = vunpack.i.h.bf16 %v4323_v40  ;;  %v4324_v50 = vunpack.i.l.bf16 %v4323_v40  ;;  %3966 = vmatpush3.bf16.msra.mxu0 %v3965_v3 }
 0x994   :  { %v2521_v14 = vadd.f32 %v2520_v62, %v2519_v35  ;;  %3967 = vmatprep.subr.bf16.mxu0 %v6978_v24 }
 0x995   :  { %v3971_v57 = vpack.c.bf16 %v4325_v43, %v4324_v50 }
 0x996   :  { %v2476_v63 = vpop.permute.xlu1 %2475 }
 0x997   :  { %v2522_v13 = vsel %vm106_vm0, %v2476_v63, 0.0  ;;  %3969 = vmatpush3.bf16.msra.mxu0 %v3968_v30  ;;  %v6982_v30 = vld [vmem:[#allocation40_spill] sm:$0xff] }
 0x998   :  { %v2523_v17 = vadd.f32 %v2522_v13, %v2521_v14  ;;  %3970 = vmatprep.subr.bf16.mxu0 %v6978_v24 }
 0x99a   :  { %v2525_v60 = vadd.f32 %v2524_v54, %v2523_v17  ;;  %v2480_v51 = vpop.permute.xlu1 %2479 }
 0x99b   :  { %v2526_v20 = vsel %vm106_vm0, %v2480_v51, 0.0  ;;  %3972 = vmatpush3.bf16.msra.mxu0 %v3971_v57 }
 0x99c   :  { %v2527_v10 = vadd.f32 %v2526_v20, %v2525_v60  ;;  %4005 = vmatprep.subr.bf16.mxu0 %v6978_v24 }
 0x99e   :  { %v2529_v1 = vadd.f32 %v2528_v42, %v2527_v10  ;;  %v2484_v31 = vpop.permute.xlu1 %2483 }
 0x99f   :  { %v2530_v55 = vsel %vm106_vm0, %v2484_v31, 0.0 }
 0x9a0   :  { %v2531_v34 = vadd.f32 %v2530_v55, %v2529_v1 }
 0x9a2   :  { %v2533_v2 = vadd.f32 %v2532_v25, %v2531_v34  ;;  %v2488_v11 = vpop.permute.xlu1 %2487  ;;  %v6983_v25 = vld [vmem:[#allocation22_spill] sm:$0xff] }
 0x9a3   :  { %v2534_v37 = vsel %vm106_vm0, %v2488_v11, 0.0 }
 0x9a4   :  { %v2535_v5 = vadd.f32 %v2534_v37, %v2533_v2  ;;  %v6984_v2 = vld [vmem:[#allocation23_spill] sm:$0xff] }
 0x9a6   :  { %v2537_v39 = vadd.f32 %v2536_v9, %v2535_v5  ;;  %v2492_v46 = vpop.permute.xlu1 %2491 }
 0x9a7   :  { %v2538_v26 = vsel %vm106_vm0, %v2492_v46, 0.0 }
 0x9a8   :  { %v2539_v32 = vadd.f32 %v2538_v26, %v2537_v39 }
 0x9aa   :  { %v2541_v59 = vadd.f32 %v2540_v52, %v2539_v32  ;;  %v2496_v41 = vpop.permute.xlu1 %2495 }
 0x9ab   :  { %v2542_v29 = vsel %vm106_vm0, %v2496_v41, 0.0 }
 0x9ac   :  { %v2543_v45 = vadd.f32 %v2542_v29, %v2541_v59 }
 0x9ae   :  { %2544 = vadd.xlane.f32.xlu0 %v2543_v45 }
 0x9d7   :  { %v3417_v8 = vpop.f32.mrb[12].mxu1 }
 0x9d8   :  { %v3418_v44 = vpop.f32.mrb[13].mxu1 }
 0x9d9   :  { %v3419_v7 = vadd.f32 %v3418_v44, %v3417_v8 }
 0x9db   :  { %v2459_v0 = vmax.f32 %v3419_v7, 0.0 }
 0x9dd   :  { %v6296_v49 = vmul.f32 %v2459_v0, %v6979_v47 }
 0x9df   :  { %3711 = vmatmul.mubr.f32.vlgmr.msra.gmra.mrb[18].mxu0 %v6296_v49 }
 0x9e0   :  { %3713 = vmatprep.mubr.msk.f32.mxu0 %vm4470_vm1, %v6980_v21 }
 0xa3b   :  { %v2545_v27 = vpop.xlane.xlu0 %2544 }
 0xa3c   :  { %v2546_v4 = vrot.slane %v2545_v27, 4 }
 0xa3e   :  { %v2547_v61 = vadd.f32 %v2546_v4, %v2545_v27 }
 0xa40   :  { %v2548_v38 = vrot.slane %v2547_v61, 2 }
 0xa42   :  { %v2549_v53 = vadd.f32 %v2548_v38, %v2547_v61  ;;  %v4447_v38 = vld [vmem:[%s6719_s0 + $0x30] sm:$0xff] }
 0xa44   :  { %v2550_v6 = vrot.slane %v2549_v53, 1 }
 0xa46   :  { %v2551_v58 = vadd.f32 %v2550_v6, %v2549_v53  ;;  %v4448_v6 = vld [vmem:[%s6719_s0 + $0x50] sm:$0xff] }
 0xa48   :  { %4061 = vpush %v2551_v58 }
 0xa49   :  { %v3420_v12 = vpop.f32.mrb[14].mxu1 }
 0xa4a   :  { %v3421_v3 = vpop.f32.mrb[15].mxu1 }
 0xa4b   :  { %v3422_v18 = vadd.f32 %v3421_v3, %v3420_v12  ;;  %v6990_v3 = vld [vmem:[#allocation35_spill] sm:$0xff] }
 0xa4d   :  { %v2460_v33 = vmax.f32 %v3422_v18, 0.0 }
 0xa4f   :  { %v6302_v22 = vmul.f32 %v2460_v33, %v6981_v48  ;;  %v4449_v33 = vld [vmem:[%s6719_s0 + $0x10] sm:$0xff] }
 0xa50   :  { %v3423_v62 = vpop.f32.mrb[16].mxu1 }
 0xa51   :  { %v3424_v35 = vpop.f32.mrb[17].mxu1  ;;  %3714 = vmatmul.mubr.f32.gmra.mrb[20].mxu0 %v6302_v22 }
 0xa52   :  { %v3425_v40 = vadd.f32 %v3424_v35, %v3423_v62  ;;  %3716 = vmatprep.mubr.msk.f32.mxu0 %vm4470_vm1, %v6980_v21 }
 0xa54   :  { %v2461_v16 = vmax.f32 %v3425_v40, 0.0 }
 0xa56   :  { %v6308_v43 = vmul.f32 %v2461_v16, %v6982_v30 }
 0xa58   :  { %3717 = vmatmul.mubr.f32.gmra.mrb[22].mxu0 %v6308_v43 }
 0xa59   :  { %3751 = vmatprep.mubr.msk.f32.mxu0 %vm4470_vm1, %v6980_v21 }
 0xa79   :  { %s4062_s16 = spop %4061 }
 0xa7a   :  { %v2553_v50 = vstv %s4062_s16 }
 0xa7b   :  { %4405 = vrsqrt.f32 %v2553_v50 }
 0xa85   :  { %v4406_v14 = vpop.eup %4405 }
 0xa86   :  { %4063 = vpush %v4406_v14 }
 0xab2   :  { %v2670_v63 = vpop.f32.mrb[18].mxu0 }
 0xab3   :  { %v3712_v57 = vpop.f32.mrb[19].mxu0 }
 0xab4   :  { %v6991_v57 = vld [vmem:[#allocation28_spill] sm:$0xff] }
 0xab7   :  { %s4064_s22 = spop %4063 }
 0xab8   :  { %v2684_v13 = vstv %s4064_s22 }
 0xab9   :  { %v2685_v54 = vmul.f32 %v2684_v13, %v2670_v63  ;;  %v6364_v63 = vld [vmem:[%s6719_s0 + $0x18] sm:$0xff] }
 0xabb   :  { %4407 = vtanh.f32 %v2685_v54  ;;  %v6371_v54 = vld [vmem:[%s6719_s0 + $0x38] sm:$0xff] }
 0xac5   :  { %v4408_v17 = vpop.eup %4407 }
 0xac6   :  { %2693 = vperm.xlu1 %4326, %v4408_v17   ;;  %v6992_v17 = vld [vmem:[#allocation31_spill] sm:$0xff] }
 0xb24   :  { %v2675_v28 = vpop.f32.mrb[20].mxu0 }
 0xb25   :  { %v2686_v60 = vmul.f32 %v2684_v13, %v2675_v28  ;;  %v3715_v51 = vpop.f32.mrb[21].mxu0  ;;  %v356_v28 = vmul.f32 %v6371_v54, %v6992_v17 }
 0xb26   :  { %v1597_v51 = vmul.f32 %v6371_v54, %v6981_v48 }
 0xb27   :  { %4409 = vtanh.f32 %v2686_v60  ;;  %v6993_v60 = vmov 1  }
 0xb2b   :  { %v2680_v20 = vpop.f32.mrb[22].mxu0 }
 0xb2c   :  { %v2687_v42 = vmul.f32 %v2684_v13, %v2680_v20  ;;  %v3718_v10 = vpop.f32.mrb[23].mxu0  ;;  %v355_v13 = vmul.f32 %v6364_v63, %v6991_v57  ;;  %v1596_v20 = vmul.f32 %v6364_v63, %v6979_v47 }
 0xb2e   :  { %4411 = vtanh.f32 %v2687_v42  ;;  %v6994_v42 = vmov 2  }
 0xb31   :  { %v4410_v1 = vpop.eup %4409 }
 0xb32   :  { %2698 = vperm.xlu1 %4326, %v4410_v1  }
 0xb38   :  { %v4412_v31 = vpop.eup %4411 }
 0xb39   :  { %2703 = vperm.xlu1 %4326, %v4412_v31  }
 0xb45   :  { %v6313_v15 = vpop.permute.xlu1 %2693 }
 0xb46   :  { %v2706_v11 = vmul.f32 %v6984_v2, %v6313_v15 }
 0xb48   :  { %v2709_v5 = vsel %vm78_vm5, %v2706_v11, 0.0  ;;  %v6996_v11 = vld [vmem:[#allocation26_spill] sm:$0xff] }
 0xbb1   :  { %v6315_v55 = vpop.permute.xlu1 %2698 }
 0xbb2   :  { %v2707_v34 = vmul.f32 %v6983_v25, %v6315_v55  ;;  %v6995_v25 = vld [vmem:[#allocation34_spill] sm:$0xff] }
 0xbb4   :  { %v2710_v37 = vsel %vm78_vm5, %v2707_v34, 0.0 }
 0xbb5   :  { %v2711_v46 = vadd.f32 %v2710_v37, %v2709_v5 }
 0xbb8   :  { %v6322_v9 = vpop.permute.xlu1 %2703 }
 0xbb9   :  { %v2708_v39 = vmul.f32 %v6985_v56, %v6322_v9  ;;  %v6997_v56 = vld [vmem:[#allocation25_spill] sm:$0xff] }
 0xbbb   :  { %v2712_v26 = vsel %vm78_vm5, %v2708_v39, 0.0 }
 0xbbc   :  { %v2713_v52 = vadd.f32 %v2712_v26, %v2711_v46  ;;  %v3242_v26 = vadd.f32 -1.0, %v355_v13 }
 0xbbe   :  { %v2714_v32 = vrot.slane %v2713_v52, 4 }
 0xbc0   :  { %v2715_v59 = vadd.f32 %v2714_v32, %v2713_v52  ;;  %v6998_v52 = vld [vmem:[#allocation29_spill] sm:$0xff] }
 0xbc2   :  { %v2716_v41 = vrot.slane %v2715_v59, 2 }
 0xbc4   :  { %v2717_v29 = vadd.f32 %v2716_v41, %v2715_v59  ;;  %v6999_v59 = vld [vmem:[#allocation32_spill] sm:$0xff] }
 0xbc6   :  { %v2718_v45 = vrot.slane %v2717_v29, 1 }
 0xbc8   :  { %v2719_v8 = vadd.f32 %v2718_v45, %v2717_v29  ;;  %v4452_v29 = vld [vmem:[%s6719_s0 + $0x58] sm:$0xff]  ;;  %v7000_v45 = vld [vmem:[#allocation30_spill] sm:$0xff] }
 0xbc9   :  { %v1598_v7 = vmul.f32 %v4452_v29, %v6982_v30  ;;  %v3243_v30 = vadd.f32 -1.0, %v356_v28 }
 0xbca   :  { %vm2722_vm0 = vcmp.gt.f32.partialorder %v2719_v8, %v6322_v9  ;;  %vm2725_vm7 = vcmp.eq.f32.partialorder %v2719_v8, %v6322_v9  ;;  %vm2724_vm8 = vcmp.eq.f32.partialorder %v2719_v8, %v6315_v55  ;;  %vm2721_vm11 = vcmp.gt.f32.partialorder %v2719_v8, %v6315_v55 }
 0xbcb   :  { %vm2728_vm9 = vmand %vm2725_vm7, %vm274_vm15  ;;  %vm2723_vm13 = vcmp.eq.f32.partialorder %v2719_v8, %v6313_v15  ;;  %vm2720_vm2 = vcmp.gt.f32.partialorder %v2719_v8, %v6313_v15  ;;  %v357_v8 = vmul.f32 %v4452_v29, %v7000_v45 }
 0xbcc   :  { %vm2731_vm12 = vmor %vm2722_vm0, %vm2728_vm9  ;;  %vm464_vm0 = vcmask 1040384  }
 0xbcd   :  { %vm2727_vm14 = vmand %vm2724_vm8, %vm273_vm6  ;;  %v3258_v27 = vsel %vm2731_vm12, 1.0, %v6980_v21 }
 0xbce   :  { %vm2730_vm3 = vmor %vm2721_vm11, %vm2727_vm14  ;;  %v2740_v58 = vmul.f32 %v4448_v6, %v3258_v27  ;;  %v361_v27 = vmul.f32 1e+30, %v3242_v26 }
 0xbcf   :  { %v3257_v4 = vsel %vm2730_vm3, 1.0, %v6980_v21  ;;  %vm2726_vm15 = vmand %vm2723_vm13, %vm272_vm10 }
 0xbd0   :  { %v2739_v53 = vmul.f32 %v4447_v38, %v3257_v4  ;;  %vm2729_vm4 = vmor %vm2720_vm2, %vm2726_vm15  ;;  %v2743_v16 = vmul.f32 %v2740_v58, %v6990_v3  ;;  %v3253_v4 = vadd.f32 -1.0, %v1597_v51 }
 0xbd1   :  { %v3256_v12 = vsel %vm2729_vm4, 1.0, %v6980_v21 }
 0xbd2   :  { %v2742_v18 = vmul.f32 %v2739_v53, %v6990_v3  ;;  %v2738_v62 = vmul.f32 %v4449_v33, %v3256_v12  ;;  %v2750_v14 = vsel %vm78_vm5, %v2743_v16, 0.0  ;;  %v1603_v38 = vmul.f32 1e+30, %v3253_v4 }
 0xbd3   :  { %v3254_v53 = vadd.f32 -1.0, %v1598_v7  ;;  %v3252_v33 = vadd.f32 -1.0, %v1596_v20 }
 0xbd4   :  { %v2747_v35 = vsel %vm78_vm5, %v2742_v18, 0.0  ;;  %v2741_v40 = vmul.f32 %v2738_v62, %v6990_v3  ;;  %v362_v18 = vmul.f32 1e+30, %v3243_v30 }
 0xbd5   :  { %2748 = vadd.xlane.f32.xlu0 %v2747_v35  ;;  %v1604_v3 = vmul.f32 1e+30, %v3254_v53  ;;  %v1602_v62 = vmul.f32 1e+30, %v3252_v33  ;;  %v3244_v35 = vadd.f32 -1.0, %v357_v8 }
 0xbd6   :  { %v2744_v50 = vsel %vm78_vm5, %v2741_v40, 0.0 }
 0xbd7   :  { %2745 = vadd.xlane.f32.xlu1 %v2744_v50  ;;  %v363_v40 = vmul.f32 1e+30, %v3244_v35 }
 0xbd9   :  { %2751 = vadd.xlane.f32.xlu0 %v2750_v14  ;;  %v2766_v14 = vmul.f32 %v6315_v55, %v6302_v22 }
 0xbe8   :  { %392 = vperm.xlu1 %4326, %v355_v13  }
 0xbec   :  { %397 = vperm.xlu1 %4326, %v356_v28  }
 0xbf0   :  { %4328 = vset.pattern.permute.xlu1 %v6993_v60 }
 0xbf1   :  { %441 = vperm.xlu1 %4328, %v355_v13  }
 0xbf5   :  { %445 = vperm.xlu1 %4328, %v356_v28  }
 0xbf9   :  { %4329 = vset.pattern.permute.xlu1 %v6967_v36 }
 0xbfa   :  { %1638 = vperm.xlu1 %4329, %v1597_v51  }
 0xbfe   :  { %4330 = vset.pattern.permute.xlu1 %v6993_v60 }
 0xbff   :  { %1682 = vperm.xlu1 %4330, %v1596_v20  }
 0xc03   :  { %4332 = vset.pattern.permute.xlu1 %v6994_v42 }
 0xc62   :  { %v2749_v10 = vpop.xlane.xlu0 %2748 }
 0xc63   :  { %vm2754_vm5 = vcmp.lt.f32.partialorder %v2749_v10, 6.0 }
 0xc64   :  { %v3260_v1 = vsel %vm2754_vm5, 1.0, %v6980_v21  ;;  %v2746_v31 = vpop.xlane.xlu1 %2745 }
 0xc65   :  { %v2763_v34 = vmul.f32 %v3260_v1, %v6995_v25  ;;  %vm2753_vm6 = vcmp.lt.f32.partialorder %v2746_v31, 6.0 }
 0xc66   :  { %v3259_v48 = vsel %vm2753_vm6, 1.0, %v6980_v21  ;;  %v2752_v2 = vpop.xlane.xlu0 %2751 }
 0xc67   :  { %v2762_v37 = vmul.f32 %v3259_v48, %v6996_v11  ;;  %vm2755_vm10 = vcmp.lt.f32.partialorder %v2752_v2, 6.0  ;;  %2775 = vperm.xlu1 %4332, %v2763_v34  }
 0xc68   :  { %v3261_v47 = vsel %vm2755_vm10, 1.0, %v6980_v21  ;;  %v393_v5 = vpop.permute.xlu1 %392 }
 0xc69   :  { %v2764_v39 = vmul.f32 %v3261_v47, %v6997_v56  ;;  %2770 = vperm.xlu0 %4327, %v2762_v37   ;;  %v405_v32 = vmul.f32 %v393_v5, %v6998_v52 }
 0xc6b   :  { %2780 = vperm.xlu1 %4332, %v2764_v39   ;;  %v7002_v39 = vld [vmem:[#allocation39_spill] sm:$0xff] }
 0xc6c   :  { %v398_v46 = vpop.permute.xlu1 %397 }
 0xc6d   :  { %v406_v41 = vmul.f32 %v398_v46, %v6999_v59  ;;  %4331 = vset.pattern.permute.xlu0 %v6993_v60 }
 0xc6e   :  { %1686 = vperm.xlu0 %4331, %v1597_v51  }
 0xc6f   :  { %v6396_v44 = vadd.f32 %v406_v41, %v405_v32  ;;  %4333 = vset.pattern.permute.xlu1 %v6967_v36 }
 0xc70   :  { %v442_v0 = vpop.permute.xlu1 %441  ;;  %402 = vperm.xlu1 %4333, %v357_v8  }
 0xc71   :  { %v452_v6 = vmul.f32 %v442_v0, %v6998_v52 }
 0xc72   :  { %418 = vperm.xlu0 %4331, %v361_v27  }
 0xc74   :  { %v446_v61 = vpop.permute.xlu1 %445  ;;  %4334 = vset.pattern.permute.xlu1 %v6993_v60 }
 0xc75   :  { %v453_v58 = vmul.f32 %v446_v61, %v6999_v59  ;;  %449 = vperm.xlu1 %4334, %v357_v8  }
 0xc76   :  { %1663 = vperm.xlu0 %4331, %v1603_v38  }
 0xc77   :  { %v6403_v12 = vadd.f32 %v453_v58, %v452_v6 }
 0xc79   :  { %1690 = vperm.xlu1 %4334, %v1598_v7   ;;  %v1639_v16 = vpop.permute.xlu1 %1638 }
 0xc7a   :  { %1667 = vperm.xlu0 %4331, %v1604_v3   ;;  %v1647_v30 = vmul.f32 %v1639_v16, %v6968_v19  ;;  %v2916_v16 = vld [vmem:[%s6720_s2 + $0x1a8] sm:$0xff] }
 0xc7d   :  { %4335 = vset.pattern.permute.xlu1 %v6967_v36 }
 0xc7e   :  { %4340 = vset.pattern.permute.xlu0 %v6967_v36  ;;  %366 = vperm.xlu1 %4335, %v361_v27   ;;  %v1683_v50 = vpop.permute.xlu1 %1682 }
 0xc7f   :  { %1633 = vperm.xlu0 %4340, %v1596_v20   ;;  %v1693_v46 = vmul.f32 %v1683_v50, %v7002_v39 }
 0xc82   :  { %371 = vperm.xlu1 %4335, %v362_v18  }
 0xc83   :  { %1643 = vperm.xlu0 %4340, %v1598_v7  }
 0xc86   :  { %4336 = vset.pattern.permute.xlu1 %v6993_v60 }
 0xc87   :  { %1607 = vperm.xlu0 %4340, %v1602_v62   ;;  %422 = vperm.xlu1 %4336, %v362_v18  }
 0xc8b   :  { %376 = vperm.xlu0 %4340, %v363_v40   ;;  %4337 = vset.pattern.permute.xlu1 %v6967_v36 }
 0xc8c   :  { %1612 = vperm.xlu1 %4337, %v1603_v38  }
 0xc90   :  { %4338 = vset.pattern.permute.xlu1 %v6993_v60 }
 0xc91   :  { %1659 = vperm.xlu1 %4338, %v1602_v62  }
 0xc95   :  { %426 = vperm.xlu1 %4338, %v363_v40  }
 0xc99   :  { %4339 = vset.pattern.permute.xlu1 %v6967_v36 }
 0xc9a   :  { %1617 = vperm.xlu1 %4339, %v1604_v3  }
 0xce6   :  { %v2776_v57 = vpop.permute.xlu1 %2775 }
 0xce7   :  { %v6413_v13 = vmul.f32 %v2776_v57, %v2766_v14  ;;  %v2787_v17 = vmul.f32 %v6371_v54, %v2776_v57  ;;  %v7001_v54 = vld [vmem:[#allocation33_spill] sm:$0xff] }
 0xce8   :  { %v6416_v28 = vpop.permute.xlu0 %2770 }
 0xce9   :  { %v2786_v51 = vmul.f32 %v6364_v63, %v6416_v28  ;;  %2828 = vperm.xlu0 %4340, %v2787_v17   ;;  %v3263_v4 = vadd.f32 -1.0, %v2787_v17 }
 0xcea   :  { %v6420_v20 = vpop.permute.xlu1 %2780 }
 0xceb   :  { %2823 = vperm.xlu1 %4339, %v2786_v51   ;;  %v3262_v42 = vadd.f32 -1.0, %v2786_v51  ;;  %v2788_v10 = vmul.f32 %v4452_v29, %v6420_v20  ;;  %v2793_v18 = vmul.f32 1e+30, %v3263_v4 }
 0xced   :  { %v1687_v1 = vpop.permute.xlu0 %1686  ;;  %4342 = vset.pattern.permute.xlu0 %v6993_v60  ;;  %v2792_v55 = vmul.f32 1e+30, %v3262_v42  ;;  %v3264_v25 = vadd.f32 -1.0, %v2788_v10 }
 0xcee   :  { %2876 = vperm.xlu0 %4342, %v2787_v17   ;;  %v1694_v37 = vmul.f32 %v1687_v1, %v6968_v19  ;;  %v2899_v1 = vld [vmem:[%s6720_s2 + $0x10] sm:$0xff] }
 0xcef   :  { %4341 = vset.pattern.permute.xlu1 %v6993_v60  ;;  %v403_v22 = vpop.permute.xlu1 %402  ;;  %v6430_v11 = vmul.f32 1e+30, %v3264_v25 }
 0xcf0   :  { %2872 = vperm.xlu1 %4341, %v2786_v51   ;;  %v407_v31 = vmul.f32 %v403_v22, %v7001_v54  ;;  %v1696_v29 = vadd.f32 %v1694_v37, %v1693_v46  ;;  %v2900_v22 = vld [vmem:[%s6720_s2 + $0x28] sm:$0xff]  ;;  %v2918_v37 = vld [vmem:[%s6720_s2 + $0x1d8] sm:$0xff] }
 0xcf1   :  { %v6426_v63 = vpop.permute.xlu0 %418  ;;  %v3975_v25 = vpack.c.bf16 %v2900_v22, %v2899_v1  ;;  %v2927_v1 = vld [vmem:[%s6720_s2 + $0x2b0] sm:$0xff] }
 0xcf2   :  { %v409_v34 = vadd.f32 %v6396_v44, %v407_v31  ;;  %2849 = vperm.xlu0 %4342, %v2792_v55  }
 0xcf4   :  { %v410_v48 = vrot.slane %v409_v34, 4  ;;  %4343 = vset.pattern.permute.xlu1 %v6967_v36  ;;  %v450_v2 = vpop.permute.xlu1 %449 }
 0xcf5   :  { %v6433_v47 = vpop.permute.xlu0 %1663  ;;  %2833 = vperm.xlu1 %4343, %v2788_v10   ;;  %v454_v5 = vmul.f32 %v450_v2, %v7001_v54  ;;  %v2917_v2 = vld [vmem:[%s6720_s2 + $0x1c0] sm:$0xff] }
 0xcf6   :  { %v411_v56 = vadd.f32 %v410_v48, %v409_v34  ;;  %4347 = vset.pattern.permute.xlu0 %v6967_v36 }
 0xcf7   :  { %v456_v26 = vadd.f32 %v6403_v12, %v454_v5  ;;  %2807 = vperm.xlu0 %4347, %v6430_v11   ;;  %v3977_v5 = vpack.c.bf16 %v2918_v37, %v2917_v2  ;;  %v2930_v2 = vld [vmem:[%s6720_s2 + $0x2f8] sm:$0xff] }
 0xcf8   :  { %v412_v32 = vrot.slane %v411_v56, 2  ;;  %v1691_v41 = vpop.permute.xlu1 %1690 }
 0xcf9   :  { %v457_v45 = vrot.slane %v456_v26, 4  ;;  %v6440_v8 = vpop.permute.xlu0 %1667  ;;  %4344 = vset.pattern.permute.xlu1 %v6993_v60  ;;  %v1695_v44 = vmul.f32 %v1691_v41, %v6977_v23 }
 0xcfa   :  { %v413_v7 = vadd.f32 %v412_v32, %v411_v56  ;;  %2880 = vperm.xlu1 %4344, %v2788_v10   ;;  %v2902_v56 = vld [vmem:[%s6720_s2 + $0x58] sm:$0xff] }
 0xcfb   :  { %v458_v0 = vadd.f32 %v457_v45, %v456_v26  ;;  %v1697_v27 = vadd.f32 %v1696_v29, %v1695_v44  ;;  %4388 = vset.pattern.permute.xlu0 %v6993_v60  ;;  %v2919_v29 = vld [vmem:[%s6720_s2 + $0x1f0] sm:$0xff]  ;;  %v2920_v45 = vld [vmem:[%s6720_s2 + $0x208] sm:$0xff] }
 0xcfc   :  { %v414_v53 = vrot.slane %v413_v7, 1  ;;  %v3981_v44 = vpack.c.bf16 %v2920_v45, %v2919_v29  ;;  %v3010_v29 = vld [vmem:[%s6718_s1 + $0x70] sm:$0xff] }
 0xcfd   :  { %v459_v61 = vrot.slane %v458_v0, 2  ;;  %v1698_v38 = vrot.slane %v1697_v27, 4 }
 0xcfe   :  { %v1634_v6 = vpop.permute.xlu0 %1633  ;;  %4345 = vset.pattern.permute.xlu1 %v6967_v36  ;;  %v415_v62 = vadd.f32 %v414_v53, %v413_v7  ;;  %v2915_v36 = vld [vmem:[%s6720_s2 + $0x190] sm:$0xff]  ;;  %v2922_v53 = vld [vmem:[%s6720_s2 + $0x238] sm:$0xff] }
 0xcff   :  { %v460_v58 = vadd.f32 %v459_v61, %v458_v0  ;;  %v1699_v12 = vadd.f32 %v1698_v38, %v1697_v27  ;;  %v1646_v3 = vmul.f32 %v1634_v6, %v7002_v39  ;;  %2797 = vperm.xlu1 %4345, %v2792_v55   ;;  %v3973_v10 = vpack.c.bf16 %v2916_v16, %v2915_v36  ;;  %v2903_v7 = vld [vmem:[%s6720_s2 + $0x70] sm:$0xff]  ;;  %v2921_v38 = vld [vmem:[%s6720_s2 + $0x220] sm:$0xff]  ;;  %v2926_v36 = vld [vmem:[%s6720_s2 + $0x298] sm:$0xff] }
 0xd00   :  { %v416_v42 = vmul.f32 0.125, %v415_v62  ;;  %v3985_v6 = vpack.c.bf16 %v2922_v53, %v2921_v38  ;;  %v2924_v62 = vld [vmem:[%s6720_s2 + $0x268] sm:$0xff]  ;;  %v3015_v38 = vld [vmem:[%s6718_s1 + $0x110] sm:$0xff] }
 0xd01   :  { %v461_v33 = vrot.slane %v460_v58, 1  ;;  %v1700_v50 = vrot.slane %v1699_v12, 2  ;;  %v1649_v14 = vadd.f32 %v1647_v30, %v1646_v3  ;;  %3974 = vmatprep.subr.bf16.mxu1 %v3973_v10  ;;  %v2910_v10 = vld [vmem:[%s6720_s2 + $0x118] sm:$0xff]  ;;  %v3016_v53 = vld [vmem:[%s6718_s1 + $0x130] sm:$0xff] }
 0xd02   :  { %v1644_v35 = vpop.permute.xlu0 %1643  ;;  %3976 = vmatpush3.bf16.msra.mxu1 %v3975_v25  ;;  %v2912_v25 = vld [vmem:[%s6720_s2 + $0x148] sm:$0xff] }
 0xd03   :  { %v462_v40 = vadd.f32 %v461_v33, %v460_v58  ;;  %v1648_v57 = vmul.f32 %v1644_v35, %v6977_v23  ;;  %2802 = vperm.xlu1 %4345, %v2793_v18   ;;  %v1701_v55 = vadd.f32 %v1700_v50, %v1699_v12  ;;  %3978 = vmatprep.subr.bf16.mxu1 %v3977_v5  ;;  %v2905_v58 = vld [vmem:[%s6720_s2 + $0xa0] sm:$0xff]  ;;  %v2906_v12 = vld [vmem:[%s6720_s2 + $0xb8] sm:$0xff]  ;;  %v2923_v33 = vld [vmem:[%s6720_s2 + $0x250] sm:$0xff] }
 0xd04   :  { %v2913_v5 = vld [vmem:[%s6720_s2 + $0x160] sm:$0xff] }
 0xd05   :  { %v463_v17 = vmul.f32 0.125, %v462_v40  ;;  %v1650_v51 = vadd.f32 %v1649_v14, %v1648_v57  ;;  %v1702_v46 = vrot.slane %v1701_v55, 1  ;;  %v3989_v40 = vpack.c.bf16 %v2924_v62, %v2923_v33  ;;  %v2907_v14 = vld [vmem:[%s6720_s2 + $0xd0] sm:$0xff]  ;;  %v2908_v57 = vld [vmem:[%s6720_s2 + $0xe8] sm:$0xff] }
 0xd07   :  { %v1651_v31 = vrot.slane %v1650_v51, 4  ;;  %4346 = vset.pattern.permute.xlu1 %v6993_v60  ;;  %v466_v34 = vsel %vm464_vm0, %v416_v42, %v463_v17  ;;  %v2901_v60 = vld [vmem:[%s6720_s2 + $0x40] sm:$0xff]  ;;  %v1703_v0 = vadd.f32 %v1702_v46, %v1701_v55  ;;  %v3991_v17 = vpack.c.bf16 %v2908_v57, %v2907_v14  ;;  %v2928_v55 = vld [vmem:[%s6720_s2 + $0x2c8] sm:$0xff]  ;;  %v3007_v46 = vld [vmem:[%s6718_s1 + $0x10] sm:$0xff] }
 0xd08   :  { %2853 = vperm.xlu1 %4346, %v2793_v18   ;;  %v3979_v32 = vpack.c.bf16 %v2902_v56, %v2901_v60  ;;  %v3987_v18 = vpack.c.bf16 %v2906_v12, %v2905_v58  ;;  %v2909_v42 = vld [vmem:[%s6720_s2 + $0x100] sm:$0xff]  ;;  %v2914_v60 = vld [vmem:[%s6720_s2 + $0x178] sm:$0xff]  ;;  %v3017_v58 = vld [vmem:[%s6718_s1 + $0x150] sm:$0xff] }
 0xd09   :  { %v1652_v48 = vadd.f32 %v1651_v31, %v1650_v51  ;;  %v1704_v3 = vmul.f32 0.14285715, %v1703_v0  ;;  %v2925_v51 = vld [vmem:[%s6720_s2 + $0x280] sm:$0xff]  ;;  %v3995_v22 = vpack.c.bf16 %v2910_v10, %v2909_v42  ;;  %v2911_v31 = vld [vmem:[%s6720_s2 + $0x130] sm:$0xff]  ;;  %v4003_v45 = vpack.c.bf16 %v2914_v60, %v2913_v5 }
 0xd0a   :  { %3980 = vmatpush3.bf16.msra.mxu1 %v3979_v32  ;;  %v3993_v16 = vpack.c.bf16 %v2926_v36, %v2925_v51  ;;  %v3999_v37 = vpack.c.bf16 %v2912_v25, %v2911_v31  ;;  %v3009_v32 = vld [vmem:[%s6718_s1 + $0x50] sm:$0xff]  ;;  %v2765_v51 = vmul.f32 %v6313_v15, %v6296_v49  ;;  %v1671_v60 = vadd.f32 %v6433_v47, %v6968_v19 }
 0xd0b   :  { %v1653_v26 = vrot.slane %v1652_v48, 2  ;;  %3982 = vmatprep.subr.bf16.mxu1 %v3981_v44  ;;  %v4009_v44 = vpack.c.bf16 %v3010_v29, %v3009_v32  ;;  %v3018_v12 = vld [vmem:[%s6718_s1 + $0x170] sm:$0xff]  ;;  %v429_v29 = vadd.f32 %v6426_v63, %v6998_v52  ;;  %v1672_v47 = vadd.f32 %v6440_v8, %v6977_v23 }
 0xd0c   :  { %2857 = vperm.xlu1 %4346, %v6430_v11   ;;  %v2904_v11 = vld [vmem:[%s6720_s2 + $0x88] sm:$0xff] }
 0xd0d   :  { %v1654_v41 = vadd.f32 %v1653_v26, %v1652_v48  ;;  %v3983_v4 = vpack.c.bf16 %v2904_v11, %v2903_v7  ;;  %v2929_v48 = vld [vmem:[%s6720_s2 + $0x2e0] sm:$0xff]  ;;  %v3008_v26 = vld [vmem:[%s6718_s1 + $0x30] sm:$0xff] }
 0xd0e   :  { %v4001_v56 = vpack.c.bf16 %v2930_v2, %v2929_v48  ;;  %v3011_v7 = vld [vmem:[%s6718_s1 + $0x90] sm:$0xff]  ;;  %v2767_v48 = vmul.f32 %v6322_v9, %v6308_v43 }
 0xd0f   :  { %v1655_v27 = vrot.slane %v1654_v41, 1  ;;  %3984 = vmatpush3.bf16.msra.mxu1 %v3983_v4  ;;  %v3012_v11 = vld [vmem:[%s6718_s1 + $0xb0] sm:$0xff] }
 0xd10   :  { %3986 = vmatprep.subr.bf16.mxu1 %v3985_v6  ;;  %v4012_v0 = vpack.c.bf16 %v3012_v11, %v3011_v7  ;;  %v3014_v4 = vld [vmem:[%s6718_s1 + $0xf0] sm:$0xff]  ;;  %v4018_v6 = vpack.c.bf16 %v3016_v53, %v3015_v38  ;;  %v6606_v15 = vmul.f32 %v6420_v20, %v2767_v48 }
 0xd11   :  { %v1656_v61 = vadd.f32 %v1655_v27, %v1654_v41  ;;  %v4006_v41 = vpack.c.bf16 %v3008_v26, %v3007_v46  ;;  %v3013_v27 = vld [vmem:[%s6718_s1 + $0xd0] sm:$0xff] }
 0xd13   :  { %v1657_v30 = vmul.f32 0.14285715, %v1656_v61  ;;  %3988 = vmatpush3.bf16.msra.mxu1 %v3987_v18  ;;  %4007 = vmatpush3.bf16.msra.mxu0 %v4006_v41  ;;  %v4015_v61 = vpack.c.bf16 %v3014_v4, %v3013_v27 }
 0xd14   :  { %3990 = vmatprep.subr.bf16.mxu1 %v3989_v40  ;;  %4008 = vmatprep.subr.bf16.mxu0 %v6978_v24  ;;  %v1608_v40 = vpop.permute.xlu0 %1607 }
 0xd15   :  { %v1706_v35 = vsel %vm464_vm0, %v1657_v30, %v1704_v3  ;;  %v4021_v3 = vpack.c.bf16 %v3018_v12, %v3017_v58  ;;  %v367_v30 = vpop.permute.xlu1 %366  ;;  %v1620_v46 = vadd.f32 %v1608_v40, %v7002_v39 }
 0xd16   :  { %v6507_v50 = vadd.f32 %v1706_v35, %v466_v34  ;;  %v3997_v34 = vpack.c.bf16 %v2928_v55, %v2927_v1 }
 0xd17   :  { %3992 = vmatpush3.bf16.msra.mxu1 %v3991_v17  ;;  %4010 = vmatpush3.bf16.msra.mxu0 %v4009_v44 }
 0xd18   :  { %3994 = vmatprep.subr.bf16.mxu1 %v3993_v16  ;;  %4011 = vmatprep.subr.bf16.mxu0 %v6978_v24  ;;  %v377_v57 = vpop.permute.xlu0 %376  ;;  %v6597_v16 = vmul.f32 %v6416_v28, %v2765_v51 }
 0xd19   :  { %v372_v18 = vpop.permute.xlu1 %371  ;;  %v381_v7 = vadd.f32 %v377_v57, %v7001_v54 }
 0xd1a   :  { %v380_v9 = vadd.f32 %v372_v18, %v6999_v59 }
 0xd1b   :  { %3996 = vmatpush3.bf16.msra.mxu1 %v3995_v22  ;;  %4013 = vmatpush3.bf16.msra.mxu0 %v4012_v0 }
 0xd1c   :  { %3998 = vmatprep.subr.bf16.mxu1 %v3997_v34  ;;  %4014 = vmatprep.subr.bf16.mxu0 %v6978_v24 }
 0xd1d   :  { %v423_v33 = vpop.permute.xlu1 %422 }
 0xd1e   :  { %v430_v26 = vadd.f32 %v423_v33, %v6999_v59 }
 0xd1f   :  { %4000 = vmatpush3.bf16.msra.mxu1 %v3999_v37  ;;  %4016 = vmatpush3.bf16.msra.mxu0 %v4015_v61 }
 0xd20   :  { %4002 = vmatprep.subr.bf16.mxu1 %v4001_v56  ;;  %4017 = vmatprep.subr.bf16.mxu0 %v6978_v24  ;;  %v432_v59 = vmax.f32 %v429_v29, %v430_v26 }
 0xd21   :  { %v1613_v62 = vpop.permute.xlu1 %1612 }
 0xd22   :  { %v1621_v5 = vadd.f32 %v1613_v62, %v6968_v19 }
 0xd23   :  { %4004 = vmatpush3.bf16.msra.mxu1 %v4003_v45  ;;  %4019 = vmatpush3.bf16.msra.mxu0 %v4018_v6 }
 0xd24   :  { %4029 = vmatprep.subr.bf16.mxu1 %v6978_v24  ;;  %4020 = vmatprep.subr.bf16.mxu0 %v6978_v24  ;;  %v1623_v45 = vmax.f32 %v1620_v46, %v1621_v5 }
 0xd25   :  { %v1660_v35 = vpop.permute.xlu1 %1659 }
 0xd26   :  { %v1670_v2 = vadd.f32 %v1660_v35, %v7002_v39  ;;  %v379_v39 = vadd.f32 %v367_v30, %v6998_v52 }
 0xd27   :  { %4022 = vmatpush3.bf16.msra.mxu0 %v4021_v3 }
 0xd28   :  { %4023 = vmatprep.subr.bf16.mxu0 %v6978_v24  ;;  %v1673_v20 = vmax.f32 %v1670_v2, %v1671_v60  ;;  %v382_v61 = vmax.f32 %v379_v39, %v380_v9 }
 0xd29   :  { %v427_v14 = vpop.permute.xlu1 %426 }
 0xd2a   :  { %v431_v44 = vadd.f32 %v427_v14, %v7001_v54  ;;  %v1674_v38 = vmax.f32 %v1673_v20, %v1672_v47  ;;  %v383_v12 = vmax.f32 %v382_v61, %v381_v7 }
 0xd2c   :  { %v433_v53 = vmax.f32 %v432_v59, %v431_v44  ;;  %v384_v35 = vrot.slane %v383_v12, 4 }
 0xd2d   :  { %v1618_v17 = vpop.permute.xlu1 %1617 }
 0xd2e   :  { %v1622_v43 = vadd.f32 %v1618_v17, %v6977_v23  ;;  %v1675_v23 = vrot.slane %v1674_v38, 4  ;;  %v434_v8 = vrot.slane %v433_v53, 4 }
 0xd30   :  { %v1624_v0 = vmax.f32 %v1623_v45, %v1622_v43  ;;  %v1676_v51 = vmax.f32 %v1674_v38, %v1675_v23 }
 0xd32   :  { %v1625_v18 = vrot.slane %v1624_v0, 4  ;;  %v1677_v2 = vrot.slane %v1676_v51, 2 }
 0xd34   :  { %v1626_v57 = vmax.f32 %v1624_v0, %v1625_v18 }
 0xd68   :  { %v2829_v36 = vpop.permute.xlu0 %2828 }
 0xd69   :  { %v2837_v42 = vmul.f32 %v2829_v36, %v6413_v13 }
 0xd6a   :  { %v2824_v10 = vpop.permute.xlu1 %2823 }
 0xd6b   :  { %v2836_v1 = vmul.f32 %v2824_v10, %v6597_v16  ;;  %v435_v10 = vmax.f32 %v433_v53, %v434_v8 }
 0xd6d   :  { %v2839_v22 = vadd.f32 %v2837_v42, %v2836_v1  ;;  %v2877_v55 = vpop.permute.xlu0 %2876  ;;  %v436_v5 = vrot.slane %v435_v10, 2 }
 0xd6e   :  { %v2884_v31 = vmul.f32 %v2877_v55, %v6413_v13  ;;  %v385_v55 = vmax.f32 %v383_v12, %v384_v35  ;;  %v3022_v35 = vld [vmem:[%s6718_s1 + $0x1f0] sm:$0xff] }
 0xd6f   :  { %v2873_v25 = vpop.permute.xlu1 %2872  ;;  %v437_v45 = vmax.f32 %v435_v10, %v436_v5  ;;  %v4458_v10 = vld [vmem:[%s6718_s1 + $0xb8] sm:$0xff] }
 0xd70   :  { %v2883_v34 = vmul.f32 %v2873_v25, %v6597_v16  ;;  %v386_v9 = vrot.slane %v385_v55, 2  ;;  %v4466_v5 = vld [vmem:[%s6718_s1 + $0x1b8] sm:$0xff] }
 0xd71   :  { %v2850_v27 = vpop.permute.xlu0 %2849 }
 0xd72   :  { %v2886_v49 = vadd.f32 %v2884_v31, %v2883_v34  ;;  %v1627_v34 = vrot.slane %v1626_v57, 2  ;;  %v2860_v48 = vadd.f32 %v2850_v27, %v6597_v16 }
 0xd74   :  { %v2834_v28 = vpop.permute.xlu1 %2833  ;;  %v1628_v20 = vmax.f32 %v1626_v57, %v1627_v34  ;;  %v4455_v57 = vld [vmem:[%s6718_s1 + $0x58] sm:$0xff] }
 0xd75   :  { %v2838_v37 = vmul.f32 %v2834_v28, %v6606_v15  ;;  %v4462_v34 = vld [vmem:[%s6718_s1 + $0x138] sm:$0xff] }
 0xd76   :  { %v2808_v30 = vpop.permute.xlu0 %2807  ;;  %v1629_v47 = vrot.slane %v1628_v20, 1 }
 0xd77   :  { %v2840_v56 = vadd.f32 %v2839_v22, %v2838_v37  ;;  %v2812_v36 = vadd.f32 %v2808_v30, %v6606_v15  ;;  %v3020_v30 = vld [vmem:[%s6718_s1 + $0x1b0] sm:$0xff] }
 0xd79   :  { %v2841_v32 = vrot.slane %v2840_v56, 4  ;;  %v2881_v41 = vpop.permute.xlu1 %2880 }
 0xd7a   :  { %v2885_v19 = vmul.f32 %v2881_v41, %v6606_v15 }
 0xd7b   :  { %v2842_v11 = vadd.f32 %v2841_v32, %v2840_v56 }
 0xd7c   :  { %v2887_v4 = vadd.f32 %v2886_v49, %v2885_v19  ;;  %v387_v19 = vmax.f32 %v385_v55, %v386_v9  ;;  %v4460_v55 = vld [vmem:[%s6718_s1 + $0xf8] sm:$0xff] }
 0xd7d   :  { %v2843_v63 = vrot.slane %v2842_v11, 2 }
 0xd7e   :  { %v2888_v6 = vrot.slane %v2887_v4, 4  ;;  %v2798_v58 = vpop.permute.xlu1 %2797  ;;  %v388_v27 = vrot.slane %v387_v19, 1 }
 0xd7f   :  { %v2844_v3 = vadd.f32 %v2843_v63, %v2842_v11  ;;  %v2810_v40 = vadd.f32 %v2798_v58, %v6597_v16  ;;  %v1678_v16 = vmax.f32 %v1676_v51, %v1677_v2  ;;  %v438_v11 = vrot.slane %v437_v45, 1 }
 0xd80   :  { %v2889_v33 = vadd.f32 %v2888_v6, %v2887_v4  ;;  %v1630_v4 = vmax.f32 %v1628_v20, %v1629_v47 }
 0xd81   :  { %v2845_v52 = vrot.slane %v2844_v3, 1  ;;  %v1679_v7 = vrot.slane %v1678_v16, 1  ;;  %v439_v38 = vmax.f32 %v437_v45, %v438_v11 }
 0xd82   :  { %v2890_v54 = vrot.slane %v2889_v33, 2  ;;  %v2803_v62 = vpop.permute.xlu1 %2802 }
 0xd83   :  { %v2811_v14 = vadd.f32 %v2803_v62, %v6413_v13  ;;  %v2846_v1 = vadd.f32 %v2845_v52, %v2844_v3  ;;  %v3019_v52 = vld [vmem:[%s6718_s1 + $0x190] sm:$0xff] }
 0xd84   :  { %v2891_v17 = vadd.f32 %v2890_v54, %v2889_v33  ;;  %v3021_v54 = vld [vmem:[%s6718_s1 + $0x1d0] sm:$0xff]  ;;  %v4024_v62 = vpack.c.bf16 %v3020_v30, %v3019_v52 }
 0xd85   :  { %v2813_v42 = vmax.f32 %v2810_v40, %v2811_v14  ;;  %v2847_v60 = vmul.f32 0.16666667, %v2846_v1  ;;  %v4454_v40 = vld [vmem:[%s6718_s1 + $0x38] sm:$0xff] }
 0xd86   :  { %v2892_v22 = vrot.slane %v2891_v17, 1  ;;  %4025 = vmatpush3.bf16.msra.mxu0 %v4024_v62 }
 0xd87   :  { %v2814_v31 = vmax.f32 %v2813_v42, %v2812_v36  ;;  %v2854_v25 = vpop.permute.xlu1 %2853  ;;  %v4027_v36 = vpack.c.bf16 %v3022_v35, %v3021_v54  ;;  %4026 = vmatprep.subr.bf16.mxu0 %v6978_v24  ;;  %v4457_v42 = vld [vmem:[%s6718_s1 + $0x98] sm:$0xff] }
 0xd88   :  { %v2893_v49 = vadd.f32 %v2892_v22, %v2891_v17  ;;  %v2861_v28 = vadd.f32 %v2854_v25, %v6413_v13  ;;  %v4456_v17 = vld [vmem:[%s6718_s1 + $0x78] sm:$0xff]  ;;  %v4358_v1 = vpack.i.bf16 %v4458_v10, %v4457_v42 }
 0xd89   :  { %v2815_v37 = vrot.slane %v2814_v31, 4  ;;  %v4353_v51 = vpack.i.bf16 %v4456_v17, %v4455_v57  ;;  %v4459_v22 = vld [vmem:[%s6718_s1 + $0xd8] sm:$0xff] }
 0xd8a   :  { %v2894_v56 = vmul.f32 0.16666667, %v2893_v49  ;;  %v2863_v46 = vmax.f32 %v2860_v48, %v2861_v28  ;;  %4028 = vmatpush3.bf16.msra.mxu0 %v4027_v36  ;;  %v4461_v25 = vld [vmem:[%s6718_s1 + $0x118] sm:$0xff] }
 0xd8b   :  { %v2816_v26 = vmax.f32 %v2814_v31, %v2815_v37  ;;  %v2858_v43 = vpop.permute.xlu1 %2857  ;;  %4354 = vrot.lane.b32.xlu0 %v4353_v51, %s4498_s29  ;;  %v4363_v31 = vpack.i.bf16 %v4460_v55, %v4459_v22  ;;  %v4368_v48 = vpack.i.bf16 %v4462_v34, %v4461_v25  ;;  %v4463_v49 = vld [vmem:[%s6718_s1 + $0x158] sm:$0xff]  ;;  %v3267_v51 = vld [vmem:[%s6721_s3 + $0x4] ss:$0 sm:$0xff] }
 0xd8c   :  { %v2862_v32 = vadd.f32 %v2858_v43, %v6606_v15  ;;  %v2896_v41 = vsel %vm464_vm0, %v2847_v60, %v2894_v56  ;;  %v1680_v15 = vmax.f32 %v1678_v16, %v1679_v7  ;;  %v4464_v28 = vld [vmem:[%s6718_s1 + $0x178] sm:$0xff] }
 0xd8d   :  { %v2898_v29 = vadd.f32 %v2896_v41, %v6507_v50  ;;  %v2817_v44 = vrot.slane %v2816_v26, 2  ;;  %v389_v50 = vmax.f32 %v387_v19, %v388_v27  ;;  %v4373_v2 = vpack.i.bf16 %v4464_v28, %v4463_v49  ;;  %v4465_v37 = vld [vmem:[%s6718_s1 + $0x198] sm:$0xff] }
 0xd8e   :  { %v2864_v13 = vmax.f32 %v2863_v46, %v2862_v32  ;;  %v1705_v6 = vsel %vm464_vm0, %v1630_v4, %v1680_v15  ;;  %v4378_v60 = vpack.i.bf16 %v4466_v5, %v4465_v37  ;;  %v4467_v56 = vld [vmem:[%s6718_s1 + $0x1d8] sm:$0xff] }
 0xd8f   :  { %3000 = vmatprep.mubr.f32.mxu1 %v2898_v29  ;;  %v2818_v59 = vmax.f32 %v2816_v26, %v2817_v44  ;;  %v465_v12 = vsel %vm464_vm0, %v389_v50, %v439_v38  ;;  %4364 = vrot.lane.b32.xlu0 %v4363_v31, %s4498_s29  ;;  %v4468_v46 = vld [vmem:[%s6718_s1 + $0x1f8] sm:$0xff] }
 0xd90   :  { %v2865_v39 = vrot.slane %v2864_v13, 4  ;;  %v1707_v33 = vadd.f32 %v1705_v6, %v465_v12  ;;  %v4383_v26 = vpack.i.bf16 %v4468_v46, %v4467_v56 }
 0xd91   :  { %v2819_v63 = vrot.slane %v2818_v59, 1 }
 0xd92   :  { %v2866_v0 = vmax.f32 %v2864_v13, %v2865_v39  ;;  %v3265_v13 = vld [vmem:[%s6721_s3 + $0x2] ss:$0 sm:$0xff] }
 0xd93   :  { %v2820_v3 = vmax.f32 %v2818_v59, %v2819_v63  ;;  %4374 = vrot.lane.b32.xlu0 %v4373_v2, %s4498_s29 }
 0xd94   :  { %v2867_v61 = vrot.slane %v2866_v0, 2 }
 0xd96   :  { %v2868_v53 = vmax.f32 %v2866_v0, %v2867_v61 }
 0xd97   :  { %4384 = vrot.lane.b32.xlu0 %v4383_v26, %s4498_s29 }
 0xd98   :  { %v2869_v58 = vrot.slane %v2868_v53, 1 }
 0xd9a   :  { %v2870_v18 = vmax.f32 %v2868_v53, %v2869_v58 }
 0xd9c   :  { %v2895_v23 = vsel %vm464_vm0, %v2820_v3, %v2870_v18 }
 0xd9d   :  { %v2897_v8 = vadd.f32 %v2895_v23, %v1707_v33 }
 0xd9f   :  { %3001 = vmatmul.mubr.f32.vlgmr.msra.gmra.mrb[18].mxu1 %v2897_v8 }
 0xda0   :  { %3786 = vmatprep.mubr.msk.f32.mxu1 %vm4470_vm1, %v6980_v21  ;;  %v4453_v21 = vld [vmem:[%s6718_s1 + $0x18] sm:$0xff]  ;;  %vm3227_vm1 = vcmask 1024  }
 0xda1   :  { %v4348_v14 = vpack.i.bf16 %v4454_v40, %v4453_v21  ;;  %v3266_v21 = vld [vmem:[%s6721_s3 + $0x3] ss:$0 sm:$0xff] }
 0xda3   :  { %4349 = vrot.lane.b32.xlu1 %v4348_v14, %s4498_s29 }
 0xda7   :  { %4359 = vrot.lane.b32.xlu1 %v4358_v1, %s4498_s29 }
 0xdab   :  { %4369 = vrot.lane.b32.xlu1 %v4368_v48, %s4498_s29 }
 0xdaf   :  { %4379 = vrot.lane.b32.xlu1 %v4378_v60, %s4498_s29 }
 0xdfd   :  { %v4355_v32 = vpop.permute.xlu0 %4354 }
 0xdfe   :  { %v4357_v41 = vunpack.i.h.bf16 %v4355_v32  ;;  %v4356_v29 = vunpack.i.l.bf16 %v4355_v32 }
 0xe00   :  { %v4033_v47 = vpack.c.bf16 %v4357_v41, %v4356_v29 }
 0xe01   :  { %v4365_v59 = vpop.permute.xlu0 %4364 }
 0xe02   :  { %v4367_v4 = vunpack.i.h.bf16 %v4365_v59  ;;  %v4366_v61 = vunpack.i.l.bf16 %v4365_v59 }
 0xe04   :  { %v4039_v63 = vpack.c.bf16 %v4367_v4, %v4366_v61 }
 0xe05   :  { %v4375_v6 = vpop.permute.xlu0 %4374 }
 0xe06   :  { %v4377_v12 = vunpack.i.h.bf16 %v4375_v6  ;;  %v4376_v3 = vunpack.i.l.bf16 %v4375_v6 }
 0xe08   :  { %v4045_v33 = vpack.c.bf16 %v4377_v12, %v4376_v3 }
 0xe09   :  { %v4385_v52 = vpop.permute.xlu0 %4384 }
 0xe0a   :  { %v4387_v54 = vunpack.i.h.bf16 %v4385_v52  ;;  %v4386_v62 = vunpack.i.l.bf16 %v4385_v52 }
 0xe0c   :  { %v4051_v35 = vpack.c.bf16 %v4387_v54, %v4386_v62 }
 0xe15   :  { %v4350_v43 = vpop.permute.xlu1 %4349 }
 0xe16   :  { %v4352_v9 = vunpack.i.h.bf16 %v4350_v43  ;;  %v4351_v20 = vunpack.i.l.bf16 %v4350_v43 }
 0xe18   :  { %v4030_v16 = vpack.c.bf16 %v4352_v9, %v4351_v20 }
 0xe19   :  { %v4360_v44 = vpop.permute.xlu1 %4359 }
 0xe1a   :  { %4031 = vmatpush3.bf16.msra.mxu1 %v4030_v16  ;;  %v4362_v39 = vunpack.i.h.bf16 %v4360_v44  ;;  %v4361_v7 = vunpack.i.l.bf16 %v4360_v44 }
 0xe1b   :  { %4032 = vmatprep.subr.bf16.mxu1 %v6978_v24 }
 0xe1c   :  { %v4036_v27 = vpack.c.bf16 %v4362_v39, %v4361_v7 }
 0xe1d   :  { %v4370_v38 = vpop.permute.xlu1 %4369 }
 0xe1e   :  { %4034 = vmatpush3.bf16.msra.mxu1 %v4033_v47  ;;  %v4372_v53 = vunpack.i.h.bf16 %v4370_v38  ;;  %v4371_v50 = vunpack.i.l.bf16 %v4370_v38 }
 0xe1f   :  { %4035 = vmatprep.subr.bf16.mxu1 %v6978_v24 }
 0xe20   :  { %v4042_v58 = vpack.c.bf16 %v4372_v53, %v4371_v50 }
 0xe21   :  { %v4380_v18 = vpop.permute.xlu1 %4379 }
 0xe22   :  { %4037 = vmatpush3.bf16.msra.mxu1 %v4036_v27  ;;  %v4382_v23 = vunpack.i.h.bf16 %v4380_v18  ;;  %v4381_v8 = vunpack.i.l.bf16 %v4380_v18 }
 0xe23   :  { %4038 = vmatprep.subr.bf16.mxu1 %v6978_v24 }
 0xe24   :  { %v4048_v30 = vpack.c.bf16 %v4382_v23, %v4381_v8 }
 0xe26   :  { %4040 = vmatpush3.bf16.msra.mxu1 %v4039_v63 }
 0xe27   :  { %4041 = vmatprep.subr.bf16.mxu1 %v6978_v24 }
 0xe2a   :  { %4043 = vmatpush3.bf16.msra.mxu1 %v4042_v58 }
 0xe2b   :  { %4044 = vmatprep.subr.bf16.mxu1 %v6978_v24 }
 0xe2e   :  { %4046 = vmatpush3.bf16.msra.mxu1 %v4045_v33 }
 0xe2f   :  { %4047 = vmatprep.subr.bf16.mxu1 %v6978_v24 }
 0xe32   :  { %4049 = vmatpush3.bf16.msra.mxu1 %v4048_v30 }
 0xe33   :  { %4050 = vmatprep.subr.bf16.mxu1 %v6978_v24 }
 0xe36   :  { %4052 = vmatpush3.bf16.msra.mxu1 %v4051_v35 }
 0xe72   :  { %v3477_v45 = vpop.f32.mrb[18].mxu1 }
 0xe73   :  { %v3478_v19 = vpop.f32.mrb[19].mxu1 }
 0xe74   :  { %v3479_v11 = vadd.f32 %v3478_v19, %v3477_v45 }
 0xe76   :  { %v3003_v0 = vadd.f32 %v3479_v11, %v3265_v13 }
 0xe78   :  { %v3006_v15 = vmax.f32 %v3003_v0, 0.0 }
 0xe7a   :  { %3752 = vmatmul.mubr.f32.vlgmr.msra.gmra.mrb[24].mxu0 %v3006_v15 }
 0xf4d   :  { %v3094_v40 = vpop.f32.mrb[24].mxu0 }
 0xf4e   :  { %v3095_v14 = vadd.f32 %v3266_v21, %v3094_v40  ;;  %v3753_v57 = vpop.f32.mrb[25].mxu0 }
 0xf50   :  { %v3098_v17 = vmax.f32 %v3095_v14, 0.0 }
 0xf52   :  { %3787 = vmatmul.mubr.f32.vlgmr.msra.gmra.mrb[20].mxu1 %v3098_v17 }
0x1025   :  { %v3218_v36 = vpop.f32.mrb[20].mxu1 }
0x1026   :  { %v3219_v42 = vadd.f32 %v3267_v51, %v3218_v36  ;;  %v3788_v10 = vpop.f32.mrb[21].mxu1 }
0x1028   :  { %v3222_v1 = vsub.f32 0.0, %v3219_v42 }
0x102a   :  { %v3223_v22 = vmul.f32 1.442695, %v3222_v1 }
0x102c   :  { %4413 = vpow2.f32 %v3223_v22 }
0x1036   :  { %v4414_v24 = vpop.eup %4413 }
0x1037   :  { %v3225_v55 = vadd.f32 1.0, %v4414_v24 }
0x1039   :  { %4415 = vrcp.f32 %v3225_v55 }
0x1043   :  { %v4416_v31 = vpop.eup %4415 }
0x1044   :  { %3228 = vst.msk [vmem:[%s6722_s4] sm:$0x3] %vm3227_vm1, %v4416_v31 }

</bundles_post_ra>
